<compile_context>
chip_gen: v7x
topology: tpu7x:2x2x1
jax: 0.10.0
libtpu: 0.0.40
codegen_flags: <defaults>
</compile_context>

<pallas_src>
import functools

import jax
import jax.numpy as jnp
from jax import lax
from jax.experimental import pallas as pl
from jax.experimental.pallas import tpu as pltpu


# ---------------------------------------------------------------------------
# Pallas kernel: fused-tap 3x3x3 conv (one output (H*W, Cout) plane per step).
#   grid = (N, D, 3)   -- last axis = depth tap kd (reduction, "arbitrary")
#   x_ref : ((H+2)*W, 3*Cin)  padded plane at depth d+kd, kw folded into chans
#   w_ref : (3, 3*Cin, Cout)  weights for depth tap kd (kh major)
#   b_ref : (1, Cout)
#   o_ref : (H*W, Cout) f32   resident accumulator across kd
# ---------------------------------------------------------------------------
def _conv3x3_tap_kernel(x_ref, w_ref, b_ref, o_ref, *, H, W, apply_relu):
    kd = pl.program_id(2)

    @pl.when(kd == 0)
    def _init():
        o_ref[...] = jnp.broadcast_to(b_ref[...], o_ref.shape)

    acc = jnp.zeros(o_ref.shape, jnp.float32)
    for kh in range(3):
        xm = x_ref[pl.ds(kh * W, H * W), :]              # (H*W, 3*Cin) bf16
        acc = acc + jnp.dot(xm, w_ref[kh],
                            preferred_element_type=jnp.float32)
    o_ref[...] += acc

    if apply_relu:                                        # static Python flag
        @pl.when(kd == pl.num_programs(2) - 1)
        def _relu():
            o_ref[...] = jnp.maximum(o_ref[...], 0.0)


def conv3d_3x3_pallas(x, w, b, *, apply_relu=False):
    """x: (N, D, H, W, Cin) f32; w: (Cout, Cin, 3, 3, 3) (PyTorch); b: (Cout,)."""
    N, D, H, W, Cin = x.shape
    Cout = w.shape[0]
    C3 = 3 * Cin
    Dp, Hp = D + 2, H + 2

    # bf16 operands for the MXU; f32 accumulation stays inside the kernel.
    xb = x.astype(jnp.bfloat16)
    xp = jnp.pad(xb, ((0, 0), (1, 1), (1, 1), (1, 1), (0, 0)))
    # Fold the kw taps into channels (3x, bf16) -> (N, Dp, Hp, W, 3*Cin),
    # then flatten (Hp, W) so the kh tap is a contiguous row slice in-kernel.
    xw = jnp.concatenate([xp[:, :, :, kw:kw + W, :] for kw in range(3)], axis=-1)
    xw = xw.reshape(N, Dp, Hp * W, C3)

    # Weight layout to match: wt[kd, kh, kw*Cin + ci, co] = w[co, ci, kd, kh, kw]
    wt = jnp.transpose(w, (2, 3, 4, 1, 0)).reshape(3, 3, C3, Cout).astype(jnp.bfloat16)
    bt = b.astype(jnp.float32).reshape(1, Cout)

    kernel = functools.partial(_conv3x3_tap_kernel, H=H, W=W, apply_relu=apply_relu)

    out = pl.pallas_call(
        kernel,
        out_shape=jax.ShapeDtypeStruct((N, D, H * W, Cout), jnp.float32),
        grid_spec=pltpu.PrefetchScalarGridSpec(
            num_scalar_prefetch=0,
            grid=(N, D, 3),
            in_specs=[
                # depth-shifted padded plane (block index on dim 1 is d + kd)
                pl.BlockSpec((None, None, Hp * W, C3),
                             lambda n, d, kd: (n, d + kd, 0, 0)),
                # weights for depth tap kd
                pl.BlockSpec((None, 3, C3, Cout),
                             lambda n, d, kd: (kd, 0, 0, 0)),
                # bias
                pl.BlockSpec((1, Cout), lambda n, d, kd: (0, 0)),
            ],
            out_specs=pl.BlockSpec((None, None, H * W, Cout),
                                   lambda n, d, kd: (n, d, 0, 0)),
        ),
        compiler_params=pltpu.CompilerParams(
            dimension_semantics=("parallel", "parallel", "arbitrary")),
    )(xw, wt, bt)
    return out.reshape(N, D, H, W, Cout)


# ---------------------------------------------------------------------------
# Tiny lane-sparse layers left to XLA (per perf review): decoder4 & 1x1 map.
# ---------------------------------------------------------------------------
def conv3d_3x3_xla(x, w, b):
    wt = jnp.transpose(w, (2, 3, 4, 1, 0))               # DHWIO
    out = lax.conv_general_dilated(
        x, wt, window_strides=(1, 1, 1),
        padding=((1, 1), (1, 1), (1, 1)),
        dimension_numbers=("NDHWC", "DHWIO", "NDHWC"))
    return out + b


def conv3d_1x1_xla(x, w, b):
    Cout, Cin = w.shape[0], w.shape[1]
    return jnp.einsum("ndhwc,oc->ndhwo", x, w.reshape(Cout, Cin)) + b


# ---------------------------------------------------------------------------
# Glue ops: max_pool3d(2,2), trilinear upsample x2 (align_corners=False)
# ---------------------------------------------------------------------------
def maxpool3d_2(x):
    N, D, H, W, C = x.shape
    x = x.reshape(N, D // 2, 2, H // 2, 2, W // 2, 2, C)
    return x.max(axis=(2, 4, 6))


def _upsample_axis_2x(x, axis):
    D = x.shape[axis]
    o = jnp.arange(2 * D, dtype=jnp.float32)
    src = jnp.maximum((o + 0.5) * 0.5 - 0.5, 0.0)        # PyTorch align_corners=False
    i0 = jnp.clip(jnp.floor(src).astype(jnp.int32), 0, D - 1)
    i1 = jnp.minimum(i0 + 1, D - 1)
    w1 = src - i0.astype(jnp.float32)
    w0 = 1.0 - w1
    shape = [1] * x.ndim
    shape[axis] = 2 * D
    x0 = jnp.take(x, i0, axis=axis)
    x1 = jnp.take(x, i1, axis=axis)
    return x0 * w0.reshape(shape) + x1 * w1.reshape(shape)


def trilinear_upsample_2x(x):
    x = _upsample_axis_2x(x, 1)
    x = _upsample_axis_2x(x, 2)
    x = _upsample_axis_2x(x, 3)
    return x


# ---------------------------------------------------------------------------
# Parameters (deterministic, PyTorch-default-style uniform init)
# ---------------------------------------------------------------------------
def init_conv(key, cout, cin, k):
    wkey, bkey = jax.random.split(key)
    fan_in = cin * k ** 3
    bound = 1.0 / (fan_in ** 0.5)
    w = jax.random.uniform(wkey, (cout, cin, k, k, k), jnp.float32, -bound, bound)
    b = jax.random.uniform(bkey, (cout,), jnp.float32, -bound, bound)
    return w, b


def init_params(key, in_channel=1, out_channel=2):
    keys = jax.random.split(key, 9)
    return {
        "encoder1": init_conv(keys[0], 32, in_channel, 3),
        "encoder2": init_conv(keys[1], 64, 32, 3),
        "encoder3": init_conv(keys[2], 128, 64, 3),
        "encoder4": init_conv(keys[3], 256, 128, 3),
        "decoder1": init_conv(keys[4], 128, 256, 3),
        "decoder2": init_conv(keys[5], 64, 128, 3),
        "decoder3": init_conv(keys[6], 32, 64, 3),
        "decoder4": init_conv(keys[7], 2, 32, 3),
        "map": init_conv(keys[8], out_channel, 2, 1),
    }


# ---------------------------------------------------------------------------
# Forward pass (mirrors Simple_Unet.forward exactly).
# ReLU is fused into the encoder convs (relu o maxpool == maxpool o relu);
# decoder ReLUs stay after the upsample (not commutative).
# ---------------------------------------------------------------------------
@jax.jit
def simple_unet_forward(x_ncdhw, params):
    relu = jax.nn.relu
    x = jnp.transpose(x_ncdhw, (0, 2, 3, 4, 1))          # NCDHW -> NDHWC

    out = maxpool3d_2(conv3d_3x3_pallas(x, *params["encoder1"], apply_relu=True))
    t1 = out
    out = maxpool3d_2(conv3d_3x3_pallas(out, *params["encoder2"], apply_relu=True))
    t2 = out
    out = maxpool3d_2(conv3d_3x3_pallas(out, *params["encoder3"], apply_relu=True))
    t3 = out
    out = maxpool3d_2(conv3d_3x3_pallas(out, *params["encoder4"], apply_relu=True))

    out = relu(trilinear_upsample_2x(conv3d_3x3_pallas(out, *params["decoder1"])))
    out = out + t3
    out = relu(trilinear_upsample_2x(conv3d_3x3_pallas(out, *params["decoder2"])))
    out = out + t2
    out = relu(trilinear_upsample_2x(conv3d_3x3_pallas(out, *params["decoder3"])))
    out = out + t1
    # decoder4 (Cout=2) + 1x1 map conv: lane-sparse & tiny -> plain JAX/XLA.
    out = relu(trilinear_upsample_2x(conv3d_3x3_xla(out, *params["decoder4"])))
    out = conv3d_1x1_xla(out, *params["map"])
    return jnp.transpose(out, (0, 4, 1, 2, 3))           # NDHWC -> NCDHW


if __name__ == "__main__":
    key = jax.random.PRNGKey(0)
    pkey, xkey = jax.random.split(key)
    params = init_params(pkey, in_channel=1, out_channel=2)

    # Small input consistent with Conv3d(in_channel=1): NCDHW = (2, 1, 16, 16, 16)
    x = jax.random.normal(xkey, (2, 1, 16, 16, 16), jnp.float32)

    out = simple_unet_forward(x, params)
    jax.block_until_ready(out)
    assert out.shape == (2, 2, 16, 16, 16), out.shape
    print("KERNEL_OK")
</pallas_src>

<mosaic_0001>
module attributes {stable_mosaic.version = 11 : i64} {
  func.func @_conv3x3_tap_kernel(%arg0: i32, %arg1: i32, %arg2: i32, %arg3: memref<1x1x288x3xbf16, #tpu.memory_space<vmem>>, %arg4: memref<1x3x3x32xbf16, #tpu.memory_space<vmem>>, %arg5: memref<1x32xf32, #tpu.memory_space<vmem>>, %arg6: memref<1x1x256x32xf32, #tpu.memory_space<vmem>>) attributes {dimension_semantics = [#tpu.dimension_semantics<parallel>, #tpu.dimension_semantics<parallel>, #tpu.dimension_semantics<arbitrary>], iteration_bounds = array<i64: 2, 16, 3>, scalar_prefetch = 0 : i64, scratch_operands = 0 : i64, tpu.core_type = #tpu.core_type<tc>, window_params = [{transform_indices = @transform_0, window_bounds = array<i64: 1, 1, 288, 3>}, {transform_indices = @transform_1, window_bounds = array<i64: 1, 3, 3, 32>}, {pipeline_mode = #tpu.pipeline_mode<synchronous>, transform_indices = @transform_2, window_bounds = array<i64: 1, 32>}, {transform_indices = @transform_3, window_bounds = array<i64: 1, 1, 256, 32>}]} {
    %c0_i32 = arith.constant 0 : i32
    %0 = arith.cmpi eq, %arg2, %c0_i32 : i32
    %1 = arith.extui %0 : i1 to i32
    %c0_i32_0 = arith.constant 0 : i32
    %2 = arith.cmpi ne, %1, %c0_i32_0 : i32
    scf.if %2 {
      %c0_32 = arith.constant 0 : index
      %c0_33 = arith.constant 0 : index
      %31 = vector.load %arg5[%c0_32, %c0_33] : memref<1x32xf32, #tpu.memory_space<vmem>>, vector<1x32xf32>
      %32 = vector.shape_cast %31 : vector<1x32xf32> to vector<1x32xf32>
      %33 = vector.broadcast %32 : vector<1x32xf32> to vector<256x32xf32>
      %c0_34 = arith.constant 0 : index
      %c0_35 = arith.constant 0 : index
      %c0_36 = arith.constant 0 : index
      %c0_37 = arith.constant 0 : index
      %34 = vector.load %arg6[%c0_34, %c0_35, %c0_36, %c0_37] : memref<1x1x256x32xf32, #tpu.memory_space<vmem>>, vector<1x1x256x32xf32>
      %35 = vector.shape_cast %34 : vector<1x1x256x32xf32> to vector<256x32xf32>
      %36 = vector.shape_cast %33 : vector<256x32xf32> to vector<1x1x256x32xf32>
      tpu.vector_store %arg6[%c0_34, %c0_35, %c0_36, %c0_37], %36 {strides = array<i32>} : memref<1x1x256x32xf32, #tpu.memory_space<vmem>>, vector<1x1x256x32xf32>,
    } else {
    }
    %cst = arith.constant 0.000000e+00 : f32
    %3 = vector.broadcast %cst : f32 to vector<256x32xf32>
    %c0 = arith.constant 0 : index
    %c0_1 = arith.constant 0 : index
    %c0_2 = arith.constant 0 : index
    %c0_3 = arith.constant 0 : index
    %4 = vector.load %arg3[%c0, %c0_1, %c0_2, %c0_3] : memref<1x1x288x3xbf16, #tpu.memory_space<vmem>>, vector<1x1x256x3xbf16>
    %5 = vector.shape_cast %4 : vector<1x1x256x3xbf16> to vector<256x3xbf16>
    %c0_4 = arith.constant 0 : index
    %c0_5 = arith.constant 0 : index
    %c0_6 = arith.constant 0 : index
    %c0_7 = arith.constant 0 : index
    %6 = vector.load %arg4[%c0_4, %c0_5, %c0_6, %c0_7] : memref<1x3x3x32xbf16, #tpu.memory_space<vmem>>, vector<1x1x3x32xbf16>
    %7 = vector.shape_cast %6 : vector<1x1x3x32xbf16> to vector<3x32xbf16>
    %cst_8 = arith.constant dense<0.000000e+00> : vector<256x32xf32>
    %8 = tpu.matmul %5, %7, %cst_8 {dimension_numbers = #tpu.dot_dimension_numbers<[1], [0], [0], [1], [0, 0, 1, 1], [], []>} : vector<256x3xbf16>, vector<3x32xbf16>, vector<256x32xf32> -> vector<256x32xf32>
    %9 = arith.addf %3, %8 : vector<256x32xf32>
    %c0_9 = arith.constant 0 : index
    %c0_10 = arith.constant 0 : index
    %c16 = arith.constant 16 : index
    %c0_11 = arith.constant 0 : index
    %10 = vector.load %arg3[%c0_9, %c0_10, %c16, %c0_11] : memref<1x1x288x3xbf16, #tpu.memory_space<vmem>>, vector<1x1x256x3xbf16>
    %11 = vector.shape_cast %10 : vector<1x1x256x3xbf16> to vector<256x3xbf16>
    %c0_12 = arith.constant 0 : index
    %c1 = arith.constant 1 : index
    %c0_13 = arith.constant 0 : index
    %c0_14 = arith.constant 0 : index
    %12 = vector.load %arg4[%c0_12, %c1, %c0_13, %c0_14] : memref<1x3x3x32xbf16, #tpu.memory_space<vmem>>, vector<1x1x3x32xbf16>
    %13 = vector.shape_cast %12 : vector<1x1x3x32xbf16> to vector<3x32xbf16>
    %cst_15 = arith.constant dense<0.000000e+00> : vector<256x32xf32>
    %14 = tpu.matmul %11, %13, %cst_15 {dimension_numbers = #tpu.dot_dimension_numbers<[1], [0], [0], [1], [0, 0, 1, 1], [], []>} : vector<256x3xbf16>, vector<3x32xbf16>, vector<256x32xf32> -> vector<256x32xf32>
    %15 = arith.addf %9, %14 : vector<256x32xf32>
    %c0_16 = arith.constant 0 : index
    %c0_17 = arith.constant 0 : index
    %c32 = arith.constant 32 : index
    %c0_18 = arith.constant 0 : index
    %16 = vector.load %arg3[%c0_16, %c0_17, %c32, %c0_18] : memref<1x1x288x3xbf16, #tpu.memory_space<vmem>>, vector<1x1x256x3xbf16>
    %17 = vector.shape_cast %16 : vector<1x1x256x3xbf16> to vector<256x3xbf16>
    %c0_19 = arith.constant 0 : index
    %c2 = arith.constant 2 : index
    %c0_20 = arith.constant 0 : index
    %c0_21 = arith.constant 0 : index
    %18 = vector.load %arg4[%c0_19, %c2, %c0_20, %c0_21] : memref<1x3x3x32xbf16, #tpu.memory_space<vmem>>, vector<1x1x3x32xbf16>
    %19 = vector.shape_cast %18 : vector<1x1x3x32xbf16> to vector<3x32xbf16>
    %cst_22 = arith.constant dense<0.000000e+00> : vector<256x32xf32>
    %20 = tpu.matmul %17, %19, %cst_22 {dimension_numbers = #tpu.dot_dimension_numbers<[1], [0], [0], [1], [0, 0, 1, 1], [], []>} : vector<256x3xbf16>, vector<3x32xbf16>, vector<256x32xf32> -> vector<256x32xf32>
    %21 = arith.addf %15, %20 : vector<256x32xf32>
    %c0_23 = arith.constant 0 : index
    %c0_24 = arith.constant 0 : index
    %c0_25 = arith.constant 0 : index
    %c0_26 = arith.constant 0 : index
    %22 = vector.load %arg6[%c0_23, %c0_24, %c0_25, %c0_26] : memref<1x1x256x32xf32, #tpu.memory_space<vmem>>, vector<1x1x256x32xf32>
    %23 = vector.shape_cast %22 : vector<1x1x256x32xf32> to vector<256x32xf32>
    %24 = arith.addf %23, %21 : vector<256x32xf32>
    %c0_27 = arith.constant 0 : index
    %c0_28 = arith.constant 0 : index
    %c0_29 = arith.constant 0 : index
    %c0_30 = arith.constant 0 : index
    %25 = vector.load %arg6[%c0_27, %c0_28, %c0_29, %c0_30] : memref<1x1x256x32xf32, #tpu.memory_space<vmem>>, vector<1x1x256x32xf32>
    %26 = vector.shape_cast %25 : vector<1x1x256x32xf32> to vector<256x32xf32>
    %27 = vector.shape_cast %24 : vector<256x32xf32> to vector<1x1x256x32xf32>
    tpu.vector_store %arg6[%c0_27, %c0_28, %c0_29, %c0_30], %27 {strides = array<i32>} : memref<1x1x256x32xf32, #tpu.memory_space<vmem>>, vector<1x1x256x32xf32>,
    %c2_i32 = arith.constant 2 : i32
    %28 = arith.cmpi eq, %arg2, %c2_i32 : i32
    %29 = arith.extui %28 : i1 to i32
    %c0_i32_31 = arith.constant 0 : i32
    %30 = arith.cmpi ne, %29, %c0_i32_31 : i32
    scf.if %30 {
      %c0_32 = arith.constant 0 : index
      %c0_33 = arith.constant 0 : index
      %c0_34 = arith.constant 0 : index
      %c0_35 = arith.constant 0 : index
      %31 = vector.load %arg6[%c0_32, %c0_33, %c0_34, %c0_35] : memref<1x1x256x32xf32, #tpu.memory_space<vmem>>, vector<1x1x256x32xf32>
      %32 = vector.shape_cast %31 : vector<1x1x256x32xf32> to vector<256x32xf32>
      %cst_36 = arith.constant 0.000000e+00 : f32
      %33 = vector.broadcast %cst_36 : f32 to vector<256x32xf32>
      %34 = arith.maximumf %32, %33 : vector<256x32xf32>
      %c0_37 = arith.constant 0 : index
      %c0_38 = arith.constant 0 : index
      %c0_39 = arith.constant 0 : index
      %c0_40 = arith.constant 0 : index
      %35 = vector.load %arg6[%c0_37, %c0_38, %c0_39, %c0_40] : memref<1x1x256x32xf32, #tpu.memory_space<vmem>>, vector<1x1x256x32xf32>
      %36 = vector.shape_cast %35 : vector<1x1x256x32xf32> to vector<256x32xf32>
      %37 = vector.shape_cast %34 : vector<256x32xf32> to vector<1x1x256x32xf32>
      tpu.vector_store %arg6[%c0_37, %c0_38, %c0_39, %c0_40], %37 {strides = array<i32>} : memref<1x1x256x32xf32, #tpu.memory_space<vmem>>, vector<1x1x256x32xf32>,
    } else {
    }
    return
  }
  func.func @transform_0(%arg0: i32, %arg1: i32, %arg2: i32) -> (i32, i32, i32, i32) {
    %0 = arith.addi %arg1, %arg2 : i32
    %c0_i32 = arith.constant 0 : i32
    %c0_i32_0 = arith.constant 0 : i32
    %c0_i32_1 = arith.constant 0 : i32
    return %arg0, %0, %c0_i32, %c0_i32_0 : i32, i32, i32, i32
  }
  func.func @transform_1(%arg0: i32, %arg1: i32, %arg2: i32) -> (i32, i32, i32, i32) {
    %c0_i32 = arith.constant 0 : i32
    %c0_i32_0 = arith.constant 0 : i32
    %c0_i32_1 = arith.constant 0 : i32
    %c0_i32_2 = arith.constant 0 : i32
    return %arg2, %c0_i32, %c0_i32_0, %c0_i32_1 : i32, i32, i32, i32
  }
  func.func @transform_2(%arg0: i32, %arg1: i32, %arg2: i32) -> (i32, i32) {
    %c0_i32 = arith.constant 0 : i32
    %c0_i32_0 = arith.constant 0 : i32
    %c0_i32_1 = arith.constant 0 : i32
    return %c0_i32, %c0_i32_0 : i32, i32
  }
  func.func @transform_3(%arg0: i32, %arg1: i32, %arg2: i32) -> (i32, i32, i32, i32) {
    %c0_i32 = arith.constant 0 : i32
    %c0_i32_0 = arith.constant 0 : i32
    %c0_i32_1 = arith.constant 0 : i32
    return %arg0, %arg1, %c0_i32, %c0_i32_0 : i32, i32, i32, i32
  }
}

module attributes {stable_mosaic.version = 11 : i64} {
  func.func @_conv3x3_tap_kernel(%arg0: i32, %arg1: i32, %arg2: i32, %arg3: memref<1x1x80x96xbf16, #tpu.memory_space<vmem>>, %arg4: memref<1x3x96x64xbf16, #tpu.memory_space<vmem>>, %arg5: memref<1x64xf32, #tpu.memory_space<vmem>>, %arg6: memref<1x1x64x64xf32, #tpu.memory_space<vmem>>) attributes {dimension_semantics = [#tpu.dimension_semantics<parallel>, #tpu.dimension_semantics<parallel>, #tpu.dimension_semantics<arbitrary>], iteration_bounds = array<i64: 2, 8, 3>, scalar_prefetch = 0 : i64, scratch_operands = 0 : i64, tpu.core_type = #tpu.core_type<tc>, window_params = [{transform_indices = @transform_0, window_bounds = array<i64: 1, 1, 80, 96>}, {transform_indices = @transform_1, window_bounds = array<i64: 1, 3, 96, 64>}, {pipeline_mode = #tpu.pipeline_mode<synchronous>, transform_indices = @transform_2, window_bounds = array<i64: 1, 64>}, {transform_indices = @transform_3, window_bounds = array<i64: 1, 1, 64, 64>}]} {
    %c0_i32 = arith.constant 0 : i32
    %0 = arith.cmpi eq, %arg2, %c0_i32 : i32
    %1 = arith.extui %0 : i1 to i32
    %c0_i32_0 = arith.constant 0 : i32
    %2 = arith.cmpi ne, %1, %c0_i32_0 : i32
    scf.if %2 {
      %c0_32 = arith.constant 0 : index
      %c0_33 = arith.constant 0 : index
      %31 = vector.load %arg5[%c0_32, %c0_33] : memref<1x64xf32, #tpu.memory_space<vmem>>, vector<1x64xf32>
      %32 = vector.shape_cast %31 : vector<1x64xf32> to vector<1x64xf32>
      %33 = vector.broadcast %32 : vector<1x64xf32> to vector<64x64xf32>
      %c0_34 = arith.constant 0 : index
      %c0_35 = arith.constant 0 : index
      %c0_36 = arith.constant 0 : index
      %c0_37 = arith.constant 0 : index
      %34 = vector.load %arg6[%c0_34, %c0_35, %c0_36, %c0_37] : memref<1x1x64x64xf32, #tpu.memory_space<vmem>>, vector<1x1x64x64xf32>
      %35 = vector.shape_cast %34 : vector<1x1x64x64xf32> to vector<64x64xf32>
      %36 = vector.shape_cast %33 : vector<64x64xf32> to vector<1x1x64x64xf32>
      tpu.vector_store %arg6[%c0_34, %c0_35, %c0_36, %c0_37], %36 {strides = array<i32>} : memref<1x1x64x64xf32, #tpu.memory_space<vmem>>, vector<1x1x64x64xf32>,
    } else {
    }
    %cst = arith.constant 0.000000e+00 : f32
    %3 = vector.broadcast %cst : f32 to vector<64x64xf32>
    %c0 = arith.constant 0 : index
    %c0_1 = arith.constant 0 : index
    %c0_2 = arith.constant 0 : index
    %c0_3 = arith.constant 0 : index
    %4 = vector.load %arg3[%c0, %c0_1, %c0_2, %c0_3] : memref<1x1x80x96xbf16, #tpu.memory_space<vmem>>, vector<1x1x64x96xbf16>
    %5 = vector.shape_cast %4 : vector<1x1x64x96xbf16> to vector<64x96xbf16>
    %c0_4 = arith.constant 0 : index
    %c0_5 = arith.constant 0 : index
    %c0_6 = arith.constant 0 : index
    %c0_7 = arith.constant 0 : index
    %6 = vector.load %arg4[%c0_4, %c0_5, %c0_6, %c0_7] : memref<1x3x96x64xbf16, #tpu.memory_space<vmem>>, vector<1x1x96x64xbf16>
    %7 = vector.shape_cast %6 : vector<1x1x96x64xbf16> to vector<96x64xbf16>
    %cst_8 = arith.constant dense<0.000000e+00> : vector<64x64xf32>
    %8 = tpu.matmul %5, %7, %cst_8 {dimension_numbers = #tpu.dot_dimension_numbers<[1], [0], [0], [1], [0, 0, 1, 1], [], []>} : vector<64x96xbf16>, vector<96x64xbf16>, vector<64x64xf32> -> vector<64x64xf32>
    %9 = arith.addf %3, %8 : vector<64x64xf32>
    %c0_9 = arith.constant 0 : index
    %c0_10 = arith.constant 0 : index
    %c8 = arith.constant 8 : index
    %c0_11 = arith.constant 0 : index
    %10 = vector.load %arg3[%c0_9, %c0_10, %c8, %c0_11] : memref<1x1x80x96xbf16, #tpu.memory_space<vmem>>, vector<1x1x64x96xbf16>
    %11 = vector.shape_cast %10 : vector<1x1x64x96xbf16> to vector<64x96xbf16>
    %c0_12 = arith.constant 0 : index
    %c1 = arith.constant 1 : index
    %c0_13 = arith.constant 0 : index
    %c0_14 = arith.constant 0 : index
    %12 = vector.load %arg4[%c0_12, %c1, %c0_13, %c0_14] : memref<1x3x96x64xbf16, #tpu.memory_space<vmem>>, vector<1x1x96x64xbf16>
    %13 = vector.shape_cast %12 : vector<1x1x96x64xbf16> to vector<96x64xbf16>
    %cst_15 = arith.constant dense<0.000000e+00> : vector<64x64xf32>
    %14 = tpu.matmul %11, %13, %cst_15 {dimension_numbers = #tpu.dot_dimension_numbers<[1], [0], [0], [1], [0, 0, 1, 1], [], []>} : vector<64x96xbf16>, vector<96x64xbf16>, vector<64x64xf32> -> vector<64x64xf32>
    %15 = arith.addf %9, %14 : vector<64x64xf32>
    %c0_16 = arith.constant 0 : index
    %c0_17 = arith.constant 0 : index
    %c16 = arith.constant 16 : index
    %c0_18 = arith.constant 0 : index
    %16 = vector.load %arg3[%c0_16, %c0_17, %c16, %c0_18] : memref<1x1x80x96xbf16, #tpu.memory_space<vmem>>, vector<1x1x64x96xbf16>
    %17 = vector.shape_cast %16 : vector<1x1x64x96xbf16> to vector<64x96xbf16>
    %c0_19 = arith.constant 0 : index
    %c2 = arith.constant 2 : index
    %c0_20 = arith.constant 0 : index
    %c0_21 = arith.constant 0 : index
    %18 = vector.load %arg4[%c0_19, %c2, %c0_20, %c0_21] : memref<1x3x96x64xbf16, #tpu.memory_space<vmem>>, vector<1x1x96x64xbf16>
    %19 = vector.shape_cast %18 : vector<1x1x96x64xbf16> to vector<96x64xbf16>
    %cst_22 = arith.constant dense<0.000000e+00> : vector<64x64xf32>
    %20 = tpu.matmul %17, %19, %cst_22 {dimension_numbers = #tpu.dot_dimension_numbers<[1], [0], [0], [1], [0, 0, 1, 1], [], []>} : vector<64x96xbf16>, vector<96x64xbf16>, vector<64x64xf32> -> vector<64x64xf32>
    %21 = arith.addf %15, %20 : vector<64x64xf32>
    %c0_23 = arith.constant 0 : index
    %c0_24 = arith.constant 0 : index
    %c0_25 = arith.constant 0 : index
    %c0_26 = arith.constant 0 : index
    %22 = vector.load %arg6[%c0_23, %c0_24, %c0_25, %c0_26] : memref<1x1x64x64xf32, #tpu.memory_space<vmem>>, vector<1x1x64x64xf32>
    %23 = vector.shape_cast %22 : vector<1x1x64x64xf32> to vector<64x64xf32>
    %24 = arith.addf %23, %21 : vector<64x64xf32>
    %c0_27 = arith.constant 0 : index
    %c0_28 = arith.constant 0 : index
    %c0_29 = arith.constant 0 : index
    %c0_30 = arith.constant 0 : index
    %25 = vector.load %arg6[%c0_27, %c0_28, %c0_29, %c0_30] : memref<1x1x64x64xf32, #tpu.memory_space<vmem>>, vector<1x1x64x64xf32>
    %26 = vector.shape_cast %25 : vector<1x1x64x64xf32> to vector<64x64xf32>
    %27 = vector.shape_cast %24 : vector<64x64xf32> to vector<1x1x64x64xf32>
    tpu.vector_store %arg6[%c0_27, %c0_28, %c0_29, %c0_30], %27 {strides = array<i32>} : memref<1x1x64x64xf32, #tpu.memory_space<vmem>>, vector<1x1x64x64xf32>,
    %c2_i32 = arith.constant 2 : i32
    %28 = arith.cmpi eq, %arg2, %c2_i32 : i32
    %29 = arith.extui %28 : i1 to i32
    %c0_i32_31 = arith.constant 0 : i32
    %30 = arith.cmpi ne, %29, %c0_i32_31 : i32
    scf.if %30 {
      %c0_32 = arith.constant 0 : index
      %c0_33 = arith.constant 0 : index
      %c0_34 = arith.constant 0 : index
      %c0_35 = arith.constant 0 : index
      %31 = vector.load %arg6[%c0_32, %c0_33, %c0_34, %c0_35] : memref<1x1x64x64xf32, #tpu.memory_space<vmem>>, vector<1x1x64x64xf32>
      %32 = vector.shape_cast %31 : vector<1x1x64x64xf32> to vector<64x64xf32>
      %cst_36 = arith.constant 0.000000e+00 : f32
      %33 = vector.broadcast %cst_36 : f32 to vector<64x64xf32>
      %34 = arith.maximumf %32, %33 : vector<64x64xf32>
      %c0_37 = arith.constant 0 : index
      %c0_38 = arith.constant 0 : index
      %c0_39 = arith.constant 0 : index
      %c0_40 = arith.constant 0 : index
      %35 = vector.load %arg6[%c0_37, %c0_38, %c0_39, %c0_40] : memref<1x1x64x64xf32, #tpu.memory_space<vmem>>, vector<1x1x64x64xf32>
      %36 = vector.shape_cast %35 : vector<1x1x64x64xf32> to vector<64x64xf32>
      %37 = vector.shape_cast %34 : vector<64x64xf32> to vector<1x1x64x64xf32>
      tpu.vector_store %arg6[%c0_37, %c0_38, %c0_39, %c0_40], %37 {strides = array<i32>} : memref<1x1x64x64xf32, #tpu.memory_space<vmem>>, vector<1x1x64x64xf32>,
    } else {
    }
    return
  }
  func.func @transform_0(%arg0: i32, %arg1: i32, %arg2: i32) -> (i32, i32, i32, i32) {
    %0 = arith.addi %arg1, %arg2 : i32
    %c0_i32 = arith.constant 0 : i32
    %c0_i32_0 = arith.constant 0 : i32
    %c0_i32_1 = arith.constant 0 : i32
    return %arg0, %0, %c0_i32, %c0_i32_0 : i32, i32, i32, i32
  }
  func.func @transform_1(%arg0: i32, %arg1: i32, %arg2: i32) -> (i32, i32, i32, i32) {
    %c0_i32 = arith.constant 0 : i32
    %c0_i32_0 = arith.constant 0 : i32
    %c0_i32_1 = arith.constant 0 : i32
    %c0_i32_2 = arith.constant 0 : i32
    return %arg2, %c0_i32, %c0_i32_0, %c0_i32_1 : i32, i32, i32, i32
  }
  func.func @transform_2(%arg0: i32, %arg1: i32, %arg2: i32) -> (i32, i32) {
    %c0_i32 = arith.constant 0 : i32
    %c0_i32_0 = arith.constant 0 : i32
    %c0_i32_1 = arith.constant 0 : i32
    return %c0_i32, %c0_i32_0 : i32, i32
  }
  func.func @transform_3(%arg0: i32, %arg1: i32, %arg2: i32) -> (i32, i32, i32, i32) {
    %c0_i32 = arith.constant 0 : i32
    %c0_i32_0 = arith.constant 0 : i32
    %c0_i32_1 = arith.constant 0 : i32
    return %arg0, %arg1, %c0_i32, %c0_i32_0 : i32, i32, i32, i32
  }
}

module attributes {stable_mosaic.version = 11 : i64} {
  func.func @_conv3x3_tap_kernel(%arg0: i32, %arg1: i32, %arg2: i32, %arg3: memref<1x1x24x192xbf16, #tpu.memory_space<vmem>>, %arg4: memref<1x3x192x128xbf16, #tpu.memory_space<vmem>>, %arg5: memref<1x128xf32, #tpu.memory_space<vmem>>, %arg6: memref<1x1x16x128xf32, #tpu.memory_space<vmem>>) attributes {dimension_semantics = [#tpu.dimension_semantics<parallel>, #tpu.dimension_semantics<parallel>, #tpu.dimension_semantics<arbitrary>], iteration_bounds = array<i64: 2, 4, 3>, scalar_prefetch = 0 : i64, scratch_operands = 0 : i64, tpu.core_type = #tpu.core_type<tc>, window_params = [{transform_indices = @transform_0, window_bounds = array<i64: 1, 1, 24, 192>}, {transform_indices = @transform_1, window_bounds = array<i64: 1, 3, 192, 128>}, {pipeline_mode = #tpu.pipeline_mode<synchronous>, transform_indices = @transform_2, window_bounds = array<i64: 1, 128>}, {transform_indices = @transform_3, window_bounds = array<i64: 1, 1, 16, 128>}]} {
    %c0_i32 = arith.constant 0 : i32
    %0 = arith.cmpi eq, %arg2, %c0_i32 : i32
    %1 = arith.extui %0 : i1 to i32
    %c0_i32_0 = arith.constant 0 : i32
    %2 = arith.cmpi ne, %1, %c0_i32_0 : i32
    scf.if %2 {
      %c0_32 = arith.constant 0 : index
      %c0_33 = arith.constant 0 : index
      %31 = vector.load %arg5[%c0_32, %c0_33] : memref<1x128xf32, #tpu.memory_space<vmem>>, vector<1x128xf32>
      %32 = vector.shape_cast %31 : vector<1x128xf32> to vector<1x128xf32>
      %33 = vector.broadcast %32 : vector<1x128xf32> to vector<16x128xf32>
      %c0_34 = arith.constant 0 : index
      %c0_35 = arith.constant 0 : index
      %c0_36 = arith.constant 0 : index
      %c0_37 = arith.constant 0 : index
      %34 = vector.load %arg6[%c0_34, %c0_35, %c0_36, %c0_37] : memref<1x1x16x128xf32, #tpu.memory_space<vmem>>, vector<1x1x16x128xf32>
      %35 = vector.shape_cast %34 : vector<1x1x16x128xf32> to vector<16x128xf32>
      %36 = vector.shape_cast %33 : vector<16x128xf32> to vector<1x1x16x128xf32>
      tpu.vector_store %arg6[%c0_34, %c0_35, %c0_36, %c0_37], %36 {strides = array<i32>} : memref<1x1x16x128xf32, #tpu.memory_space<vmem>>, vector<1x1x16x128xf32>,
    } else {
    }
    %cst = arith.constant 0.000000e+00 : f32
    %3 = vector.broadcast %cst : f32 to vector<16x128xf32>
    %c0 = arith.constant 0 : index
    %c0_1 = arith.constant 0 : index
    %c0_2 = arith.constant 0 : index
    %c0_3 = arith.constant 0 : index
    %4 = vector.load %arg3[%c0, %c0_1, %c0_2, %c0_3] : memref<1x1x24x192xbf16, #tpu.memory_space<vmem>>, vector<1x1x16x192xbf16>
    %5 = vector.shape_cast %4 : vector<1x1x16x192xbf16> to vector<16x192xbf16>
    %c0_4 = arith.constant 0 : index
    %c0_5 = arith.constant 0 : index
    %c0_6 = arith.constant 0 : index
    %c0_7 = arith.constant 0 : index
    %6 = vector.load %arg4[%c0_4, %c0_5, %c0_6, %c0_7] : memref<1x3x192x128xbf16, #tpu.memory_space<vmem>>, vector<1x1x192x128xbf16>
    %7 = vector.shape_cast %6 : vector<1x1x192x128xbf16> to vector<192x128xbf16>
    %cst_8 = arith.constant dense<0.000000e+00> : vector<16x128xf32>
    %8 = tpu.matmul %5, %7, %cst_8 {dimension_numbers = #tpu.dot_dimension_numbers<[1], [0], [0], [1], [0, 0, 1, 1], [], []>} : vector<16x192xbf16>, vector<192x128xbf16>, vector<16x128xf32> -> vector<16x128xf32>
    %9 = arith.addf %3, %8 : vector<16x128xf32>
    %c0_9 = arith.constant 0 : index
    %c0_10 = arith.constant 0 : index
    %c4 = arith.constant 4 : index
    %c0_11 = arith.constant 0 : index
    %10 = vector.load %arg3[%c0_9, %c0_10, %c4, %c0_11] : memref<1x1x24x192xbf16, #tpu.memory_space<vmem>>, vector<1x1x16x192xbf16>
    %11 = vector.shape_cast %10 : vector<1x1x16x192xbf16> to vector<16x192xbf16>
    %c0_12 = arith.constant 0 : index
    %c1 = arith.constant 1 : index
    %c0_13 = arith.constant 0 : index
    %c0_14 = arith.constant 0 : index
    %12 = vector.load %arg4[%c0_12, %c1, %c0_13, %c0_14] : memref<1x3x192x128xbf16, #tpu.memory_space<vmem>>, vector<1x1x192x128xbf16>
    %13 = vector.shape_cast %12 : vector<1x1x192x128xbf16> to vector<192x128xbf16>
    %cst_15 = arith.constant dense<0.000000e+00> : vector<16x128xf32>
    %14 = tpu.matmul %11, %13, %cst_15 {dimension_numbers = #tpu.dot_dimension_numbers<[1], [0], [0], [1], [0, 0, 1, 1], [], []>} : vector<16x192xbf16>, vector<192x128xbf16>, vector<16x128xf32> -> vector<16x128xf32>
    %15 = arith.addf %9, %14 : vector<16x128xf32>
    %c0_16 = arith.constant 0 : index
    %c0_17 = arith.constant 0 : index
    %c8 = arith.constant 8 : index
    %c0_18 = arith.constant 0 : index
    %16 = vector.load %arg3[%c0_16, %c0_17, %c8, %c0_18] : memref<1x1x24x192xbf16, #tpu.memory_space<vmem>>, vector<1x1x16x192xbf16>
    %17 = vector.shape_cast %16 : vector<1x1x16x192xbf16> to vector<16x192xbf16>
    %c0_19 = arith.constant 0 : index
    %c2 = arith.constant 2 : index
    %c0_20 = arith.constant 0 : index
    %c0_21 = arith.constant 0 : index
    %18 = vector.load %arg4[%c0_19, %c2, %c0_20, %c0_21] : memref<1x3x192x128xbf16, #tpu.memory_space<vmem>>, vector<1x1x192x128xbf16>
    %19 = vector.shape_cast %18 : vector<1x1x192x128xbf16> to vector<192x128xbf16>
    %cst_22 = arith.constant dense<0.000000e+00> : vector<16x128xf32>
    %20 = tpu.matmul %17, %19, %cst_22 {dimension_numbers = #tpu.dot_dimension_numbers<[1], [0], [0], [1], [0, 0, 1, 1], [], []>} : vector<16x192xbf16>, vector<192x128xbf16>, vector<16x128xf32> -> vector<16x128xf32>
    %21 = arith.addf %15, %20 : vector<16x128xf32>
    %c0_23 = arith.constant 0 : index
    %c0_24 = arith.constant 0 : index
    %c0_25 = arith.constant 0 : index
    %c0_26 = arith.constant 0 : index
    %22 = vector.load %arg6[%c0_23, %c0_24, %c0_25, %c0_26] : memref<1x1x16x128xf32, #tpu.memory_space<vmem>>, vector<1x1x16x128xf32>
    %23 = vector.shape_cast %22 : vector<1x1x16x128xf32> to vector<16x128xf32>
    %24 = arith.addf %23, %21 : vector<16x128xf32>
    %c0_27 = arith.constant 0 : index
    %c0_28 = arith.constant 0 : index
    %c0_29 = arith.constant 0 : index
    %c0_30 = arith.constant 0 : index
    %25 = vector.load %arg6[%c0_27, %c0_28, %c0_29, %c0_30] : memref<1x1x16x128xf32, #tpu.memory_space<vmem>>, vector<1x1x16x128xf32>
    %26 = vector.shape_cast %25 : vector<1x1x16x128xf32> to vector<16x128xf32>
    %27 = vector.shape_cast %24 : vector<16x128xf32> to vector<1x1x16x128xf32>
    tpu.vector_store %arg6[%c0_27, %c0_28, %c0_29, %c0_30], %27 {strides = array<i32>} : memref<1x1x16x128xf32, #tpu.memory_space<vmem>>, vector<1x1x16x128xf32>,
    %c2_i32 = arith.constant 2 : i32
    %28 = arith.cmpi eq, %arg2, %c2_i32 : i32
    %29 = arith.extui %28 : i1 to i32
    %c0_i32_31 = arith.constant 0 : i32
    %30 = arith.cmpi ne, %29, %c0_i32_31 : i32
    scf.if %30 {
      %c0_32 = arith.constant 0 : index
      %c0_33 = arith.constant 0 : index
      %c0_34 = arith.constant 0 : index
      %c0_35 = arith.constant 0 : index
      %31 = vector.load %arg6[%c0_32, %c0_33, %c0_34, %c0_35] : memref<1x1x16x128xf32, #tpu.memory_space<vmem>>, vector<1x1x16x128xf32>
      %32 = vector.shape_cast %31 : vector<1x1x16x128xf32> to vector<16x128xf32>
      %cst_36 = arith.constant 0.000000e+00 : f32
      %33 = vector.broadcast %cst_36 : f32 to vector<16x128xf32>
      %34 = arith.maximumf %32, %33 : vector<16x128xf32>
      %c0_37 = arith.constant 0 : index
      %c0_38 = arith.constant 0 : index
      %c0_39 = arith.constant 0 : index
      %c0_40 = arith.constant 0 : index
      %35 = vector.load %arg6[%c0_37, %c0_38, %c0_39, %c0_40] : memref<1x1x16x128xf32, #tpu.memory_space<vmem>>, vector<1x1x16x128xf32>
      %36 = vector.shape_cast %35 : vector<1x1x16x128xf32> to vector<16x128xf32>
      %37 = vector.shape_cast %34 : vector<16x128xf32> to vector<1x1x16x128xf32>
      tpu.vector_store %arg6[%c0_37, %c0_38, %c0_39, %c0_40], %37 {strides = array<i32>} : memref<1x1x16x128xf32, #tpu.memory_space<vmem>>, vector<1x1x16x128xf32>,
    } else {
    }
    return
  }
  func.func @transform_0(%arg0: i32, %arg1: i32, %arg2: i32) -> (i32, i32, i32, i32) {
    %0 = arith.addi %arg1, %arg2 : i32
    %c0_i32 = arith.constant 0 : i32
    %c0_i32_0 = arith.constant 0 : i32
    %c0_i32_1 = arith.constant 0 : i32
    return %arg0, %0, %c0_i32, %c0_i32_0 : i32, i32, i32, i32
  }
  func.func @transform_1(%arg0: i32, %arg1: i32, %arg2: i32) -> (i32, i32, i32, i32) {
    %c0_i32 = arith.constant 0 : i32
    %c0_i32_0 = arith.constant 0 : i32
    %c0_i32_1 = arith.constant 0 : i32
    %c0_i32_2 = arith.constant 0 : i32
    return %arg2, %c0_i32, %c0_i32_0, %c0_i32_1 : i32, i32, i32, i32
  }
  func.func @transform_2(%arg0: i32, %arg1: i32, %arg2: i32) -> (i32, i32) {
    %c0_i32 = arith.constant 0 : i32
    %c0_i32_0 = arith.constant 0 : i32
    %c0_i32_1 = arith.constant 0 : i32
    return %c0_i32, %c0_i32_0 : i32, i32
  }
  func.func @transform_3(%arg0: i32, %arg1: i32, %arg2: i32) -> (i32, i32, i32, i32) {
    %c0_i32 = arith.constant 0 : i32
    %c0_i32_0 = arith.constant 0 : i32
    %c0_i32_1 = arith.constant 0 : i32
    return %arg0, %arg1, %c0_i32, %c0_i32_0 : i32, i32, i32, i32
  }
}

module attributes {stable_mosaic.version = 11 : i64} {
  func.func @_conv3x3_tap_kernel(%arg0: i32, %arg1: i32, %arg2: i32, %arg3: memref<1x1x8x384xbf16, #tpu.memory_space<vmem>>, %arg4: memref<1x3x384x256xbf16, #tpu.memory_space<vmem>>, %arg5: memref<1x256xf32, #tpu.memory_space<vmem>>, %arg6: memref<1x1x4x256xf32, #tpu.memory_space<vmem>>) attributes {dimension_semantics = [#tpu.dimension_semantics<parallel>, #tpu.dimension_semantics<parallel>, #tpu.dimension_semantics<arbitrary>], iteration_bounds = array<i64: 2, 2, 3>, scalar_prefetch = 0 : i64, scratch_operands = 0 : i64, tpu.core_type = #tpu.core_type<tc>, window_params = [{transform_indices = @transform_0, window_bounds = array<i64: 1, 1, 8, 384>}, {transform_indices = @transform_1, window_bounds = array<i64: 1, 3, 384, 256>}, {pipeline_mode = #tpu.pipeline_mode<synchronous>, transform_indices = @transform_2, window_bounds = array<i64: 1, 256>}, {transform_indices = @transform_3, window_bounds = array<i64: 1, 1, 4, 256>}]} {
    %c0_i32 = arith.constant 0 : i32
    %0 = arith.cmpi eq, %arg2, %c0_i32 : i32
    %1 = arith.extui %0 : i1 to i32
    %c0_i32_0 = arith.constant 0 : i32
    %2 = arith.cmpi ne, %1, %c0_i32_0 : i32
    scf.if %2 {
      %c0_33 = arith.constant 0 : index
      %c0_34 = arith.constant 0 : index
      %31 = vector.load %arg5[%c0_33, %c0_34] : memref<1x256xf32, #tpu.memory_space<vmem>>, vector<1x256xf32>
      %32 = vector.shape_cast %31 : vector<1x256xf32> to vector<1x256xf32>
      %33 = vector.broadcast %32 : vector<1x256xf32> to vector<4x256xf32>
      %c0_35 = arith.constant 0 : index
      %c0_36 = arith.constant 0 : index
      %c0_37 = arith.constant 0 : index
      %c0_38 = arith.constant 0 : index
      %34 = vector.load %arg6[%c0_35, %c0_36, %c0_37, %c0_38] : memref<1x1x4x256xf32, #tpu.memory_space<vmem>>, vector<1x1x4x256xf32>
      %35 = vector.shape_cast %34 : vector<1x1x4x256xf32> to vector<4x256xf32>
      %36 = vector.shape_cast %33 : vector<4x256xf32> to vector<1x1x4x256xf32>
      tpu.vector_store %arg6[%c0_35, %c0_36, %c0_37, %c0_38], %36 {strides = array<i32>} : memref<1x1x4x256xf32, #tpu.memory_space<vmem>>, vector<1x1x4x256xf32>,
    } else {
    }
    %cst = arith.constant 0.000000e+00 : f32
    %3 = vector.broadcast %cst : f32 to vector<4x256xf32>
    %c0 = arith.constant 0 : index
    %c0_1 = arith.constant 0 : index
    %c0_2 = arith.constant 0 : index
    %c0_3 = arith.constant 0 : index
    %4 = vector.load %arg3[%c0, %c0_1, %c0_2, %c0_3] : memref<1x1x8x384xbf16, #tpu.memory_space<vmem>>, vector<1x1x4x384xbf16>
    %5 = vector.shape_cast %4 : vector<1x1x4x384xbf16> to vector<4x384xbf16>
    %c0_4 = arith.constant 0 : index
    %c0_5 = arith.constant 0 : index
    %c0_6 = arith.constant 0 : index
    %c0_7 = arith.constant 0 : index
    %6 = vector.load %arg4[%c0_4, %c0_5, %c0_6, %c0_7] : memref<1x3x384x256xbf16, #tpu.memory_space<vmem>>, vector<1x1x384x256xbf16>
    %7 = vector.shape_cast %6 : vector<1x1x384x256xbf16> to vector<384x256xbf16>
    %cst_8 = arith.constant dense<0.000000e+00> : vector<4x256xf32>
    %8 = tpu.matmul %5, %7, %cst_8 {dimension_numbers = #tpu.dot_dimension_numbers<[1], [0], [0], [1], [0, 0, 1, 1], [], []>} : vector<4x384xbf16>, vector<384x256xbf16>, vector<4x256xf32> -> vector<4x256xf32>
    %9 = arith.addf %3, %8 : vector<4x256xf32>
    %c0_9 = arith.constant 0 : index
    %c0_10 = arith.constant 0 : index
    %c2 = arith.constant 2 : index
    %c0_11 = arith.constant 0 : index
    %10 = vector.load %arg3[%c0_9, %c0_10, %c2, %c0_11] : memref<1x1x8x384xbf16, #tpu.memory_space<vmem>>, vector<1x1x4x384xbf16>
    %11 = vector.shape_cast %10 : vector<1x1x4x384xbf16> to vector<4x384xbf16>
    %c0_12 = arith.constant 0 : index
    %c1 = arith.constant 1 : index
    %c0_13 = arith.constant 0 : index
    %c0_14 = arith.constant 0 : index
    %12 = vector.load %arg4[%c0_12, %c1, %c0_13, %c0_14] : memref<1x3x384x256xbf16, #tpu.memory_space<vmem>>, vector<1x1x384x256xbf16>
    %13 = vector.shape_cast %12 : vector<1x1x384x256xbf16> to vector<384x256xbf16>
    %cst_15 = arith.constant dense<0.000000e+00> : vector<4x256xf32>
    %14 = tpu.matmul %11, %13, %cst_15 {dimension_numbers = #tpu.dot_dimension_numbers<[1], [0], [0], [1], [0, 0, 1, 1], [], []>} : vector<4x384xbf16>, vector<384x256xbf16>, vector<4x256xf32> -> vector<4x256xf32>
    %15 = arith.addf %9, %14 : vector<4x256xf32>
    %c0_16 = arith.constant 0 : index
    %c0_17 = arith.constant 0 : index
    %c4 = arith.constant 4 : index
    %c0_18 = arith.constant 0 : index
    %16 = vector.load %arg3[%c0_16, %c0_17, %c4, %c0_18] : memref<1x1x8x384xbf16, #tpu.memory_space<vmem>>, vector<1x1x4x384xbf16>
    %17 = vector.shape_cast %16 : vector<1x1x4x384xbf16> to vector<4x384xbf16>
    %c0_19 = arith.constant 0 : index
    %c2_20 = arith.constant 2 : index
    %c0_21 = arith.constant 0 : index
    %c0_22 = arith.constant 0 : index
    %18 = vector.load %arg4[%c0_19, %c2_20, %c0_21, %c0_22] : memref<1x3x384x256xbf16, #tpu.memory_space<vmem>>, vector<1x1x384x256xbf16>
    %19 = vector.shape_cast %18 : vector<1x1x384x256xbf16> to vector<384x256xbf16>
    %cst_23 = arith.constant dense<0.000000e+00> : vector<4x256xf32>
    %20 = tpu.matmul %17, %19, %cst_23 {dimension_numbers = #tpu.dot_dimension_numbers<[1], [0], [0], [1], [0, 0, 1, 1], [], []>} : vector<4x384xbf16>, vector<384x256xbf16>, vector<4x256xf32> -> vector<4x256xf32>
    %21 = arith.addf %15, %20 : vector<4x256xf32>
    %c0_24 = arith.constant 0 : index
    %c0_25 = arith.constant 0 : index
    %c0_26 = arith.constant 0 : index
    %c0_27 = arith.constant 0 : index
    %22 = vector.load %arg6[%c0_24, %c0_25, %c0_26, %c0_27] : memref<1x1x4x256xf32, #tpu.memory_space<vmem>>, vector<1x1x4x256xf32>
    %23 = vector.shape_cast %22 : vector<1x1x4x256xf32> to vector<4x256xf32>
    %24 = arith.addf %23, %21 : vector<4x256xf32>
    %c0_28 = arith.constant 0 : index
    %c0_29 = arith.constant 0 : index
    %c0_30 = arith.constant 0 : index
    %c0_31 = arith.constant 0 : index
    %25 = vector.load %arg6[%c0_28, %c0_29, %c0_30, %c0_31] : memref<1x1x4x256xf32, #tpu.memory_space<vmem>>, vector<1x1x4x256xf32>
    %26 = vector.shape_cast %25 : vector<1x1x4x256xf32> to vector<4x256xf32>
    %27 = vector.shape_cast %24 : vector<4x256xf32> to vector<1x1x4x256xf32>
    tpu.vector_store %arg6[%c0_28, %c0_29, %c0_30, %c0_31], %27 {strides = array<i32>} : memref<1x1x4x256xf32, #tpu.memory_space<vmem>>, vector<1x1x4x256xf32>,
    %c2_i32 = arith.constant 2 : i32
    %28 = arith.cmpi eq, %arg2, %c2_i32 : i32
    %29 = arith.extui %28 : i1 to i32
    %c0_i32_32 = arith.constant 0 : i32
    %30 = arith.cmpi ne, %29, %c0_i32_32 : i32
    scf.if %30 {
      %c0_33 = arith.constant 0 : index
      %c0_34 = arith.constant 0 : index
      %c0_35 = arith.constant 0 : index
      %c0_36 = arith.constant 0 : index
      %31 = vector.load %arg6[%c0_33, %c0_34, %c0_35, %c0_36] : memref<1x1x4x256xf32, #tpu.memory_space<vmem>>, vector<1x1x4x256xf32>
      %32 = vector.shape_cast %31 : vector<1x1x4x256xf32> to vector<4x256xf32>
      %cst_37 = arith.constant 0.000000e+00 : f32
      %33 = vector.broadcast %cst_37 : f32 to vector<4x256xf32>
      %34 = arith.maximumf %32, %33 : vector<4x256xf32>
      %c0_38 = arith.constant 0 : index
      %c0_39 = arith.constant 0 : index
      %c0_40 = arith.constant 0 : index
      %c0_41 = arith.constant 0 : index
      %35 = vector.load %arg6[%c0_38, %c0_39, %c0_40, %c0_41] : memref<1x1x4x256xf32, #tpu.memory_space<vmem>>, vector<1x1x4x256xf32>
      %36 = vector.shape_cast %35 : vector<1x1x4x256xf32> to vector<4x256xf32>
      %37 = vector.shape_cast %34 : vector<4x256xf32> to vector<1x1x4x256xf32>
      tpu.vector_store %arg6[%c0_38, %c0_39, %c0_40, %c0_41], %37 {strides = array<i32>} : memref<1x1x4x256xf32, #tpu.memory_space<vmem>>, vector<1x1x4x256xf32>,
    } else {
    }
    return
  }
  func.func @transform_0(%arg0: i32, %arg1: i32, %arg2: i32) -> (i32, i32, i32, i32) {
    %0 = arith.addi %arg1, %arg2 : i32
    %c0_i32 = arith.constant 0 : i32
    %c0_i32_0 = arith.constant 0 : i32
    %c0_i32_1 = arith.constant 0 : i32
    return %arg0, %0, %c0_i32, %c0_i32_0 : i32, i32, i32, i32
  }
  func.func @transform_1(%arg0: i32, %arg1: i32, %arg2: i32) -> (i32, i32, i32, i32) {
    %c0_i32 = arith.constant 0 : i32
    %c0_i32_0 = arith.constant 0 : i32
    %c0_i32_1 = arith.constant 0 : i32
    %c0_i32_2 = arith.constant 0 : i32
    return %arg2, %c0_i32, %c0_i32_0, %c0_i32_1 : i32, i32, i32, i32
  }
  func.func @transform_2(%arg0: i32, %arg1: i32, %arg2: i32) -> (i32, i32) {
    %c0_i32 = arith.constant 0 : i32
    %c0_i32_0 = arith.constant 0 : i32
    %c0_i32_1 = arith.constant 0 : i32
    return %c0_i32, %c0_i32_0 : i32, i32
  }
  func.func @transform_3(%arg0: i32, %arg1: i32, %arg2: i32) -> (i32, i32, i32, i32) {
    %c0_i32 = arith.constant 0 : i32
    %c0_i32_0 = arith.constant 0 : i32
    %c0_i32_1 = arith.constant 0 : i32
    return %arg0, %arg1, %c0_i32, %c0_i32_0 : i32, i32, i32, i32
  }
}

module attributes {stable_mosaic.version = 11 : i64} {
  func.func @_conv3x3_tap_kernel(%arg0: i32, %arg1: i32, %arg2: i32, %arg3: memref<1x1x3x768xbf16, #tpu.memory_space<vmem>>, %arg4: memref<1x3x768x128xbf16, #tpu.memory_space<vmem>>, %arg5: memref<1x128xf32, #tpu.memory_space<vmem>>, %arg6: memref<1x1x1x128xf32, #tpu.memory_space<vmem>>) attributes {dimension_semantics = [#tpu.dimension_semantics<parallel>, #tpu.dimension_semantics<parallel>, #tpu.dimension_semantics<arbitrary>], iteration_bounds = array<i64: 2, 1, 3>, scalar_prefetch = 0 : i64, scratch_operands = 0 : i64, tpu.core_type = #tpu.core_type<tc>, window_params = [{transform_indices = @transform_0, window_bounds = array<i64: 1, 1, 3, 768>}, {transform_indices = @transform_1, window_bounds = array<i64: 1, 3, 768, 128>}, {pipeline_mode = #tpu.pipeline_mode<synchronous>, transform_indices = @transform_2, window_bounds = array<i64: 1, 128>}, {transform_indices = @transform_3, window_bounds = array<i64: 1, 1, 1, 128>}]} {
    %c0_i32 = arith.constant 0 : i32
    %0 = arith.cmpi eq, %arg2, %c0_i32 : i32
    %1 = arith.extui %0 : i1 to i32
    %c0_i32_0 = arith.constant 0 : i32
    %2 = arith.cmpi ne, %1, %c0_i32_0 : i32
    scf.if %2 {
      %c0_33 = arith.constant 0 : index
      %c0_34 = arith.constant 0 : index
      %28 = vector.load %arg5[%c0_33, %c0_34] : memref<1x128xf32, #tpu.memory_space<vmem>>, vector<1x128xf32>
      %c0_35 = arith.constant 0 : index
      %c0_36 = arith.constant 0 : index
      %c0_37 = arith.constant 0 : index
      %c0_38 = arith.constant 0 : index
      %29 = vector.load %arg6[%c0_35, %c0_36, %c0_37, %c0_38] : memref<1x1x1x128xf32, #tpu.memory_space<vmem>>, vector<1x1x1x128xf32>
      %30 = vector.shape_cast %29 : vector<1x1x1x128xf32> to vector<1x128xf32>
      %31 = vector.shape_cast %28 : vector<1x128xf32> to vector<1x1x1x128xf32>
      tpu.vector_store %arg6[%c0_35, %c0_36, %c0_37, %c0_38], %31 {strides = array<i32>} : memref<1x1x1x128xf32, #tpu.memory_space<vmem>>, vector<1x1x1x128xf32>,
    } else {
    }
    %cst = arith.constant 0.000000e+00 : f32
    %3 = vector.broadcast %cst : f32 to vector<1x128xf32>
    %c0 = arith.constant 0 : index
    %c0_1 = arith.constant 0 : index
    %c0_2 = arith.constant 0 : index
    %c0_3 = arith.constant 0 : index
    %4 = vector.load %arg3[%c0, %c0_1, %c0_2, %c0_3] : memref<1x1x3x768xbf16, #tpu.memory_space<vmem>>, vector<1x1x1x768xbf16>
    %5 = vector.shape_cast %4 : vector<1x1x1x768xbf16> to vector<1x768xbf16>
    %c0_4 = arith.constant 0 : index
    %c0_5 = arith.constant 0 : index
    %c0_6 = arith.constant 0 : index
    %c0_7 = arith.constant 0 : index
    %6 = vector.load %arg4[%c0_4, %c0_5, %c0_6, %c0_7] : memref<1x3x768x128xbf16, #tpu.memory_space<vmem>>, vector<1x1x768x128xbf16>
    %7 = vector.shape_cast %6 : vector<1x1x768x128xbf16> to vector<768x128xbf16>
    %cst_8 = arith.constant dense<0.000000e+00> : vector<1x128xf32>
    %8 = tpu.matmul %5, %7, %cst_8 {dimension_numbers = #tpu.dot_dimension_numbers<[1], [0], [0], [1], [0, 0, 1, 1], [], []>} : vector<1x768xbf16>, vector<768x128xbf16>, vector<1x128xf32> -> vector<1x128xf32>
    %9 = arith.addf %3, %8 : vector<1x128xf32>
    %c0_9 = arith.constant 0 : index
    %c0_10 = arith.constant 0 : index
    %c1 = arith.constant 1 : index
    %c0_11 = arith.constant 0 : index
    %10 = vector.load %arg3[%c0_9, %c0_10, %c1, %c0_11] : memref<1x1x3x768xbf16, #tpu.memory_space<vmem>>, vector<1x1x1x768xbf16>
    %11 = vector.shape_cast %10 : vector<1x1x1x768xbf16> to vector<1x768xbf16>
    %c0_12 = arith.constant 0 : index
    %c1_13 = arith.constant 1 : index
    %c0_14 = arith.constant 0 : index
    %c0_15 = arith.constant 0 : index
    %12 = vector.load %arg4[%c0_12, %c1_13, %c0_14, %c0_15] : memref<1x3x768x128xbf16, #tpu.memory_space<vmem>>, vector<1x1x768x128xbf16>
    %13 = vector.shape_cast %12 : vector<1x1x768x128xbf16> to vector<768x128xbf16>
    %cst_16 = arith.constant dense<0.000000e+00> : vector<1x128xf32>
    %14 = tpu.matmul %11, %13, %cst_16 {dimension_numbers = #tpu.dot_dimension_numbers<[1], [0], [0], [1], [0, 0, 1, 1], [], []>} : vector<1x768xbf16>, vector<768x128xbf16>, vector<1x128xf32> -> vector<1x128xf32>
    %15 = arith.addf %9, %14 : vector<1x128xf32>
    %c0_17 = arith.constant 0 : index
    %c0_18 = arith.constant 0 : index
    %c2 = arith.constant 2 : index
    %c0_19 = arith.constant 0 : index
    %16 = vector.load %arg3[%c0_17, %c0_18, %c2, %c0_19] : memref<1x1x3x768xbf16, #tpu.memory_space<vmem>>, vector<1x1x1x768xbf16>
    %17 = vector.shape_cast %16 : vector<1x1x1x768xbf16> to vector<1x768xbf16>
    %c0_20 = arith.constant 0 : index
    %c2_21 = arith.constant 2 : index
    %c0_22 = arith.constant 0 : index
    %c0_23 = arith.constant 0 : index
    %18 = vector.load %arg4[%c0_20, %c2_21, %c0_22, %c0_23] : memref<1x3x768x128xbf16, #tpu.memory_space<vmem>>, vector<1x1x768x128xbf16>
    %19 = vector.shape_cast %18 : vector<1x1x768x128xbf16> to vector<768x128xbf16>
    %cst_24 = arith.constant dense<0.000000e+00> : vector<1x128xf32>
    %20 = tpu.matmul %17, %19, %cst_24 {dimension_numbers = #tpu.dot_dimension_numbers<[1], [0], [0], [1], [0, 0, 1, 1], [], []>} : vector<1x768xbf16>, vector<768x128xbf16>, vector<1x128xf32> -> vector<1x128xf32>
    %21 = arith.addf %15, %20 : vector<1x128xf32>
    %c0_25 = arith.constant 0 : index
    %c0_26 = arith.constant 0 : index
    %c0_27 = arith.constant 0 : index
    %c0_28 = arith.constant 0 : index
    %22 = vector.load %arg6[%c0_25, %c0_26, %c0_27, %c0_28] : memref<1x1x1x128xf32, #tpu.memory_space<vmem>>, vector<1x1x1x128xf32>
    %23 = vector.shape_cast %22 : vector<1x1x1x128xf32> to vector<1x128xf32>
    %24 = arith.addf %23, %21 : vector<1x128xf32>
    %c0_29 = arith.constant 0 : index
    %c0_30 = arith.constant 0 : index
    %c0_31 = arith.constant 0 : index
    %c0_32 = arith.constant 0 : index
    %25 = vector.load %arg6[%c0_29, %c0_30, %c0_31, %c0_32] : memref<1x1x1x128xf32, #tpu.memory_space<vmem>>, vector<1x1x1x128xf32>
    %26 = vector.shape_cast %25 : vector<1x1x1x128xf32> to vector<1x128xf32>
    %27 = vector.shape_cast %24 : vector<1x128xf32> to vector<1x1x1x128xf32>
    tpu.vector_store %arg6[%c0_29, %c0_30, %c0_31, %c0_32], %27 {strides = array<i32>} : memref<1x1x1x128xf32, #tpu.memory_space<vmem>>, vector<1x1x1x128xf32>,
    return
  }
  func.func @transform_0(%arg0: i32, %arg1: i32, %arg2: i32) -> (i32, i32, i32, i32) {
    %0 = arith.addi %arg1, %arg2 : i32
    %c0_i32 = arith.constant 0 : i32
    %c0_i32_0 = arith.constant 0 : i32
    %c0_i32_1 = arith.constant 0 : i32
    return %arg0, %0, %c0_i32, %c0_i32_0 : i32, i32, i32, i32
  }
  func.func @transform_1(%arg0: i32, %arg1: i32, %arg2: i32) -> (i32, i32, i32, i32) {
    %c0_i32 = arith.constant 0 : i32
    %c0_i32_0 = arith.constant 0 : i32
    %c0_i32_1 = arith.constant 0 : i32
    %c0_i32_2 = arith.constant 0 : i32
    return %arg2, %c0_i32, %c0_i32_0, %c0_i32_1 : i32, i32, i32, i32
  }
  func.func @transform_2(%arg0: i32, %arg1: i32, %arg2: i32) -> (i32, i32) {
    %c0_i32 = arith.constant 0 : i32
    %c0_i32_0 = arith.constant 0 : i32
    %c0_i32_1 = arith.constant 0 : i32
    return %c0_i32, %c0_i32_0 : i32, i32
  }
  func.func @transform_3(%arg0: i32, %arg1: i32, %arg2: i32) -> (i32, i32, i32, i32) {
    %c0_i32 = arith.constant 0 : i32
    %c0_i32_0 = arith.constant 0 : i32
    %c0_i32_1 = arith.constant 0 : i32
    return %arg0, %arg1, %c0_i32, %c0_i32_0 : i32, i32, i32, i32
  }
}

module attributes {stable_mosaic.version = 11 : i64} {
  func.func @_conv3x3_tap_kernel(%arg0: i32, %arg1: i32, %arg2: i32, %arg3: memref<1x1x8x384xbf16, #tpu.memory_space<vmem>>, %arg4: memref<1x3x384x64xbf16, #tpu.memory_space<vmem>>, %arg5: memref<1x64xf32, #tpu.memory_space<vmem>>, %arg6: memref<1x1x4x64xf32, #tpu.memory_space<vmem>>) attributes {dimension_semantics = [#tpu.dimension_semantics<parallel>, #tpu.dimension_semantics<parallel>, #tpu.dimension_semantics<arbitrary>], iteration_bounds = array<i64: 2, 2, 3>, scalar_prefetch = 0 : i64, scratch_operands = 0 : i64, tpu.core_type = #tpu.core_type<tc>, window_params = [{transform_indices = @transform_0, window_bounds = array<i64: 1, 1, 8, 384>}, {transform_indices = @transform_1, window_bounds = array<i64: 1, 3, 384, 64>}, {pipeline_mode = #tpu.pipeline_mode<synchronous>, transform_indices = @transform_2, window_bounds = array<i64: 1, 64>}, {transform_indices = @transform_3, window_bounds = array<i64: 1, 1, 4, 64>}]} {
    %c0_i32 = arith.constant 0 : i32
    %0 = arith.cmpi eq, %arg2, %c0_i32 : i32
    %1 = arith.extui %0 : i1 to i32
    %c0_i32_0 = arith.constant 0 : i32
    %2 = arith.cmpi ne, %1, %c0_i32_0 : i32
    scf.if %2 {
      %c0_32 = arith.constant 0 : index
      %c0_33 = arith.constant 0 : index
      %28 = vector.load %arg5[%c0_32, %c0_33] : memref<1x64xf32, #tpu.memory_space<vmem>>, vector<1x64xf32>
      %29 = vector.shape_cast %28 : vector<1x64xf32> to vector<1x64xf32>
      %30 = vector.broadcast %29 : vector<1x64xf32> to vector<4x64xf32>
      %c0_34 = arith.constant 0 : index
      %c0_35 = arith.constant 0 : index
      %c0_36 = arith.constant 0 : index
      %c0_37 = arith.constant 0 : index
      %31 = vector.load %arg6[%c0_34, %c0_35, %c0_36, %c0_37] : memref<1x1x4x64xf32, #tpu.memory_space<vmem>>, vector<1x1x4x64xf32>
      %32 = vector.shape_cast %31 : vector<1x1x4x64xf32> to vector<4x64xf32>
      %33 = vector.shape_cast %30 : vector<4x64xf32> to vector<1x1x4x64xf32>
      tpu.vector_store %arg6[%c0_34, %c0_35, %c0_36, %c0_37], %33 {strides = array<i32>} : memref<1x1x4x64xf32, #tpu.memory_space<vmem>>, vector<1x1x4x64xf32>,
    } else {
    }
    %cst = arith.constant 0.000000e+00 : f32
    %3 = vector.broadcast %cst : f32 to vector<4x64xf32>
    %c0 = arith.constant 0 : index
    %c0_1 = arith.constant 0 : index
    %c0_2 = arith.constant 0 : index
    %c0_3 = arith.constant 0 : index
    %4 = vector.load %arg3[%c0, %c0_1, %c0_2, %c0_3] : memref<1x1x8x384xbf16, #tpu.memory_space<vmem>>, vector<1x1x4x384xbf16>
    %5 = vector.shape_cast %4 : vector<1x1x4x384xbf16> to vector<4x384xbf16>
    %c0_4 = arith.constant 0 : index
    %c0_5 = arith.constant 0 : index
    %c0_6 = arith.constant 0 : index
    %c0_7 = arith.constant 0 : index
    %6 = vector.load %arg4[%c0_4, %c0_5, %c0_6, %c0_7] : memref<1x3x384x64xbf16, #tpu.memory_space<vmem>>, vector<1x1x384x64xbf16>
    %7 = vector.shape_cast %6 : vector<1x1x384x64xbf16> to vector<384x64xbf16>
    %cst_8 = arith.constant dense<0.000000e+00> : vector<4x64xf32>
    %8 = tpu.matmul %5, %7, %cst_8 {dimension_numbers = #tpu.dot_dimension_numbers<[1], [0], [0], [1], [0, 0, 1, 1], [], []>} : vector<4x384xbf16>, vector<384x64xbf16>, vector<4x64xf32> -> vector<4x64xf32>
    %9 = arith.addf %3, %8 : vector<4x64xf32>
    %c0_9 = arith.constant 0 : index
    %c0_10 = arith.constant 0 : index
    %c2 = arith.constant 2 : index
    %c0_11 = arith.constant 0 : index
    %10 = vector.load %arg3[%c0_9, %c0_10, %c2, %c0_11] : memref<1x1x8x384xbf16, #tpu.memory_space<vmem>>, vector<1x1x4x384xbf16>
    %11 = vector.shape_cast %10 : vector<1x1x4x384xbf16> to vector<4x384xbf16>
    %c0_12 = arith.constant 0 : index
    %c1 = arith.constant 1 : index
    %c0_13 = arith.constant 0 : index
    %c0_14 = arith.constant 0 : index
    %12 = vector.load %arg4[%c0_12, %c1, %c0_13, %c0_14] : memref<1x3x384x64xbf16, #tpu.memory_space<vmem>>, vector<1x1x384x64xbf16>
    %13 = vector.shape_cast %12 : vector<1x1x384x64xbf16> to vector<384x64xbf16>
    %cst_15 = arith.constant dense<0.000000e+00> : vector<4x64xf32>
    %14 = tpu.matmul %11, %13, %cst_15 {dimension_numbers = #tpu.dot_dimension_numbers<[1], [0], [0], [1], [0, 0, 1, 1], [], []>} : vector<4x384xbf16>, vector<384x64xbf16>, vector<4x64xf32> -> vector<4x64xf32>
    %15 = arith.addf %9, %14 : vector<4x64xf32>
    %c0_16 = arith.constant 0 : index
    %c0_17 = arith.constant 0 : index
    %c4 = arith.constant 4 : index
    %c0_18 = arith.constant 0 : index
    %16 = vector.load %arg3[%c0_16, %c0_17, %c4, %c0_18] : memref<1x1x8x384xbf16, #tpu.memory_space<vmem>>, vector<1x1x4x384xbf16>
    %17 = vector.shape_cast %16 : vector<1x1x4x384xbf16> to vector<4x384xbf16>
    %c0_19 = arith.constant 0 : index
    %c2_20 = arith.constant 2 : index
    %c0_21 = arith.constant 0 : index
    %c0_22 = arith.constant 0 : index
    %18 = vector.load %arg4[%c0_19, %c2_20, %c0_21, %c0_22] : memref<1x3x384x64xbf16, #tpu.memory_space<vmem>>, vector<1x1x384x64xbf16>
    %19 = vector.shape_cast %18 : vector<1x1x384x64xbf16> to vector<384x64xbf16>
    %cst_23 = arith.constant dense<0.000000e+00> : vector<4x64xf32>
    %20 = tpu.matmul %17, %19, %cst_23 {dimension_numbers = #tpu.dot_dimension_numbers<[1], [0], [0], [1], [0, 0, 1, 1], [], []>} : vector<4x384xbf16>, vector<384x64xbf16>, vector<4x64xf32> -> vector<4x64xf32>
    %21 = arith.addf %15, %20 : vector<4x64xf32>
    %c0_24 = arith.constant 0 : index
    %c0_25 = arith.constant 0 : index
    %c0_26 = arith.constant 0 : index
    %c0_27 = arith.constant 0 : index
    %22 = vector.load %arg6[%c0_24, %c0_25, %c0_26, %c0_27] : memref<1x1x4x64xf32, #tpu.memory_space<vmem>>, vector<1x1x4x64xf32>
    %23 = vector.shape_cast %22 : vector<1x1x4x64xf32> to vector<4x64xf32>
    %24 = arith.addf %23, %21 : vector<4x64xf32>
    %c0_28 = arith.constant 0 : index
    %c0_29 = arith.constant 0 : index
    %c0_30 = arith.constant 0 : index
    %c0_31 = arith.constant 0 : index
    %25 = vector.load %arg6[%c0_28, %c0_29, %c0_30, %c0_31] : memref<1x1x4x64xf32, #tpu.memory_space<vmem>>, vector<1x1x4x64xf32>
    %26 = vector.shape_cast %25 : vector<1x1x4x64xf32> to vector<4x64xf32>
    %27 = vector.shape_cast %24 : vector<4x64xf32> to vector<1x1x4x64xf32>
    tpu.vector_store %arg6[%c0_28, %c0_29, %c0_30, %c0_31], %27 {strides = array<i32>} : memref<1x1x4x64xf32, #tpu.memory_space<vmem>>, vector<1x1x4x64xf32>,
    return
  }
  func.func @transform_0(%arg0: i32, %arg1: i32, %arg2: i32) -> (i32, i32, i32, i32) {
    %0 = arith.addi %arg1, %arg2 : i32
    %c0_i32 = arith.constant 0 : i32
    %c0_i32_0 = arith.constant 0 : i32
    %c0_i32_1 = arith.constant 0 : i32
    return %arg0, %0, %c0_i32, %c0_i32_0 : i32, i32, i32, i32
  }
  func.func @transform_1(%arg0: i32, %arg1: i32, %arg2: i32) -> (i32, i32, i32, i32) {
    %c0_i32 = arith.constant 0 : i32
    %c0_i32_0 = arith.constant 0 : i32
    %c0_i32_1 = arith.constant 0 : i32
    %c0_i32_2 = arith.constant 0 : i32
    return %arg2, %c0_i32, %c0_i32_0, %c0_i32_1 : i32, i32, i32, i32
  }
  func.func @transform_2(%arg0: i32, %arg1: i32, %arg2: i32) -> (i32, i32) {
    %c0_i32 = arith.constant 0 : i32
    %c0_i32_0 = arith.constant 0 : i32
    %c0_i32_1 = arith.constant 0 : i32
    return %c0_i32, %c0_i32_0 : i32, i32
  }
  func.func @transform_3(%arg0: i32, %arg1: i32, %arg2: i32) -> (i32, i32, i32, i32) {
    %c0_i32 = arith.constant 0 : i32
    %c0_i32_0 = arith.constant 0 : i32
    %c0_i32_1 = arith.constant 0 : i32
    return %arg0, %arg1, %c0_i32, %c0_i32_0 : i32, i32, i32, i32
  }
}

module attributes {stable_mosaic.version = 11 : i64} {
  func.func @_conv3x3_tap_kernel(%arg0: i32, %arg1: i32, %arg2: i32, %arg3: memref<1x1x24x192xbf16, #tpu.memory_space<vmem>>, %arg4: memref<1x3x192x32xbf16, #tpu.memory_space<vmem>>, %arg5: memref<1x32xf32, #tpu.memory_space<vmem>>, %arg6: memref<1x1x16x32xf32, #tpu.memory_space<vmem>>) attributes {dimension_semantics = [#tpu.dimension_semantics<parallel>, #tpu.dimension_semantics<parallel>, #tpu.dimension_semantics<arbitrary>], iteration_bounds = array<i64: 2, 4, 3>, scalar_prefetch = 0 : i64, scratch_operands = 0 : i64, tpu.core_type = #tpu.core_type<tc>, window_params = [{transform_indices = @transform_0, window_bounds = array<i64: 1, 1, 24, 192>}, {transform_indices = @transform_1, window_bounds = array<i64: 1, 3, 192, 32>}, {pipeline_mode = #tpu.pipeline_mode<synchronous>, transform_indices = @transform_2, window_bounds = array<i64: 1, 32>}, {transform_indices = @transform_3, window_bounds = array<i64: 1, 1, 16, 32>}]} {
    %c0_i32 = arith.constant 0 : i32
    %0 = arith.cmpi eq, %arg2, %c0_i32 : i32
    %1 = arith.extui %0 : i1 to i32
    %c0_i32_0 = arith.constant 0 : i32
    %2 = arith.cmpi ne, %1, %c0_i32_0 : i32
    scf.if %2 {
      %c0_31 = arith.constant 0 : index
      %c0_32 = arith.constant 0 : index
      %28 = vector.load %arg5[%c0_31, %c0_32] : memref<1x32xf32, #tpu.memory_space<vmem>>, vector<1x32xf32>
      %29 = vector.shape_cast %28 : vector<1x32xf32> to vector<1x32xf32>
      %30 = vector.broadcast %29 : vector<1x32xf32> to vector<16x32xf32>
      %c0_33 = arith.constant 0 : index
      %c0_34 = arith.constant 0 : index
      %c0_35 = arith.constant 0 : index
      %c0_36 = arith.constant 0 : index
      %31 = vector.load %arg6[%c0_33, %c0_34, %c0_35, %c0_36] : memref<1x1x16x32xf32, #tpu.memory_space<vmem>>, vector<1x1x16x32xf32>
      %32 = vector.shape_cast %31 : vector<1x1x16x32xf32> to vector<16x32xf32>
      %33 = vector.shape_cast %30 : vector<16x32xf32> to vector<1x1x16x32xf32>
      tpu.vector_store %arg6[%c0_33, %c0_34, %c0_35, %c0_36], %33 {strides = array<i32>} : memref<1x1x16x32xf32, #tpu.memory_space<vmem>>, vector<1x1x16x32xf32>,
    } else {
    }
    %cst = arith.constant 0.000000e+00 : f32
    %3 = vector.broadcast %cst : f32 to vector<16x32xf32>
    %c0 = arith.constant 0 : index
    %c0_1 = arith.constant 0 : index
    %c0_2 = arith.constant 0 : index
    %c0_3 = arith.constant 0 : index
    %4 = vector.load %arg3[%c0, %c0_1, %c0_2, %c0_3] : memref<1x1x24x192xbf16, #tpu.memory_space<vmem>>, vector<1x1x16x192xbf16>
    %5 = vector.shape_cast %4 : vector<1x1x16x192xbf16> to vector<16x192xbf16>
    %c0_4 = arith.constant 0 : index
    %c0_5 = arith.constant 0 : index
    %c0_6 = arith.constant 0 : index
    %c0_7 = arith.constant 0 : index
    %6 = vector.load %arg4[%c0_4, %c0_5, %c0_6, %c0_7] : memref<1x3x192x32xbf16, #tpu.memory_space<vmem>>, vector<1x1x192x32xbf16>
    %7 = vector.shape_cast %6 : vector<1x1x192x32xbf16> to vector<192x32xbf16>
    %cst_8 = arith.constant dense<0.000000e+00> : vector<16x32xf32>
    %8 = tpu.matmul %5, %7, %cst_8 {dimension_numbers = #tpu.dot_dimension_numbers<[1], [0], [0], [1], [0, 0, 1, 1], [], []>} : vector<16x192xbf16>, vector<192x32xbf16>, vector<16x32xf32> -> vector<16x32xf32>
    %9 = arith.addf %3, %8 : vector<16x32xf32>
    %c0_9 = arith.constant 0 : index
    %c0_10 = arith.constant 0 : index
    %c4 = arith.constant 4 : index
    %c0_11 = arith.constant 0 : index
    %10 = vector.load %arg3[%c0_9, %c0_10, %c4, %c0_11] : memref<1x1x24x192xbf16, #tpu.memory_space<vmem>>, vector<1x1x16x192xbf16>
    %11 = vector.shape_cast %10 : vector<1x1x16x192xbf16> to vector<16x192xbf16>
    %c0_12 = arith.constant 0 : index
    %c1 = arith.constant 1 : index
    %c0_13 = arith.constant 0 : index
    %c0_14 = arith.constant 0 : index
    %12 = vector.load %arg4[%c0_12, %c1, %c0_13, %c0_14] : memref<1x3x192x32xbf16, #tpu.memory_space<vmem>>, vector<1x1x192x32xbf16>
    %13 = vector.shape_cast %12 : vector<1x1x192x32xbf16> to vector<192x32xbf16>
    %cst_15 = arith.constant dense<0.000000e+00> : vector<16x32xf32>
    %14 = tpu.matmul %11, %13, %cst_15 {dimension_numbers = #tpu.dot_dimension_numbers<[1], [0], [0], [1], [0, 0, 1, 1], [], []>} : vector<16x192xbf16>, vector<192x32xbf16>, vector<16x32xf32> -> vector<16x32xf32>
    %15 = arith.addf %9, %14 : vector<16x32xf32>
    %c0_16 = arith.constant 0 : index
    %c0_17 = arith.constant 0 : index
    %c8 = arith.constant 8 : index
    %c0_18 = arith.constant 0 : index
    %16 = vector.load %arg3[%c0_16, %c0_17, %c8, %c0_18] : memref<1x1x24x192xbf16, #tpu.memory_space<vmem>>, vector<1x1x16x192xbf16>
    %17 = vector.shape_cast %16 : vector<1x1x16x192xbf16> to vector<16x192xbf16>
    %c0_19 = arith.constant 0 : index
    %c2 = arith.constant 2 : index
    %c0_20 = arith.constant 0 : index
    %c0_21 = arith.constant 0 : index
    %18 = vector.load %arg4[%c0_19, %c2, %c0_20, %c0_21] : memref<1x3x192x32xbf16, #tpu.memory_space<vmem>>, vector<1x1x192x32xbf16>
    %19 = vector.shape_cast %18 : vector<1x1x192x32xbf16> to vector<192x32xbf16>
    %cst_22 = arith.constant dense<0.000000e+00> : vector<16x32xf32>
    %20 = tpu.matmul %17, %19, %cst_22 {dimension_numbers = #tpu.dot_dimension_numbers<[1], [0], [0], [1], [0, 0, 1, 1], [], []>} : vector<16x192xbf16>, vector<192x32xbf16>, vector<16x32xf32> -> vector<16x32xf32>
    %21 = arith.addf %15, %20 : vector<16x32xf32>
    %c0_23 = arith.constant 0 : index
    %c0_24 = arith.constant 0 : index
    %c0_25 = arith.constant 0 : index
    %c0_26 = arith.constant 0 : index
    %22 = vector.load %arg6[%c0_23, %c0_24, %c0_25, %c0_26] : memref<1x1x16x32xf32, #tpu.memory_space<vmem>>, vector<1x1x16x32xf32>
    %23 = vector.shape_cast %22 : vector<1x1x16x32xf32> to vector<16x32xf32>
    %24 = arith.addf %23, %21 : vector<16x32xf32>
    %c0_27 = arith.constant 0 : index
    %c0_28 = arith.constant 0 : index
    %c0_29 = arith.constant 0 : index
    %c0_30 = arith.constant 0 : index
    %25 = vector.load %arg6[%c0_27, %c0_28, %c0_29, %c0_30] : memref<1x1x16x32xf32, #tpu.memory_space<vmem>>, vector<1x1x16x32xf32>
    %26 = vector.shape_cast %25 : vector<1x1x16x32xf32> to vector<16x32xf32>
    %27 = vector.shape_cast %24 : vector<16x32xf32> to vector<1x1x16x32xf32>
    tpu.vector_store %arg6[%c0_27, %c0_28, %c0_29, %c0_30], %27 {strides = array<i32>} : memref<1x1x16x32xf32, #tpu.memory_space<vmem>>, vector<1x1x16x32xf32>,
    return
  }
  func.func @transform_0(%arg0: i32, %arg1: i32, %arg2: i32) -> (i32, i32, i32, i32) {
    %0 = arith.addi %arg1, %arg2 : i32
    %c0_i32 = arith.constant 0 : i32
    %c0_i32_0 = arith.constant 0 : i32
    %c0_i32_1 = arith.constant 0 : i32
    return %arg0, %0, %c0_i32, %c0_i32_0 : i32, i32, i32, i32
  }
  func.func @transform_1(%arg0: i32, %arg1: i32, %arg2: i32) -> (i32, i32, i32, i32) {
    %c0_i32 = arith.constant 0 : i32
    %c0_i32_0 = arith.constant 0 : i32
    %c0_i32_1 = arith.constant 0 : i32
    %c0_i32_2 = arith.constant 0 : i32
    return %arg2, %c0_i32, %c0_i32_0, %c0_i32_1 : i32, i32, i32, i32
  }
  func.func @transform_2(%arg0: i32, %arg1: i32, %arg2: i32) -> (i32, i32) {
    %c0_i32 = arith.constant 0 : i32
    %c0_i32_0 = arith.constant 0 : i32
    %c0_i32_1 = arith.constant 0 : i32
    return %c0_i32, %c0_i32_0 : i32, i32
  }
  func.func @transform_3(%arg0: i32, %arg1: i32, %arg2: i32) -> (i32, i32, i32, i32) {
    %c0_i32 = arith.constant 0 : i32
    %c0_i32_0 = arith.constant 0 : i32
    %c0_i32_1 = arith.constant 0 : i32
    return %arg0, %arg1, %c0_i32, %c0_i32_0 : i32, i32, i32, i32
  }
}

</mosaic_0001>

<bundles_post_ra>
// kernel: simple_unet_forward.7
= control target key start
LH: loop header
LB: loop body
LE: loop exit
PB: predicated region body
PF: predicated region fallthrough
CT: control target
= control target key end

     0   :  { %s1947_s12 = smov 0   ;;  %s1949_s13 = smov 0   ;;  %s2392_s0 = inlined_call_operand.vmem [shape: bf16[2,18,288,3], index: 0, kind: input, shape index: {}]   ;;  %s2393_s1 = inlined_call_operand.vmem [shape: bf16[3,3,3,32], index: 1, kind: input, shape index: {}]   ;;  %s2394_s2 = inlined_call_operand.vmem [shape: f32[1,32], index: 2, kind: input, shape index: {}]   ;;  %s2395_s3 = inlined_call_operand.vmem [shape: f32[2,16,256,32], index: 3, kind: output, shape index: {}]  }
   0x1   :  { %s1951_s14 = smov 0   ;;  %s1953_s15 = smov 0  }
   0x2   :  { %s1955_s16 = smov 0   ;;  %s1957_s17 = smov 0  }
   0x3   :  { %s1959_s18 = smov 0  }
   0x4 LB: > { %s25_s19 = sadd.s32 1, %s1912_s15  ;;  %s28_s20 = sadd.s32 1, %s1916_s16  ;;  %s1924_s18 = sphi %s1959_s18, %s13_s18   ;;  %s1920_s17 = sphi %s1957_s17, %s2401_s17   ;;  %s1916_s16 = sphi %s1955_s16, %s2400_s16   ;;  %s1912_s15 = sphi %s1953_s15, %s2399_s15   ;;  %s1908_s14 = sphi %s1951_s14, %s2398_s14   ;;  %s1904_s13 = sphi %s1949_s13, %s2397_s13   ;;  %s1900_s12 = sphi %s1947_s12, %s2396_s12  }
   0x5   : > { %p26_p0 = scmp.ge.s32.totalorder %s25_s19, 3  ;;  %p1464_p1 = scmp.ge.s32.totalorder %s1924_s18, 1 }
   0x6   : > { %p178_p2 = scmp.lt.s32.totalorder %s1924_s18, 97  ;;  %s32_s21 = sadd.s32 1, %s1920_s17 }
   0x7   : > { %s2403_s19 = smov (%p26_p0, %s25_s19), 0  ;;  %s2405_s20 = smov (!%p26_p0, %s28_s20), %s1916_s16 }
   0x8   : > { %p179_p3 = pnand %p1464_p1, %p178_p2  ;;  %p30_p4 = scmp.ge.s32.totalorder %s2405_s20, 16 }
   0x9   : > { %s216_s22 = sadd.s32 (!%p179_p3), %s1900_s12, %s1904_s13  ;;  %p217_p6 = scmp.lt.s32.totalorder (!%p179_p3), %s1908_s14, 1 }
   0xa   : > { %s2407_s20 = smov (%p30_p4, %s2405_s20), 0  ;;  %s2409_s21 = smov (!%p30_p4, %s32_s21), %s1920_s17 }
   0xb   : > { %p34_p5 = scmp.ge.s32.totalorder %s2409_s21, 2  ;;  %182 = sbr.rel (%p179_p3) target bundleno = 371 (0x173), region = 32 }
   0xc   : > { %p219_p7 = scmp.lt.s32.totalorder (!%p179_p3), %s216_s22, 17  ;;  %p227_p8 = scmp.lt.s32.totalorder (!%p179_p3), %s1900_s12, 2 }
   0xd   : > { %s2411_s21 = smov (%p34_p5, %s2409_s21), 0  ;;  %p234_p9 = scmp.lt.s32.totalorder (!%p179_p3), %s1904_s13, 15 }
   0xe   : > { %p1470_p10 = scmp.ne.s32.totalorder (!%p179_p3), %s1900_s12, 0 }
  0x12   : > { %s2413_s14 = smov (!%p217_p6, %s1908_s14), 1  ;;  %s2415_s22 = smov (!%p219_p7, %s216_s22), 17 }
  0x13   : > { %s1778_s23 = smul.u32 648, %s2413_s14  ;;  %s1468_s8 = sshll.u32 %s2413_s14, 9  ;;  %v1471_v0 = vld [vmem:[%s2394_s2] ss:$0 sm:$0xff] (!%p1470_p10)  ;;  %vm253_vm0 = vcmask (!%p1470_p10), 261120  }
  0x14   : > { %s1777_s24 = smul.u32 36, %s2415_s22  ;;  %s2417_s13 = smov (!%p234_p9, %s1904_s13), 15 }
  0x15   : > { %s228_s25 = scalar_select %p227_p8, %s1900_s12, 2 }
  0x16   : > { %s223_s26 = sadd.s32 %s1778_s23, %s1777_s24  ;;  %s1467_s9 = sshll.u32 %s2417_s13, 5 }
  0x17   : > { %s1465_s27 = sshll.u32 %s223_s26, 2  ;;  %s1779_s28 = smul.u32 6, %s228_s25 }
  0x18   : > { %s2001_s4 = scalar_lea.vmem %s2392_s0, %s1465_s27  ;;  %s238_s10 = sadd.s32 %s1468_s8, %s1467_s9 }
  0x19   : > { %s2006_s7 = scalar_lea.vmem %s2393_s1, %s1779_s28  ;;  %s1469_s11 = sshll.u32 %s238_s10, 3 }
  0x1a   : > { %s2012_s24 = scalar_lea.vmem %s2395_s3, %s1469_s11  ;;  %245 = sbr.rel (%p1470_p10) target bundleno = 43 (0x2b), region = 36 }
  0x1b   : > { %254 = vst.msk [vmem:[%s2012_s24] sm:$0xff] (!%p1470_p10), %vm253_vm0, %v1471_v0  ;;  %255 = vst.msk [vmem:[%s2012_s24 + $0x8] sm:$0xff] (!%p1470_p10), %vm253_vm0, %v1471_v0 }
  0x1c   : > { %256 = vst.msk [vmem:[%s2012_s24 + $0x10] sm:$0xff] (!%p1470_p10), %vm253_vm0, %v1471_v0  ;;  %257 = vst.msk [vmem:[%s2012_s24 + $0x18] sm:$0xff] (!%p1470_p10), %vm253_vm0, %v1471_v0 }
  0x1d   : > { %258 = vst.msk [vmem:[%s2012_s24 + $0x20] sm:$0xff] (!%p1470_p10), %vm253_vm0, %v1471_v0  ;;  %259 = vst.msk [vmem:[%s2012_s24 + $0x28] sm:$0xff] (!%p1470_p10), %vm253_vm0, %v1471_v0 }
  0x1e   : > { %260 = vst.msk [vmem:[%s2012_s24 + $0x30] sm:$0xff] (!%p1470_p10), %vm253_vm0, %v1471_v0  ;;  %261 = vst.msk [vmem:[%s2012_s24 + $0x38] sm:$0xff] (!%p1470_p10), %vm253_vm0, %v1471_v0 }
  0x1f   : > { %262 = vst.msk [vmem:[%s2012_s24 + $0x40] sm:$0xff] (!%p1470_p10), %vm253_vm0, %v1471_v0  ;;  %263 = vst.msk [vmem:[%s2012_s24 + $0x48] sm:$0xff] (!%p1470_p10), %vm253_vm0, %v1471_v0 }
  0x20   : > { %264 = vst.msk [vmem:[%s2012_s24 + $0x50] sm:$0xff] (!%p1470_p10), %vm253_vm0, %v1471_v0  ;;  %265 = vst.msk [vmem:[%s2012_s24 + $0x58] sm:$0xff] (!%p1470_p10), %vm253_vm0, %v1471_v0 }
  0x21   : > { %266 = vst.msk [vmem:[%s2012_s24 + $0x60] sm:$0xff] %vm253_vm0, %v1471_v0  ;;  %267 = vst.msk [vmem:[%s2012_s24 + $0x68] sm:$0xff] %vm253_vm0, %v1471_v0 }
  0x22   : > { %268 = vst.msk [vmem:[%s2012_s24 + $0x70] sm:$0xff] %vm253_vm0, %v1471_v0  ;;  %269 = vst.msk [vmem:[%s2012_s24 + $0x78] sm:$0xff] %vm253_vm0, %v1471_v0 }
  0x23   : > { %270 = vst.msk [vmem:[%s2012_s24 + $0x80] sm:$0xff] %vm253_vm0, %v1471_v0  ;;  %271 = vst.msk [vmem:[%s2012_s24 + $0x88] sm:$0xff] %vm253_vm0, %v1471_v0 }
  0x24   : > { %272 = vst.msk [vmem:[%s2012_s24 + $0x90] sm:$0xff] %vm253_vm0, %v1471_v0  ;;  %273 = vst.msk [vmem:[%s2012_s24 + $0x98] sm:$0xff] %vm253_vm0, %v1471_v0 }
  0x25   : > { %274 = vst.msk [vmem:[%s2012_s24 + $0xa0] sm:$0xff] %vm253_vm0, %v1471_v0  ;;  %275 = vst.msk [vmem:[%s2012_s24 + $0xa8] sm:$0xff] %vm253_vm0, %v1471_v0 }
  0x26   : > { %276 = vst.msk [vmem:[%s2012_s24 + $0xb0] sm:$0xff] %vm253_vm0, %v1471_v0  ;;  %277 = vst.msk [vmem:[%s2012_s24 + $0xb8] sm:$0xff] %vm253_vm0, %v1471_v0 }
  0x27   : > { %278 = vst.msk [vmem:[%s2012_s24 + $0xc0] sm:$0xff] %vm253_vm0, %v1471_v0  ;;  %279 = vst.msk [vmem:[%s2012_s24 + $0xc8] sm:$0xff] %vm253_vm0, %v1471_v0 }
  0x28   : > { %280 = vst.msk [vmem:[%s2012_s24 + $0xd0] sm:$0xff] %vm253_vm0, %v1471_v0  ;;  %281 = vst.msk [vmem:[%s2012_s24 + $0xd8] sm:$0xff] %vm253_vm0, %v1471_v0 }
  0x29   : > { %282 = vst.msk [vmem:[%s2012_s24 + $0xe0] sm:$0xff] %vm253_vm0, %v1471_v0  ;;  %283 = vst.msk [vmem:[%s2012_s24 + $0xe8] sm:$0xff] %vm253_vm0, %v1471_v0 }
  0x2a   : > { %284 = vst.msk [vmem:[%s2012_s24 + $0xf0] sm:$0xff] %vm253_vm0, %v1471_v0  ;;  %285 = vst.msk [vmem:[%s2012_s24 + $0xf8] sm:$0xff] %vm253_vm0, %v1471_v0 }
  0x2b PF: > { %v318_v1 = vld [vmem:[%s2006_s7] sm:$0x3]  ;;  %v1472_v2 = vld [vmem:[%s2006_s7 + $0x2] sm:$0x3]  ;;  %vm452_vm1 = vcmask 1040384   ;;  %vm453_vm2 = vcmask 1041408  }
  0x2c   : > { %v1837_v3 = vld [vmem:[%s2001_s4 + $0x8] sm:$0xff]   ;;  %v1926_v4 = vmov 65535   ;;  %vm403_vm3 = vcmask 23552   ;;  %v1838_v7 = vld [vmem:[%s2001_s4] sm:$0xff]   ;;  %v1839_v12 = vld [vmem:[%s2001_s4 + $0x10] sm:$0xff]   ;;  %vm1214_vm4 = vcmask 261120  }
  0x2d   : > { %v454_v5 = vsel %vm452_vm1, 4294967295, %v1926_v4  ;;  %1611 = vmatprep.mubr.msk.bf16.mxu1 %vm403_vm3, %v1837_v3  ;;  %v1522_v10 = vld [vmem:[%s2006_s7 + $0x4] sm:$0x3]  ;;  %1645 = vmatprep.mubr.msk.bf16.mxu0 %vm403_vm3, %v1838_v7  ;;  %v1840_v13 = vld [vmem:[%s2001_s4 + $0x18] sm:$0xff]   ;;  %v1842_v15 = vld [vmem:[%s2001_s4 + $0x28] sm:$0xff]   ;;  %p1555_p11 = scmp.ne.s32.totalorder %s1900_s12, 2 }
  0x2e   : > { %v455_v6 = vsel %vm453_vm2, %v454_v5, 0  ;;  %v1841_v14 = vld [vmem:[%s2001_s4 + $0x20] sm:$0xff]   ;;  %v1843_v16 = vld [vmem:[%s2001_s4 + $0x30] sm:$0xff]   ;;  %v1844_v17 = vld [vmem:[%s2001_s4 + $0x38] sm:$0xff]  }
  0x2f   : > { %v457_v8 = vand.u32 %v1472_v2, %v455_v6  ;;  %v629_v9 = vand.u32 %v455_v6, %v318_v1  ;;  %v955_v11 = vand.u32 %v1522_v10, %v455_v6  ;;  %v1845_v18 = vld [vmem:[%s2001_s4 + $0x40] sm:$0xff]   ;;  %v1846_v19 = vld [vmem:[%s2001_s4 + $0x48] sm:$0xff]   ;;  %v1847_v20 = vld [vmem:[%s2001_s4 + $0x10] sm:$0xff]  }
  0x30   : > { %v1848_v21 = vld [vmem:[%s2001_s4 + $0x50] sm:$0xff]   ;;  %v1849_v22 = vld [vmem:[%s2001_s4 + $0x18] sm:$0xff]   ;;  %v1851_v24 = vld [vmem:[%s2001_s4 + $0x20] sm:$0xff]  }
  0x31   : > { %1609 = vmatprep.subr.bf16.mxu1 %v457_v8  ;;  %1643 = vmatprep.subr.bf16.mxu0 %v629_v9  ;;  %v1850_v23 = vld [vmem:[%s2001_s4 + $0x58] sm:$0xff]   ;;  %v1852_v25 = vld [vmem:[%s2001_s4 + $0x60] sm:$0xff]   ;;  %v1853_v26 = vld [vmem:[%s2001_s4 + $0x28] sm:$0xff]  }
  0x32   : > { %1610 = vmatpush3.bf16.msra.mxu1 %v457_v8  ;;  %1644 = vmatpush3.bf16.msra.mxu0 %v629_v9  ;;  %v1854_v27 = vld [vmem:[%s2001_s4 + $0x68] sm:$0xff]   ;;  %v1855_v28 = vld [vmem:[%s2001_s4 + $0x30] sm:$0xff]   ;;  %v1857_v30 = vld [vmem:[%s2001_s4 + $0x38] sm:$0xff]  }
  0x33   : > { %1711 = vmatprep.subr.bf16.mxu1 %v629_v9  ;;  %1677 = vmatprep.subr.bf16.mxu0 %v955_v11  ;;  %v1856_v29 = vld [vmem:[%s2001_s4 + $0x70] sm:$0xff]   ;;  %v1858_v31 = vld [vmem:[%s2001_s4 + $0x78] sm:$0xff]   ;;  %v1859_v32 = vld [vmem:[%s2001_s4 + $0x40] sm:$0xff]  }
  0x34   : > { %v1860_v33 = vld [vmem:[%s2001_s4 + $0x80] sm:$0xff]   ;;  %v1861_v34 = vld [vmem:[%s2001_s4 + $0x48] sm:$0xff]   ;;  %v1862_v35 = vld [vmem:[%s2001_s4 + $0x50] sm:$0xff]  }
  0x35   : > { %1612 = vmatmul.mubr.msk.bf16.vlgmr.msra.gmra.mrb[0].mxu1 %vm403_vm3, %v1839_v12  ;;  %1646 = vmatmul.mubr.msk.bf16.vlgmr.msra.gmra.mrb[0].mxu0 %vm403_vm3, %v1837_v3  ;;  %v1863_v36 = vld [vmem:[%s2001_s4 + $0x58] sm:$0xff]   ;;  %v1864_v37 = vld [vmem:[%s2001_s4 + $0x60] sm:$0xff]   ;;  %v1865_v38 = vld [vmem:[%s2001_s4 + $0x68] sm:$0xff]  }
  0x36   : > { %1712 = vmatpush3.bf16.msra.mxu1 %v629_v9  ;;  %1678 = vmatpush3.bf16.msra.mxu0 %v955_v11  ;;  %v1866_v39 = vld [vmem:[%s2001_s4 + $0x70] sm:$0xff]   ;;  %v1867_v40 = vld [vmem:[%s2001_s4 + $0x78] sm:$0xff]   ;;  %v1868_v41 = vld [vmem:[%s2001_s4 + $0x80] sm:$0xff]  }
  0x37   : > { %1615 = vmatprep.mubr.msk.bf16.mxu1 %vm403_vm3, %v1840_v13  ;;  %1649 = vmatprep.mubr.msk.bf16.mxu0 %vm403_vm3, %v1839_v12  ;;  %v1869_v42 = vld [vmem:[%s2001_s4 + $0x88] sm:$0xff]   ;;  %v1152_v60 = vld [vmem:[%s2012_s24 + $0x10] sm:$0xff]  ;;  %v1150_v63 = vld [vmem:[%s2012_s24] sm:$0xff] }
  0x38   : > { %v1153_v2 = vld [vmem:[%s2012_s24 + $0x18] sm:$0xff]  ;;  %v1151_v6 = vld [vmem:[%s2012_s24 + $0x8] sm:$0xff]  ;;  %v1156_v12 = vld [vmem:[%s2012_s24 + $0x30] sm:$0xff] }
  0x3d   : > { %1616 = vmatmul.mubr.msk.bf16.gmra.mrb[4].mxu1 %vm403_vm3, %v1841_v14  ;;  %1650 = vmatmul.mubr.msk.bf16.gmra.mrb[4].mxu0 %vm403_vm3, %v1840_v13 }
  0x3e   : > { %1619 = vmatprep.mubr.msk.bf16.mxu1 %vm403_vm3, %v1842_v15  ;;  %1653 = vmatprep.mubr.msk.bf16.mxu0 %vm403_vm3, %v1841_v14 }
  0x45   : > { %1620 = vmatmul.mubr.msk.bf16.gmra.mrb[8].mxu1 %vm403_vm3, %v1843_v16  ;;  %1654 = vmatmul.mubr.msk.bf16.gmra.mrb[8].mxu0 %vm403_vm3, %v1842_v15  ;;  %v1154_v15 = vld [vmem:[%s2012_s24 + $0x20] sm:$0xff] }
  0x46   : > { %1623 = vmatprep.mubr.msk.bf16.mxu1 %vm403_vm3, %v1844_v17  ;;  %1657 = vmatprep.mubr.msk.bf16.mxu0 %vm403_vm3, %v1843_v16 }
  0x4d   : > { %1624 = vmatmul.mubr.msk.bf16.gmra.mrb[12].mxu1 %vm403_vm3, %v1845_v18  ;;  %1658 = vmatmul.mubr.msk.bf16.gmra.mrb[12].mxu0 %vm403_vm3, %v1844_v17 }
  0x4e   : > { %1627 = vmatprep.mubr.msk.bf16.mxu1 %vm403_vm3, %v1846_v19  ;;  %1679 = vmatprep.mubr.msk.bf16.mxu0 %vm403_vm3, %v1847_v20 }
  0x55   : > { %1628 = vmatmul.mubr.msk.bf16.gmra.mrb[16].mxu1 %vm403_vm3, %v1848_v21  ;;  %1680 = vmatmul.mubr.msk.bf16.vlgmr.msra.gmra.mrb[0].mxu0 %vm403_vm3, %v1849_v22  ;;  %v1155_v22 = vld [vmem:[%s2012_s24 + $0x28] sm:$0xff] }
  0x56   : > { %1631 = vmatprep.mubr.msk.bf16.mxu1 %vm403_vm3, %v1850_v23  ;;  %1683 = vmatprep.mubr.msk.bf16.mxu0 %vm403_vm3, %v1851_v24 }
  0x5d   : > { %1632 = vmatmul.mubr.msk.bf16.gmra.mrb[20].mxu1 %vm403_vm3, %v1852_v25  ;;  %1684 = vmatmul.mubr.msk.bf16.gmra.mrb[4].mxu0 %vm403_vm3, %v1853_v26 }
  0x5e   : > { %1635 = vmatprep.mubr.msk.bf16.mxu1 %vm403_vm3, %v1854_v27  ;;  %1687 = vmatprep.mubr.msk.bf16.mxu0 %vm403_vm3, %v1855_v28  ;;  %v1160_v28 = vld [vmem:[%s2012_s24 + $0x50] sm:$0xff] }
  0x65   : > { %1636 = vmatmul.mubr.msk.bf16.gmra.mrb[24].mxu1 %vm403_vm3, %v1856_v29  ;;  %1688 = vmatmul.mubr.msk.bf16.gmra.mrb[8].mxu0 %vm403_vm3, %v1857_v30 }
  0x66   : > { %1639 = vmatprep.mubr.msk.bf16.mxu1 %vm403_vm3, %v1858_v31  ;;  %1691 = vmatprep.mubr.msk.bf16.mxu0 %vm403_vm3, %v1859_v32 }
  0x6d   : > { %1640 = vmatmul.mubr.msk.bf16.gmra.mrb[28].mxu1 %vm403_vm3, %v1860_v33  ;;  %1692 = vmatmul.mubr.msk.bf16.gmra.mrb[12].mxu0 %vm403_vm3, %v1861_v34  ;;  %v1161_v34 = vld [vmem:[%s2012_s24 + $0x58] sm:$0xff] }
  0x6e   : > { %1661 = vmatprep.mubr.msk.bf16.mxu1 %vm403_vm3, %v1845_v18  ;;  %1695 = vmatprep.mubr.msk.bf16.mxu0 %vm403_vm3, %v1862_v35  ;;  %v1157_v18 = vld [vmem:[%s2012_s24 + $0x38] sm:$0xff] }
  0x75   : > { %1662 = vmatmul.mubr.msk.bf16.vlgmr.msra.gmra.mrb[16].mxu1 %vm403_vm3, %v1846_v19  ;;  %1696 = vmatmul.mubr.msk.bf16.gmra.mrb[16].mxu0 %vm403_vm3, %v1863_v36 }
  0x76   : > { %1665 = vmatprep.mubr.msk.bf16.mxu1 %vm403_vm3, %v1848_v21  ;;  %1699 = vmatprep.mubr.msk.bf16.mxu0 %vm403_vm3, %v1864_v37 }
  0x7d   : > { %1666 = vmatmul.mubr.msk.bf16.gmra.mrb[20].mxu1 %vm403_vm3, %v1850_v23  ;;  %1700 = vmatmul.mubr.msk.bf16.gmra.mrb[20].mxu0 %vm403_vm3, %v1865_v38  ;;  %v1159_v38 = vld [vmem:[%s2012_s24 + $0x48] sm:$0xff] }
  0x7e   : > { %1669 = vmatprep.mubr.msk.bf16.mxu1 %vm403_vm3, %v1852_v25  ;;  %1703 = vmatprep.mubr.msk.bf16.mxu0 %vm403_vm3, %v1866_v39 }
  0x85   : > { %1670 = vmatmul.mubr.msk.bf16.gmra.mrb[24].mxu1 %vm403_vm3, %v1854_v27  ;;  %1704 = vmatmul.mubr.msk.bf16.gmra.mrb[24].mxu0 %vm403_vm3, %v1867_v40 }
  0x86   : > { %1673 = vmatprep.mubr.msk.bf16.mxu1 %vm403_vm3, %v1856_v29  ;;  %1707 = vmatprep.mubr.msk.bf16.mxu0 %vm403_vm3, %v1868_v41 }
  0x8d   : > { %1674 = vmatmul.mubr.msk.bf16.gmra.mrb[28].mxu1 %vm403_vm3, %v1858_v31  ;;  %1708 = vmatmul.mubr.msk.bf16.gmra.mrb[28].mxu0 %vm403_vm3, %v1869_v42  ;;  %v1158_v31 = vld [vmem:[%s2012_s24 + $0x40] sm:$0xff] }
 0x108   : > { %v1613_v43 = vpop.f32.mrb[0].mxu1 }
 0x109   : > { %v493_v44 = vpop.f32.mrb[1].mxu1 }
 0x10a   : > { %v1614_v45 = vpop.f32.mrb[2].mxu1 }
 0x10b   : > { %v496_v46 = vpop.f32.mrb[3].mxu1 }
 0x110   : > { %v1617_v47 = vpop.f32.mrb[4].mxu1 }
 0x111   : > { %v509_v48 = vpop.f32.mrb[5].mxu1 }
 0x112   : > { %v1618_v49 = vpop.f32.mrb[6].mxu1 }
 0x113   : > { %v512_v50 = vpop.f32.mrb[7].mxu1 }
 0x118   : > { %v1621_v51 = vpop.f32.mrb[8].mxu1 }
 0x119   : > { %v525_v52 = vpop.f32.mrb[9].mxu1 }
 0x11a   : > { %v1622_v53 = vpop.f32.mrb[10].mxu1 }
 0x11b   : > { %v528_v54 = vpop.f32.mrb[11].mxu1 }
 0x120   : > { %v2166_v55 = vpop.f32.mrb[12].mxu1 }
 0x121   : > { %v2168_v56 = vpop.f32.mrb[13].mxu1 }
 0x122   : > { %v2170_v57 = vpop.f32.mrb[14].mxu1 }
 0x123   : > { %v2172_v58 = vpop.f32.mrb[15].mxu1 }
 0x128   : > { %v1681_v59 = vpop.f32.mrb[0].mxu0 }
 0x129   : > { %v1713_v61 = vadd.f32 %v1681_v59, %v1613_v43  ;;  %v991_v62 = vpop.f32.mrb[1].mxu0 }
 0x12a   : > { %v1714_v0 = vadd.f32 %v991_v62, %v493_v44  ;;  %v1682_v1 = vpop.f32.mrb[2].mxu0  ;;  %v1164_v44 = vld [vmem:[%s2012_s24 + $0x70] sm:$0xff] }
 0x12b   : > { %v1184_v3 = vadd.f32 %v1713_v61, %v1152_v60  ;;  %v1715_v4 = vadd.f32 %v1682_v1, %v1614_v45  ;;  %v994_v5 = vpop.f32.mrb[3].mxu0  ;;  %v1168_v62 = vld [vmem:[%s2012_s24 + $0x90] sm:$0xff]  ;;  %v1166_v1 = vld [vmem:[%s2012_s24 + $0x80] sm:$0xff] }
 0x12c   : > { %v1182_v7 = vadd.f32 %v1714_v0, %v1150_v63  ;;  %v1716_v8 = vadd.f32 %v994_v5, %v496_v46  ;;  %v1169_v5 = vld [vmem:[%s2012_s24 + $0x98] sm:$0xff] }
 0x12d   : > { %1217 = vst.msk [vmem:[%s2012_s24 + $0x10] sm:$0xff] %vm1214_vm4, %v1184_v3  ;;  %v1185_v9 = vadd.f32 %v1715_v4, %v1153_v2 }
 0x12e   : > { %1215 = vst.msk [vmem:[%s2012_s24] sm:$0xff] %vm1214_vm4, %v1182_v7  ;;  %v1183_v10 = vadd.f32 %v1716_v8, %v1151_v6 }
 0x12f   : > { %1218 = vst.msk [vmem:[%s2012_s24 + $0x18] sm:$0xff] %vm1214_vm4, %v1185_v9 }
 0x130   : > { %1216 = vst.msk [vmem:[%s2012_s24 + $0x8] sm:$0xff] %vm1214_vm4, %v1183_v10  ;;  %v1685_v11 = vpop.f32.mrb[4].mxu0  ;;  %v1167_v10 = vld [vmem:[%s2012_s24 + $0x88] sm:$0xff] }
 0x131   : > { %v1717_v13 = vadd.f32 %v1685_v11, %v1617_v47  ;;  %v1007_v14 = vpop.f32.mrb[5].mxu0  ;;  %v1162_v47 = vld [vmem:[%s2012_s24 + $0x60] sm:$0xff] }
 0x132   : > { %v1718_v16 = vadd.f32 %v1007_v14, %v509_v48  ;;  %v1686_v17 = vpop.f32.mrb[6].mxu0 }
 0x133   : > { %v1188_v19 = vadd.f32 %v1717_v13, %v1156_v12  ;;  %v1719_v20 = vadd.f32 %v1686_v17, %v1618_v49  ;;  %v1010_v21 = vpop.f32.mrb[7].mxu0  ;;  %v1172_v17 = vld [vmem:[%s2012_s24 + $0xb0] sm:$0xff] }
 0x134   : > { %v1186_v23 = vadd.f32 %v1718_v16, %v1154_v15  ;;  %v1720_v24 = vadd.f32 %v1010_v21, %v512_v50  ;;  %v1165_v50 = vld [vmem:[%s2012_s24 + $0x78] sm:$0xff]  ;;  %v1170_v21 = vld [vmem:[%s2012_s24 + $0xa0] sm:$0xff] }
 0x135   : > { %1221 = vst.msk [vmem:[%s2012_s24 + $0x30] sm:$0xff] %vm1214_vm4, %v1188_v19  ;;  %v1189_v25 = vadd.f32 %v1719_v20, %v1157_v18 }
 0x136   : > { %1219 = vst.msk [vmem:[%s2012_s24 + $0x20] sm:$0xff] %vm1214_vm4, %v1186_v23  ;;  %v1187_v26 = vadd.f32 %v1720_v24, %v1155_v22 }
 0x137   : > { %1222 = vst.msk [vmem:[%s2012_s24 + $0x38] sm:$0xff] %vm1214_vm4, %v1189_v25  ;;  %v1173_v25 = vld [vmem:[%s2012_s24 + $0xb8] sm:$0xff] }
 0x138   : > { %1220 = vst.msk [vmem:[%s2012_s24 + $0x28] sm:$0xff] %vm1214_vm4, %v1187_v26  ;;  %v1689_v27 = vpop.f32.mrb[8].mxu0 }
 0x139   : > { %v1721_v29 = vadd.f32 %v1689_v27, %v1621_v51  ;;  %v1023_v30 = vpop.f32.mrb[9].mxu0 }
 0x13a   : > { %v1722_v32 = vadd.f32 %v1023_v30, %v525_v52  ;;  %v1690_v33 = vpop.f32.mrb[10].mxu0  ;;  %v1171_v30 = vld [vmem:[%s2012_s24 + $0xa8] sm:$0xff] }
 0x13b   : > { %v1192_v35 = vadd.f32 %v1721_v29, %v1160_v28  ;;  %v1723_v36 = vadd.f32 %v1690_v33, %v1622_v53  ;;  %v1026_v37 = vpop.f32.mrb[11].mxu0 }
 0x13c   : > { %v1190_v39 = vadd.f32 %v1722_v32, %v1158_v31  ;;  %v1724_v40 = vadd.f32 %v1026_v37, %v528_v54  ;;  %v1163_v54 = vld [vmem:[%s2012_s24 + $0x68] sm:$0xff]  ;;  %v1176_v37 = vld [vmem:[%s2012_s24 + $0xd0] sm:$0xff] }
 0x13d   : > { %1225 = vst.msk [vmem:[%s2012_s24 + $0x50] sm:$0xff] %vm1214_vm4, %v1192_v35  ;;  %v1193_v41 = vadd.f32 %v1723_v36, %v1161_v34 }
 0x13e   : > { %1223 = vst.msk [vmem:[%s2012_s24 + $0x40] sm:$0xff] %vm1214_vm4, %v1190_v39  ;;  %v1191_v42 = vadd.f32 %v1724_v40, %v1159_v38 }
 0x13f   : > { %1226 = vst.msk [vmem:[%s2012_s24 + $0x58] sm:$0xff] %vm1214_vm4, %v1193_v41  ;;  %v1174_v41 = vld [vmem:[%s2012_s24 + $0xc0] sm:$0xff] }
 0x140   : > { %1224 = vst.msk [vmem:[%s2012_s24 + $0x48] sm:$0xff] %vm1214_vm4, %v1191_v42  ;;  %v1693_v43 = vpop.f32.mrb[12].mxu0 }
 0x141   : > { %v1725_v45 = vadd.f32 %v1693_v43, %v2166_v55  ;;  %v1039_v46 = vpop.f32.mrb[13].mxu0 }
 0x142   : > { %v1726_v48 = vadd.f32 %v1039_v46, %v2168_v56  ;;  %v1694_v49 = vpop.f32.mrb[14].mxu0 }
 0x143   : > { %v1196_v51 = vadd.f32 %v1725_v45, %v1164_v44  ;;  %v1727_v52 = vadd.f32 %v1694_v49, %v2170_v57  ;;  %v1042_v53 = vpop.f32.mrb[15].mxu0  ;;  %v1177_v45 = vld [vmem:[%s2012_s24 + $0xd8] sm:$0xff] }
 0x144   : > { %v1194_v59 = vadd.f32 %v1726_v48, %v1162_v47  ;;  %v1728_v60 = vadd.f32 %v1042_v53, %v2172_v58 }
 0x145   : > { %1229 = vst.msk [vmem:[%s2012_s24 + $0x70] sm:$0xff] %vm1214_vm4, %v1196_v51  ;;  %v1197_v55 = vadd.f32 %v1727_v52, %v1165_v50  ;;  %v1175_v50 = vld [vmem:[%s2012_s24 + $0xc8] sm:$0xff] }
 0x146   : > { %1227 = vst.msk [vmem:[%s2012_s24 + $0x60] sm:$0xff] %vm1214_vm4, %v1194_v59  ;;  %v1195_v61 = vadd.f32 %v1728_v60, %v1163_v54 }
 0x147   : > { %1230 = vst.msk [vmem:[%s2012_s24 + $0x78] sm:$0xff] %vm1214_vm4, %v1197_v55  ;;  %v1180_v55 = vld [vmem:[%s2012_s24 + $0xf0] sm:$0xff] }
 0x148   : > { %1228 = vst.msk [vmem:[%s2012_s24 + $0x68] sm:$0xff] %vm1214_vm4, %v1195_v61  ;;  %v1663_v56 = vpop.f32.mrb[16].mxu1  ;;  %v1697_v57 = vpop.f32.mrb[16].mxu0 }
 0x149   : > { %v1729_v63 = vadd.f32 %v1697_v57, %v1663_v56  ;;  %v729_v0 = vpop.f32.mrb[17].mxu1  ;;  %v1055_v58 = vpop.f32.mrb[17].mxu0 }
 0x14a   : > { %v1730_v2 = vadd.f32 %v1055_v58, %v729_v0  ;;  %v1664_v3 = vpop.f32.mrb[18].mxu1  ;;  %v1698_v4 = vpop.f32.mrb[18].mxu0 }
 0x14b   : > { %v1200_v6 = vadd.f32 %v1729_v63, %v1168_v62  ;;  %v1731_v7 = vadd.f32 %v1698_v4, %v1664_v3  ;;  %v732_v8 = vpop.f32.mrb[19].mxu1  ;;  %v1058_v9 = vpop.f32.mrb[19].mxu0  ;;  %v1178_v62 = vld [vmem:[%s2012_s24 + $0xe0] sm:$0xff] }
 0x14c   : > { %v1198_v11 = vadd.f32 %v1730_v2, %v1166_v1  ;;  %v1732_v12 = vadd.f32 %v1058_v9, %v732_v8  ;;  %v1181_v1 = vld [vmem:[%s2012_s24 + $0xf8] sm:$0xff] }
 0x14d   : > { %1233 = vst.msk [vmem:[%s2012_s24 + $0x90] sm:$0xff] %vm1214_vm4, %v1200_v6  ;;  %v1201_v13 = vadd.f32 %v1731_v7, %v1169_v5  ;;  %v1179_v6 = vld [vmem:[%s2012_s24 + $0xe8] sm:$0xff] }
 0x14e   : > { %1231 = vst.msk [vmem:[%s2012_s24 + $0x80] sm:$0xff] %vm1214_vm4, %v1198_v11  ;;  %v1199_v14 = vadd.f32 %v1732_v12, %v1167_v10  ;;  %v1251_v11 = vld [vmem:[%s2012_s24] sm:$0xff] (!%p1555_p11)  ;;  %v1252_v12 = vld [vmem:[%s2012_s24 + $0x8] sm:$0xff] (!%p1555_p11) }
 0x14f   : > { %1234 = vst.msk [vmem:[%s2012_s24 + $0x98] sm:$0xff] %vm1214_vm4, %v1201_v13  ;;  %v1253_v13 = vld [vmem:[%s2012_s24 + $0x10] sm:$0xff] (!%p1555_p11) }
 0x150   : > { %1232 = vst.msk [vmem:[%s2012_s24 + $0x88] sm:$0xff] %vm1214_vm4, %v1199_v14  ;;  %v1667_v15 = vpop.f32.mrb[20].mxu1  ;;  %v1701_v16 = vpop.f32.mrb[20].mxu0  ;;  %v1283_v14 = vmax.f32 (!%p1555_p11), %v1251_v11, 0.0 }
 0x151   : > { %v1733_v18 = vadd.f32 %v1701_v16, %v1667_v15  ;;  %v745_v19 = vpop.f32.mrb[21].mxu1  ;;  %v1071_v20 = vpop.f32.mrb[21].mxu0  ;;  %v1284_v15 = vmax.f32 (!%p1555_p11), %v1252_v12, 0.0  ;;  %v1285_v16 = vmax.f32 (!%p1555_p11), %v1253_v13, 0.0 }
 0x152   : > { %v1734_v22 = vadd.f32 %v1071_v20, %v745_v19  ;;  %v1668_v23 = vpop.f32.mrb[22].mxu1  ;;  %v1702_v24 = vpop.f32.mrb[22].mxu0  ;;  %v1256_v19 = vld [vmem:[%s2012_s24 + $0x28] sm:$0xff] (!%p1555_p11)  ;;  %1315 = vst.msk [vmem:[%s2012_s24] sm:$0xff] (!%p1555_p11), %vm1214_vm4, %v1283_v14 }
 0x153   : > { %v1204_v26 = vadd.f32 %v1733_v18, %v1172_v17  ;;  %v1735_v27 = vadd.f32 %v1702_v24, %v1668_v23  ;;  %v748_v28 = vpop.f32.mrb[23].mxu1  ;;  %v1074_v29 = vpop.f32.mrb[23].mxu0  ;;  %v1254_v17 = vld [vmem:[%s2012_s24 + $0x18] sm:$0xff] (!%p1555_p11)  ;;  %v1255_v18 = vld [vmem:[%s2012_s24 + $0x20] sm:$0xff] (!%p1555_p11)  ;;  %v1257_v23 = vld [vmem:[%s2012_s24 + $0x30] sm:$0xff] (!%p1555_p11)  ;;  %1316 = vst.msk [vmem:[%s2012_s24 + $0x8] sm:$0xff] (!%p1555_p11), %vm1214_vm4, %v1284_v15 }
 0x154   : > { %v1202_v31 = vadd.f32 %v1734_v22, %v1170_v21  ;;  %v1736_v32 = vadd.f32 %v1074_v29, %v748_v28  ;;  %v1286_v20 = vmax.f32 (!%p1555_p11), %v1254_v17, 0.0  ;;  %v1287_v21 = vmax.f32 (!%p1555_p11), %v1255_v18, 0.0  ;;  %v1258_v24 = vld [vmem:[%s2012_s24 + $0x38] sm:$0xff] (!%p1555_p11)  ;;  %1317 = vst.msk [vmem:[%s2012_s24 + $0x10] sm:$0xff] (!%p1555_p11), %vm1214_vm4, %v1285_v16  ;;  %v1260_v29 = vld [vmem:[%s2012_s24 + $0x48] sm:$0xff] (!%p1555_p11) }
 0x155   : > { %1237 = vst.msk [vmem:[%s2012_s24 + $0xb0] sm:$0xff] %vm1214_vm4, %v1204_v26  ;;  %v1205_v33 = vadd.f32 %v1735_v27, %v1173_v25  ;;  %v1288_v22 = vmax.f32 (!%p1555_p11), %v1256_v19, 0.0  ;;  %v1259_v25 = vld [vmem:[%s2012_s24 + $0x40] sm:$0xff] (!%p1555_p11)  ;;  %v1289_v26 = vmax.f32 (!%p1555_p11), %v1257_v23, 0.0  ;;  %v1290_v27 = vmax.f32 (!%p1555_p11), %v1258_v24, 0.0 }
 0x156   : > { %1235 = vst.msk [vmem:[%s2012_s24 + $0xa0] sm:$0xff] %vm1214_vm4, %v1202_v31  ;;  %v1203_v34 = vadd.f32 %v1736_v32, %v1171_v30  ;;  %v1291_v28 = vmax.f32 (!%p1555_p11), %v1259_v25, 0.0  ;;  %v1261_v30 = vld [vmem:[%s2012_s24 + $0x50] sm:$0xff] (!%p1555_p11)  ;;  %v1262_v31 = vld [vmem:[%s2012_s24 + $0x58] sm:$0xff] (!%p1555_p11)  ;;  %1318 = vst.msk [vmem:[%s2012_s24 + $0x18] sm:$0xff] (!%p1555_p11), %vm1214_vm4, %v1286_v20  ;;  %v1292_v32 = vmax.f32 (!%p1555_p11), %v1260_v29, 0.0 }
 0x157   : > { %1238 = vst.msk [vmem:[%s2012_s24 + $0xb8] sm:$0xff] %vm1214_vm4, %v1205_v33  ;;  %1319 = vst.msk [vmem:[%s2012_s24 + $0x20] sm:$0xff] (!%p1555_p11), %vm1214_vm4, %v1287_v21  ;;  %v1293_v33 = vmax.f32 (!%p1555_p11), %v1261_v30, 0.0 }
 0x158   : > { %1236 = vst.msk [vmem:[%s2012_s24 + $0xa8] sm:$0xff] %vm1214_vm4, %v1203_v34  ;;  %v1671_v35 = vpop.f32.mrb[24].mxu1  ;;  %v1705_v36 = vpop.f32.mrb[24].mxu0  ;;  %1320 = vst.msk [vmem:[%s2012_s24 + $0x28] sm:$0xff] (!%p1555_p11), %vm1214_vm4, %v1288_v22  ;;  %v1294_v34 = vmax.f32 (!%p1555_p11), %v1262_v31, 0.0 }
 0x159   : > { %v1737_v38 = vadd.f32 %v1705_v36, %v1671_v35  ;;  %v761_v39 = vpop.f32.mrb[25].mxu1  ;;  %v1087_v40 = vpop.f32.mrb[25].mxu0  ;;  %v1263_v35 = vld [vmem:[%s2012_s24 + $0x60] sm:$0xff] (!%p1555_p11)  ;;  %v1264_v36 = vld [vmem:[%s2012_s24 + $0x68] sm:$0xff] (!%p1555_p11)  ;;  %1321 = vst.msk [vmem:[%s2012_s24 + $0x30] sm:$0xff] (!%p1555_p11), %vm1214_vm4, %v1289_v26  ;;  %1322 = vst.msk [vmem:[%s2012_s24 + $0x38] sm:$0xff] (!%p1555_p11), %vm1214_vm4, %v1290_v27 }
 0x15a   : > { %v1738_v42 = vadd.f32 %v1087_v40, %v761_v39  ;;  %v1672_v43 = vpop.f32.mrb[26].mxu1  ;;  %v1706_v44 = vpop.f32.mrb[26].mxu0  ;;  %1323 = vst.msk [vmem:[%s2012_s24 + $0x40] sm:$0xff] (!%p1555_p11), %vm1214_vm4, %v1291_v28  ;;  %v1296_v39 = vmax.f32 (!%p1555_p11), %v1264_v36, 0.0  ;;  %1324 = vst.msk [vmem:[%s2012_s24 + $0x48] sm:$0xff] (!%p1555_p11), %vm1214_vm4, %v1292_v32 }
 0x15b   : > { %v1208_v46 = vadd.f32 %v1737_v38, %v1176_v37  ;;  %v1739_v47 = vadd.f32 %v1706_v44, %v1672_v43  ;;  %v764_v48 = vpop.f32.mrb[27].mxu1  ;;  %v1090_v49 = vpop.f32.mrb[27].mxu0  ;;  %v1265_v37 = vld [vmem:[%s2012_s24 + $0x70] sm:$0xff] (!%p1555_p11)  ;;  %v1295_v38 = vmax.f32 (!%p1555_p11), %v1263_v35, 0.0  ;;  %v1268_v43 = vld [vmem:[%s2012_s24 + $0x88] sm:$0xff] (!%p1555_p11)  ;;  %1325 = vst.msk [vmem:[%s2012_s24 + $0x50] sm:$0xff] (!%p1555_p11), %vm1214_vm4, %v1293_v33 }
 0x15c   : > { %v1206_v51 = vadd.f32 %v1738_v42, %v1174_v41  ;;  %v1740_v52 = vadd.f32 %v1090_v49, %v764_v48  ;;  %v1297_v40 = vmax.f32 (!%p1555_p11), %v1265_v37, 0.0  ;;  %v1266_v41 = vld [vmem:[%s2012_s24 + $0x78] sm:$0xff] (!%p1555_p11)  ;;  %v1267_v42 = vld [vmem:[%s2012_s24 + $0x80] sm:$0xff] (!%p1555_p11)  ;;  %1326 = vst.msk [vmem:[%s2012_s24 + $0x58] sm:$0xff] (!%p1555_p11), %vm1214_vm4, %v1294_v34  ;;  %1328 = vst.msk [vmem:[%s2012_s24 + $0x68] sm:$0xff] (!%p1555_p11), %vm1214_vm4, %v1296_v39 }
 0x15d   : > { %1241 = vst.msk [vmem:[%s2012_s24 + $0xd0] sm:$0xff] %vm1214_vm4, %v1208_v46  ;;  %v1209_v53 = vadd.f32 %v1739_v47, %v1177_v45  ;;  %v1298_v44 = vmax.f32 (!%p1555_p11), %v1266_v41, 0.0  ;;  %v1299_v45 = vmax.f32 (!%p1555_p11), %v1267_v42, 0.0  ;;  %v1300_v46 = vmax.f32 (!%p1555_p11), %v1268_v43, 0.0  ;;  %v1269_v47 = vld [vmem:[%s2012_s24 + $0x90] sm:$0xff] (!%p1555_p11)  ;;  %v1270_v48 = vld [vmem:[%s2012_s24 + $0x98] sm:$0xff] (!%p1555_p11) }
 0x15e   : > { %1239 = vst.msk [vmem:[%s2012_s24 + $0xc0] sm:$0xff] %vm1214_vm4, %v1206_v51  ;;  %v1207_v54 = vadd.f32 %v1740_v52, %v1175_v50  ;;  %v1271_v49 = vld [vmem:[%s2012_s24 + $0xa0] sm:$0xff] (!%p1555_p11)  ;;  %1327 = vst.msk [vmem:[%s2012_s24 + $0x60] sm:$0xff] (!%p1555_p11), %vm1214_vm4, %v1295_v38  ;;  %v1301_v50 = vmax.f32 (!%p1555_p11), %v1269_v47, 0.0  ;;  %v1302_v51 = vmax.f32 (!%p1555_p11), %v1270_v48, 0.0 }
 0x15f   : > { %1242 = vst.msk [vmem:[%s2012_s24 + $0xd8] sm:$0xff] %vm1214_vm4, %v1209_v53  ;;  %1329 = vst.msk [vmem:[%s2012_s24 + $0x70] sm:$0xff] (!%p1555_p11), %vm1214_vm4, %v1297_v40  ;;  %v1303_v52 = vmax.f32 (!%p1555_p11), %v1271_v49, 0.0  ;;  %v1272_v53 = vld [vmem:[%s2012_s24 + $0xa8] sm:$0xff] (!%p1555_p11) }
 0x160   : > { %1240 = vst.msk [vmem:[%s2012_s24 + $0xc8] sm:$0xff] %vm1214_vm4, %v1207_v54  ;;  %v1675_v59 = vpop.f32.mrb[28].mxu1  ;;  %v1709_v60 = vpop.f32.mrb[28].mxu0  ;;  %v1273_v54 = vld [vmem:[%s2012_s24 + $0xb0] sm:$0xff] (!%p1555_p11)  ;;  %1330 = vst.msk [vmem:[%s2012_s24 + $0x78] sm:$0xff] (!%p1555_p11), %vm1214_vm4, %v1298_v44 }
 0x161   : > { %v1741_v61 = vadd.f32 %v1709_v60, %v1675_v59  ;;  %v777_v56 = vpop.f32.mrb[29].mxu1  ;;  %v1103_v57 = vpop.f32.mrb[29].mxu0  ;;  %v1274_v59 = vld [vmem:[%s2012_s24 + $0xb8] sm:$0xff] (!%p1555_p11)  ;;  %1331 = vst.msk [vmem:[%s2012_s24 + $0x80] sm:$0xff] (!%p1555_p11), %vm1214_vm4, %v1299_v45  ;;  %1332 = vst.msk [vmem:[%s2012_s24 + $0x88] sm:$0xff] (!%p1555_p11), %vm1214_vm4, %v1300_v46  ;;  %v1304_v60 = vmax.f32 (!%p1555_p11), %v1272_v53, 0.0 }
 0x162   : > { %v1742_v63 = vadd.f32 %v1103_v57, %v777_v56  ;;  %v1676_v0 = vpop.f32.mrb[30].mxu1  ;;  %v1710_v58 = vpop.f32.mrb[30].mxu0  ;;  %1250 = sbr.rel (%p1555_p11) target bundleno = 371 (0x173), region = 40  ;;  %1333 = vst.msk [vmem:[%s2012_s24 + $0x90] sm:$0xff] (!%p1555_p11), %vm1214_vm4, %v1301_v50  ;;  %1334 = vst.msk [vmem:[%s2012_s24 + $0x98] sm:$0xff] (!%p1555_p11), %vm1214_vm4, %v1302_v51 }
 0x163   : > { %v1212_v2 = vadd.f32 %v1741_v61, %v1180_v55  ;;  %v1743_v3 = vadd.f32 %v1710_v58, %v1676_v0  ;;  %v780_v4 = vpop.f32.mrb[31].mxu1  ;;  %v1106_v5 = vpop.f32.mrb[31].mxu0  ;;  %v1305_v55 = vmax.f32 (!%p1555_p11), %v1273_v54, 0.0  ;;  %v1306_v61 = vmax.f32 (!%p1555_p11), %v1274_v59, 0.0  ;;  %1335 = vst.msk [vmem:[%s2012_s24 + $0xa0] sm:$0xff] (!%p1555_p11), %vm1214_vm4, %v1303_v52  ;;  %1336 = vst.msk [vmem:[%s2012_s24 + $0xa8] sm:$0xff] (!%p1555_p11), %vm1214_vm4, %v1304_v60 }
 0x164   : > { %v1210_v7 = vadd.f32 %v1742_v63, %v1178_v62  ;;  %v1744_v8 = vadd.f32 %v1106_v5, %v780_v4  ;;  %v1277_v62 = vld [vmem:[%s2012_s24 + $0xd0] sm:$0xff] (!%p1555_p11) }
 0x165   : > { %1245 = vst.msk [vmem:[%s2012_s24 + $0xf0] sm:$0xff] %vm1214_vm4, %v1212_v2  ;;  %v1213_v9 = vadd.f32 %v1743_v3, %v1181_v1  ;;  %v1275_v56 = vld [vmem:[%s2012_s24 + $0xc0] sm:$0xff] (!%p1555_p11)  ;;  %v1309_v58 = vmax.f32 (!%p1555_p11), %v1277_v62, 0.0  ;;  %1337 = vst.msk [vmem:[%s2012_s24 + $0xb0] sm:$0xff] (!%p1555_p11), %vm1214_vm4, %v1305_v55 }
 0x166   : > { %1243 = vst.msk [vmem:[%s2012_s24 + $0xe0] sm:$0xff] %vm1214_vm4, %v1210_v7  ;;  %v1211_v10 = vadd.f32 %v1744_v8, %v1179_v6  ;;  %v1307_v63 = vmax.f32 (!%p1555_p11), %v1275_v56, 0.0  ;;  %v1278_v1 = vld [vmem:[%s2012_s24 + $0xd8] sm:$0xff] (!%p1555_p11)  ;;  %1338 = vst.msk [vmem:[%s2012_s24 + $0xb8] sm:$0xff] (!%p1555_p11), %vm1214_vm4, %v1306_v61 }
 0x167   : > { %1246 = vst.msk [vmem:[%s2012_s24 + $0xf8] sm:$0xff] %vm1214_vm4, %v1213_v9  ;;  %v1276_v57 = vld [vmem:[%s2012_s24 + $0xc8] sm:$0xff] (!%p1555_p11)  ;;  %v1310_v4 = vmax.f32 (!%p1555_p11), %v1278_v1, 0.0  ;;  %1341 = vst.msk [vmem:[%s2012_s24 + $0xd0] sm:$0xff] (!%p1555_p11), %vm1214_vm4, %v1309_v58 }
 0x168   : > { %1244 = vst.msk [vmem:[%s2012_s24 + $0xe8] sm:$0xff] %vm1214_vm4, %v1211_v10  ;;  %v1308_v0 = vmax.f32 (!%p1555_p11), %v1276_v57, 0.0  ;;  %1339 = vst.msk [vmem:[%s2012_s24 + $0xc0] sm:$0xff] (!%p1555_p11), %vm1214_vm4, %v1307_v63 }
 0x169   : > { %1342 = vst.msk [vmem:[%s2012_s24 + $0xd8] sm:$0xff] %vm1214_vm4, %v1310_v4 }
 0x16a   : > { %1340 = vst.msk [vmem:[%s2012_s24 + $0xc8] sm:$0xff] %vm1214_vm4, %v1308_v0 }
 0x16c   : > { %v1281_v7 = vld [vmem:[%s2012_s24 + $0xf0] sm:$0xff] }
 0x16d   : > { %v1279_v2 = vld [vmem:[%s2012_s24 + $0xe0] sm:$0xff]  ;;  %v1313_v9 = vmax.f32 %v1281_v7, 0.0 }
 0x16e   : > { %v1311_v5 = vmax.f32 %v1279_v2, 0.0  ;;  %v1282_v8 = vld [vmem:[%s2012_s24 + $0xf8] sm:$0xff] }
 0x16f   : > { %v1280_v3 = vld [vmem:[%s2012_s24 + $0xe8] sm:$0xff]  ;;  %v1314_v10 = vmax.f32 %v1282_v8, 0.0  ;;  %1345 = vst.msk [vmem:[%s2012_s24 + $0xf0] sm:$0xff] %vm1214_vm4, %v1313_v9 }
 0x170   : > { %v1312_v6 = vmax.f32 %v1280_v3, 0.0  ;;  %1343 = vst.msk [vmem:[%s2012_s24 + $0xe0] sm:$0xff] %vm1214_vm4, %v1311_v5 }
 0x171   : > { %1346 = vst.msk [vmem:[%s2012_s24 + $0xf8] sm:$0xff] %vm1214_vm4, %v1314_v10 }
 0x172   : > { %1344 = vst.msk [vmem:[%s2012_s24 + $0xe8] sm:$0xff] %vm1214_vm4, %v1312_v6 }
 0x173 PF: > { %s13_s18 = sadd.s32 1, %s1924_s18   ;;  %s2396_s12 = smov %s1912_s15 }
 0x174   : > { %p10_p12 = scmp.ge.s32.totalorder %s13_s18, 98   ;;  %s2397_s13 = smov %s1916_s16 }
 0x175   : > { %s2398_s14 = smov %s1920_s17  ;;  %s2399_s15 = smov %s2403_s19 }
 0x176   : > { %s2400_s16 = smov %s2407_s20  ;;  %s2401_s17 = smov %s2411_s21 }
 0x177   :  { %12 = sbr.rel (!%p10_p12) target bundleno = 4 (0x4), region = 75 }

// kernel: simple_unet_forward.8
= control target key start
LH: loop header
LB: loop body
LE: loop exit
PB: predicated region body
PF: predicated region fallthrough
CT: control target
= control target key end

     0   :  { %s1241_s12 = smov 0   ;;  %s1243_s13 = smov 0   ;;  %s1433_s0 = inlined_call_operand.vmem [shape: bf16[2,10,80,96], index: 0, kind: input, shape index: {}]   ;;  %s1434_s1 = inlined_call_operand.vmem [shape: bf16[3,3,96,64], index: 1, kind: input, shape index: {}]   ;;  %s1435_s2 = inlined_call_operand.vmem [shape: f32[1,64], index: 2, kind: input, shape index: {}]   ;;  %s1436_s3 = inlined_call_operand.vmem [shape: f32[2,8,64,64], index: 3, kind: output, shape index: {}]  }
   0x1   :  { %s1245_s14 = smov 0   ;;  %s1247_s15 = smov 0  }
   0x2   :  { %s1249_s16 = smov 0   ;;  %s1251_s17 = smov 0  }
   0x3   :  { %s1253_s18 = smov 0  }
   0x4 LB: > { %s25_s19 = sadd.s32 1, %s1207_s15  ;;  %s28_s20 = sadd.s32 1, %s1211_s16  ;;  %s1219_s18 = sphi %s1253_s18, %s13_s18   ;;  %s1215_s17 = sphi %s1251_s17, %s1442_s17   ;;  %s1211_s16 = sphi %s1249_s16, %s1441_s16   ;;  %s1207_s15 = sphi %s1247_s15, %s1440_s15   ;;  %s1203_s14 = sphi %s1245_s14, %s1439_s14   ;;  %s1199_s13 = sphi %s1243_s13, %s1438_s13   ;;  %s1195_s12 = sphi %s1241_s12, %s1437_s12  }
   0x5   : > { %p26_p0 = scmp.ge.s32.totalorder %s25_s19, 3  ;;  %p881_p1 = scmp.ge.s32.totalorder %s1219_s18, 1 }
   0x6   : > { %p178_p2 = scmp.lt.s32.totalorder %s1219_s18, 49  ;;  %s32_s21 = sadd.s32 1, %s1215_s17 }
   0x7   : > { %s1444_s19 = smov (%p26_p0, %s25_s19), 0  ;;  %s1446_s20 = smov (!%p26_p0, %s28_s20), %s1211_s16 }
   0x8   : > { %p179_p3 = pnand %p881_p1, %p178_p2  ;;  %p30_p4 = scmp.ge.s32.totalorder %s1446_s20, 8 }
   0x9   : > { %s216_s22 = sadd.s32 (!%p179_p3), %s1195_s12, %s1199_s13  ;;  %p217_p6 = scmp.lt.s32.totalorder (!%p179_p3), %s1203_s14, 1 }
   0xa   : > { %s1448_s20 = smov (%p30_p4, %s1446_s20), 0  ;;  %s1450_s21 = smov (!%p30_p4, %s32_s21), %s1215_s17 }
   0xb   : > { %p34_p5 = scmp.ge.s32.totalorder %s1450_s21, 2  ;;  %182 = sbr.rel (%p179_p3) target bundleno = 313 (0x139), region = 32 }
   0xc   : > { %p219_p7 = scmp.lt.s32.totalorder (!%p179_p3), %s216_s22, 9  ;;  %p227_p8 = scmp.lt.s32.totalorder (!%p179_p3), %s1195_s12, 2 }
   0xd   : > { %s1452_s21 = smov (%p34_p5, %s1450_s21), 0  ;;  %p234_p9 = scmp.lt.s32.totalorder (!%p179_p3), %s1199_s13, 7 }
   0xe   : > { %p887_p10 = scmp.ne.s32.totalorder (!%p179_p3), %s1195_s12, 0 }
  0x12   : > { %s1454_s14 = smov (!%p217_p6, %s1203_s14), 1  ;;  %s1456_s22 = smov (!%p219_p7, %s216_s22), 9 }
  0x13   : > { %s1077_s23 = smul.u32 100, %s1454_s14  ;;  %s885_s8 = sshll.u32 %s1454_s14, 6  ;;  %v888_v0 = vld [vmem:[%s1435_s2] ss:$0 sm:$0xff] (!%p887_p10)  ;;  %vm253_vm0 = vcmask (!%p887_p10), 523264  }
  0x14   : > { %s1076_s24 = smul.u32 10, %s1456_s22  ;;  %s1458_s13 = smov (!%p234_p9, %s1199_s13), 7 }
  0x15   : > { %s228_s25 = scalar_select %p227_p8, %s1195_s12, 2 }
  0x16   : > { %s223_s26 = sadd.s32 %s1077_s23, %s1076_s24  ;;  %s884_s9 = sshll.u32 %s1458_s13, 3 }
  0x17   : > { %s882_s27 = sshll.u32 %s223_s26, 2  ;;  %s1078_s28 = smul.u32 144, %s228_s25 }
  0x18   : > { %s1295_s4 = scalar_lea.vmem %s1433_s0, %s882_s27  ;;  %s238_s10 = sadd.s32 %s885_s8, %s884_s9 }
  0x19   : > { %s1300_s7 = scalar_lea.vmem %s1434_s1, %s1078_s28  ;;  %s886_s11 = sshll.u32 %s238_s10, 3 }
  0x1a   : > { %s1306_s24 = scalar_lea.vmem %s1436_s3, %s886_s11  ;;  %245 = sbr.rel (%p887_p10) target bundleno = 33 (0x21), region = 36 }
  0x1b   : > { %254 = vst.msk [vmem:[%s1306_s24] sm:$0xff] (!%p887_p10), %vm253_vm0, %v888_v0  ;;  %255 = vst.msk [vmem:[%s1306_s24 + $0x8] sm:$0xff] (!%p887_p10), %vm253_vm0, %v888_v0 }
  0x1c   : > { %256 = vst.msk [vmem:[%s1306_s24 + $0x10] sm:$0xff] (!%p887_p10), %vm253_vm0, %v888_v0  ;;  %257 = vst.msk [vmem:[%s1306_s24 + $0x18] sm:$0xff] (!%p887_p10), %vm253_vm0, %v888_v0 }
  0x1d   : > { %258 = vst.msk [vmem:[%s1306_s24 + $0x20] sm:$0xff] (!%p887_p10), %vm253_vm0, %v888_v0  ;;  %259 = vst.msk [vmem:[%s1306_s24 + $0x28] sm:$0xff] (!%p887_p10), %vm253_vm0, %v888_v0 }
  0x1e   : > { %260 = vst.msk [vmem:[%s1306_s24 + $0x30] sm:$0xff] (!%p887_p10), %vm253_vm0, %v888_v0  ;;  %261 = vst.msk [vmem:[%s1306_s24 + $0x38] sm:$0xff] (!%p887_p10), %vm253_vm0, %v888_v0 }
  0x21 PF: > { %v1135_v1 = vld [vmem:[%s1300_s7 + $0x30] sm:$0xff]   ;;  %v1136_v2 = vld [vmem:[%s1300_s7] sm:$0xff]   ;;  %v1137_v3 = vld [vmem:[%s1300_s7 + $0x38] sm:$0xff]   ;;  %vm352_vm1 = vcmask 785408   ;;  %vm727_vm2 = vcmask 523264   ;;  %p955_p11 = scmp.ne.s32.totalorder %s1195_s12, 2 }
  0x22   : > { %988 = vmatprep.subr.bf16.mxu1 %v1135_v1  ;;  %1008 = vmatprep.subr.bf16.mxu0 %v1136_v2  ;;  %v1138_v4 = vld [vmem:[%s1300_s7 + $0x8] sm:$0xff]   ;;  %v1139_v5 = vld [vmem:[%s1300_s7 + $0x40] sm:$0xff]   ;;  %v1140_v6 = vld [vmem:[%s1300_s7 + $0x10] sm:$0xff]  }
  0x23   : > { %989 = vmatpush3.bf16.msra.mxu1 %v1135_v1  ;;  %1009 = vmatpush3.bf16.msra.mxu0 %v1136_v2  ;;  %v1141_v7 = vld [vmem:[%s1300_s7 + $0x48] sm:$0xff]   ;;  %v1142_v8 = vld [vmem:[%s1300_s7 + $0x18] sm:$0xff]   ;;  %v1143_v9 = vld [vmem:[%s1300_s7 + $0x50] sm:$0xff]  }
  0x24   : > { %990 = vmatprep.subr.bf16.mxu1 %v1137_v3  ;;  %1010 = vmatprep.subr.bf16.mxu0 %v1138_v4  ;;  %v263_v10 = vld [vmem:[%s1295_s4 + $0x4] sm:$0xf]  ;;  %v264_v11 = vld [vmem:[%s1295_s4 + $0x8] sm:$0xf]  ;;  %v262_v14 = vld [vmem:[%s1295_s4] sm:$0xf] }
  0x25   : > { %v1144_v12 = vld [vmem:[%s1300_s7 + $0x20] sm:$0xff]   ;;  %v901_v13 = vcombine.low %v263_v10, %v264_v11  ;;  %v915_v15 = vcombine.low %v262_v14, %v263_v10  ;;  %v1145_v16 = vld [vmem:[%s1300_s7 + $0x58] sm:$0xff]   ;;  %v1146_v17 = vld [vmem:[%s1300_s7 + $0x28] sm:$0xff]  }
  0x26   : > { %v265_v18 = vld [vmem:[%s1295_s4 + $0xc] sm:$0xf]  ;;  %v266_v19 = vld [vmem:[%s1295_s4 + $0x10] sm:$0xf]  ;;  %v1151_v20 = vld [vmem:[%s1300_s7 + $0x60] sm:$0xff]  }
  0x27   : > { %991 = vmatpush3.bf16.msra.mxu1 %v1137_v3  ;;  %1011 = vmatpush3.bf16.msra.mxu0 %v1138_v4  ;;  %v267_v21 = vld [vmem:[%s1295_s4 + $0x14] sm:$0xf]  ;;  %v902_v22 = vcombine.low %v265_v18, %v266_v19  ;;  %v268_v23 = vld [vmem:[%s1295_s4 + $0x18] sm:$0xf]  ;;  %v916_v24 = vcombine.low %v264_v11, %v265_v18  ;;  %v1152_v25 = vld [vmem:[%s1300_s7 + $0x68] sm:$0xff]  }
  0x28   : > { %992 = vmatprep.subr.bf16.mxu1 %v1139_v5  ;;  %1012 = vmatprep.subr.bf16.mxu0 %v1140_v6  ;;  %v903_v26 = vcombine.low %v267_v21, %v268_v23  ;;  %v917_v27 = vcombine.low %v266_v19, %v267_v21  ;;  %v269_v28 = vld [vmem:[%s1295_s4 + $0x1c] sm:$0xf]  ;;  %v282_v29 = vld [vmem:[%s1295_s4 + $0x20] sm:$0xf]  ;;  %v1153_v30 = vld [vmem:[%s1300_s7 + $0x70] sm:$0xff]  }
  0x29   : > { %1000 = vmatprep.mubr.msk.bf16.mxu1 %vm352_vm1, %v901_v13  ;;  %1020 = vmatprep.mubr.msk.bf16.mxu0 %vm352_vm1, %v915_v15  ;;  %v904_v31 = vcombine.low %v269_v28, %v282_v29  ;;  %v918_v32 = vcombine.low %v268_v23, %v269_v28  ;;  %v1156_v33 = vld [vmem:[%s1300_s7 + $0x78] sm:$0xff]   ;;  %v1161_v34 = vld [vmem:[%s1295_s4 + $0x8] sm:$0xff]   ;;  %v1159_v36 = vld [vmem:[%s1300_s7 + $0x80] sm:$0xff]  }
  0x2a   : > { %v1162_v35 = vld [vmem:[%s1295_s4 + $0x18] sm:$0xff]   ;;  %v1160_v37 = vld [vmem:[%s1300_s7 + $0x88] sm:$0xff]   ;;  %v1164_v38 = vld [vmem:[%s1295_s4 + $0x20] sm:$0xff]  }
  0x2b   : > { %993 = vmatpush3.bf16.msra.mxu1 %v1139_v5  ;;  %1013 = vmatpush3.bf16.msra.mxu0 %v1140_v6  ;;  %v1163_v39 = vld [vmem:[%s1295_s4 + $0x10] sm:$0xff]   ;;  %v715_v62 = vld [vmem:[%s1306_s24 + $0x20] sm:$0xff]  ;;  %v718_v4 = vld [vmem:[%s1306_s24 + $0x38] sm:$0xff] }
  0x2c   : > { %994 = vmatprep.subr.bf16.mxu1 %v1141_v7  ;;  %1014 = vmatprep.subr.bf16.mxu0 %v1142_v8  ;;  %v717_v57 = vld [vmem:[%s1306_s24 + $0x30] sm:$0xff]  ;;  %v711_v1 = vld [vmem:[%s1306_s24] sm:$0xff]  ;;  %v716_v11 = vld [vmem:[%s1306_s24 + $0x28] sm:$0xff] }
  0x2d   : > { %v713_v59 = vld [vmem:[%s1306_s24 + $0x10] sm:$0xff] }
  0x2f   : > { %995 = vmatpush3.bf16.msra.mxu1 %v1141_v7  ;;  %1015 = vmatpush3.bf16.msra.mxu0 %v1142_v8  ;;  %v714_v8 = vld [vmem:[%s1306_s24 + $0x18] sm:$0xff] }
  0x30   : > { %996 = vmatprep.subr.bf16.mxu1 %v1143_v9  ;;  %1016 = vmatprep.subr.bf16.mxu0 %v1144_v12 }
  0x33   : > { %997 = vmatpush3.bf16.msra.mxu1 %v1143_v9  ;;  %1017 = vmatpush3.bf16.msra.mxu0 %v1144_v12 }
  0x34   : > { %998 = vmatprep.subr.bf16.mxu1 %v1145_v16  ;;  %1018 = vmatprep.subr.bf16.mxu0 %v1146_v17 }
  0x37   : > { %999 = vmatpush3.bf16.msra.mxu1 %v1145_v16  ;;  %1019 = vmatpush3.bf16.msra.mxu0 %v1146_v17  ;;  %v712_v16 = vld [vmem:[%s1306_s24 + $0x8] sm:$0xff] }
  0x38   : > { %1048 = vmatprep.subr.bf16.mxu1 %v1151_v20  ;;  %1028 = vmatprep.subr.bf16.mxu0 %v1151_v20 }
  0x3a   : > { %1001 = vmatmul.mubr.msk.bf16.vlgmr.msra.gmra.mrb[0].mxu1 %vm352_vm1, %v902_v22  ;;  %1021 = vmatmul.mubr.msk.bf16.vlgmr.msra.gmra.mrb[0].mxu0 %vm352_vm1, %v916_v24 }
  0x3b   : > { %1054 = vmatpush3.bf16.msra.mxu1 %v1151_v20  ;;  %1029 = vmatpush3.bf16.msra.mxu0 %v1151_v20 }
  0x3c   : > { %1049 = vmatprep.subr.bf16.mxu1 %v1152_v25  ;;  %1030 = vmatprep.subr.bf16.mxu0 %v1152_v25 }
  0x3d   : > { %1004 = vmatprep.mubr.msk.bf16.mxu1 %vm352_vm1, %v903_v26  ;;  %1024 = vmatprep.mubr.msk.bf16.mxu0 %vm352_vm1, %v917_v27 }
  0x3f   : > { %1055 = vmatpush3.bf16.msra.mxu1 %v1152_v25  ;;  %1031 = vmatpush3.bf16.msra.mxu0 %v1152_v25 }
  0x40   : > { %1050 = vmatprep.subr.bf16.mxu1 %v1153_v30  ;;  %1032 = vmatprep.subr.bf16.mxu0 %v1153_v30 }
  0x42   : > { %1005 = vmatmul.mubr.msk.bf16.gmra.mrb[4].mxu1 %vm352_vm1, %v904_v31  ;;  %1025 = vmatmul.mubr.msk.bf16.gmra.mrb[4].mxu0 %vm352_vm1, %v918_v32 }
  0x43   : > { %1056 = vmatpush3.bf16.msra.mxu1 %v1153_v30  ;;  %1033 = vmatpush3.bf16.msra.mxu0 %v1153_v30 }
  0x44   : > { %1051 = vmatprep.subr.bf16.mxu1 %v1156_v33  ;;  %1034 = vmatprep.subr.bf16.mxu0 %v1156_v33 }
  0x45   : > { %1040 = vmatprep.mubr.msk.bf16.mxu0 %vm352_vm1, %v1161_v34  ;;  %1044 = vmatprep.mubr.msk.bf16.mxu1 %vm352_vm1, %v1162_v35 }
  0x47   : > { %1057 = vmatpush3.bf16.msra.mxu1 %v1156_v33  ;;  %1035 = vmatpush3.bf16.msra.mxu0 %v1156_v33 }
  0x48   : > { %1052 = vmatprep.subr.bf16.mxu1 %v1159_v36  ;;  %1036 = vmatprep.subr.bf16.mxu0 %v1159_v36 }
  0x4b   : > { %1058 = vmatpush3.bf16.msra.mxu1 %v1159_v36  ;;  %1037 = vmatpush3.bf16.msra.mxu0 %v1159_v36 }
  0x4c   : > { %1053 = vmatprep.subr.bf16.mxu1 %v1160_v37  ;;  %1038 = vmatprep.subr.bf16.mxu0 %v1160_v37 }
  0x4f   : > { %1059 = vmatpush3.bf16.msra.mxu1 %v1160_v37  ;;  %1039 = vmatpush3.bf16.msra.mxu0 %v1160_v37 }
  0x52   : > { %1045 = vmatmul.mubr.msk.bf16.vlgmr.msra.gmra.mrb[8].mxu1 %vm352_vm1, %v1164_v38  ;;  %1041 = vmatmul.mubr.msk.bf16.vlgmr.msra.gmra.mrb[0].mxu0 %vm352_vm1, %v1163_v39 }
 0x10d   : > { %v1002_v40 = vpop.f32.mrb[0].mxu1 }
 0x10e   : > { %v399_v41 = vpop.f32.mrb[1].mxu1 }
 0x10f   : > { %v1003_v42 = vpop.f32.mrb[2].mxu1 }
 0x110   : > { %v402_v43 = vpop.f32.mrb[3].mxu1 }
 0x115   : > { %v1006_v44 = vpop.f32.mrb[4].mxu1  ;;  %v1026_v45 = vpop.f32.mrb[4].mxu0 }
 0x116   : > { %v415_v46 = vpop.f32.mrb[5].mxu1  ;;  %v543_v47 = vadd.f32 %v1026_v45, %v1006_v44  ;;  %v534_v48 = vpop.f32.mrb[5].mxu0 }
 0x117   : > { %v1007_v49 = vpop.f32.mrb[6].mxu1  ;;  %v535_v50 = vadd.f32 %v534_v48, %v415_v46  ;;  %v1027_v51 = vpop.f32.mrb[6].mxu0 }
 0x118   : > { %v418_v52 = vpop.f32.mrb[7].mxu1  ;;  %v546_v53 = vadd.f32 %v1027_v51, %v1007_v49  ;;  %v537_v54 = vpop.f32.mrb[7].mxu0 }
 0x119   : > { %v538_v55 = vadd.f32 %v537_v54, %v418_v52 }
 0x125   : > { %v1046_v56 = vpop.f32.mrb[8].mxu1  ;;  %v1042_v58 = vpop.f32.mrb[0].mxu0 }
 0x126   : > { %v709_v60 = vadd.f32 %v1046_v56, %v543_v47  ;;  %v688_v61 = vpop.f32.mrb[9].mxu1  ;;  %v1060_v63 = vadd.f32 %v1042_v58, %v1002_v40  ;;  %v672_v0 = vpop.f32.mrb[1].mxu0 }
 0x127   : > { %v707_v2 = vadd.f32 %v688_v61, %v535_v50  ;;  %v1047_v3 = vpop.f32.mrb[10].mxu1  ;;  %v1061_v6 = vadd.f32 %v672_v0, %v399_v41  ;;  %v1043_v7 = vpop.f32.mrb[2].mxu0  ;;  %739 = sbr.rel (%p955_p11) target bundleno = 313 (0x139), region = 40 }
 0x128   : > { %v725_v5 = vadd.f32 %v717_v57, %v709_v60  ;;  %v710_v9 = vadd.f32 %v1047_v3, %v546_v53  ;;  %v691_v10 = vpop.f32.mrb[11].mxu1  ;;  %v721_v12 = vadd.f32 %v1060_v63, %v713_v59  ;;  %v1062_v14 = vadd.f32 %v1043_v7, %v1003_v42  ;;  %v675_v15 = vpop.f32.mrb[3].mxu0 }
 0x129   : > { %v723_v13 = vadd.f32 %v715_v62, %v707_v2  ;;  %v708_v17 = vadd.f32 %v691_v10, %v538_v55  ;;  %v719_v18 = vadd.f32 %v1061_v6, %v711_v1  ;;  %v1063_v20 = vadd.f32 %v675_v15, %v402_v43 }
 0x12a   : > { %734 = vst.msk [vmem:[%s1306_s24 + $0x30] sm:$0xff] %vm727_vm2, %v725_v5  ;;  %v726_v19 = vadd.f32 %v718_v4, %v710_v9  ;;  %730 = vst.msk [vmem:[%s1306_s24 + $0x10] sm:$0xff] %vm727_vm2, %v721_v12  ;;  %v722_v21 = vadd.f32 %v1062_v14, %v714_v8 }
 0x12b   : > { %732 = vst.msk [vmem:[%s1306_s24 + $0x20] sm:$0xff] %vm727_vm2, %v723_v13  ;;  %v724_v22 = vadd.f32 %v716_v11, %v708_v17  ;;  %728 = vst.msk [vmem:[%s1306_s24] sm:$0xff] %vm727_vm2, %v719_v18  ;;  %v720_v23 = vadd.f32 %v1063_v20, %v712_v16 }
 0x12c   : > { %735 = vst.msk [vmem:[%s1306_s24 + $0x38] sm:$0xff] %vm727_vm2, %v726_v19  ;;  %731 = vst.msk [vmem:[%s1306_s24 + $0x18] sm:$0xff] %vm727_vm2, %v722_v21 }
 0x12d   : > { %733 = vst.msk [vmem:[%s1306_s24 + $0x28] sm:$0xff] %vm727_vm2, %v724_v22  ;;  %729 = vst.msk [vmem:[%s1306_s24 + $0x8] sm:$0xff] %vm727_vm2, %v720_v23 }
 0x131   : > { %v742_v26 = vld [vmem:[%s1306_s24 + $0x10] sm:$0xff] }
 0x132   : > { %v740_v24 = vld [vmem:[%s1306_s24] sm:$0xff]  ;;  %v750_v29 = vmax.f32 %v742_v26, 0.0  ;;  %v746_v36 = vld [vmem:[%s1306_s24 + $0x30] sm:$0xff] }
 0x133   : > { %v748_v27 = vmax.f32 %v740_v24, 0.0  ;;  %v743_v30 = vld [vmem:[%s1306_s24 + $0x18] sm:$0xff]  ;;  %v744_v31 = vld [vmem:[%s1306_s24 + $0x20] sm:$0xff]  ;;  %v754_v38 = vmax.f32 %v746_v36, 0.0 }
 0x134   : > { %v741_v25 = vld [vmem:[%s1306_s24 + $0x8] sm:$0xff]  ;;  %v751_v33 = vmax.f32 %v743_v30, 0.0  ;;  %v752_v34 = vmax.f32 %v744_v31, 0.0  ;;  %v747_v37 = vld [vmem:[%s1306_s24 + $0x38] sm:$0xff]  ;;  %758 = vst.msk [vmem:[%s1306_s24 + $0x10] sm:$0xff] %vm727_vm2, %v750_v29 }
 0x135   : > { %v749_v28 = vmax.f32 %v741_v25, 0.0  ;;  %v745_v32 = vld [vmem:[%s1306_s24 + $0x28] sm:$0xff]  ;;  %756 = vst.msk [vmem:[%s1306_s24] sm:$0xff] %vm727_vm2, %v748_v27  ;;  %v755_v39 = vmax.f32 %v747_v37, 0.0  ;;  %762 = vst.msk [vmem:[%s1306_s24 + $0x30] sm:$0xff] %vm727_vm2, %v754_v38 }
 0x136   : > { %v753_v35 = vmax.f32 %v745_v32, 0.0  ;;  %759 = vst.msk [vmem:[%s1306_s24 + $0x18] sm:$0xff] %vm727_vm2, %v751_v33  ;;  %760 = vst.msk [vmem:[%s1306_s24 + $0x20] sm:$0xff] %vm727_vm2, %v752_v34 }
 0x137   : > { %757 = vst.msk [vmem:[%s1306_s24 + $0x8] sm:$0xff] %vm727_vm2, %v749_v28  ;;  %763 = vst.msk [vmem:[%s1306_s24 + $0x38] sm:$0xff] %vm727_vm2, %v755_v39 }
 0x138   : > { %761 = vst.msk [vmem:[%s1306_s24 + $0x28] sm:$0xff] %vm727_vm2, %v753_v35 }
 0x139 PF: > { %s13_s18 = sadd.s32 1, %s1219_s18   ;;  %s1437_s12 = smov %s1207_s15 }
 0x13a   : > { %p10_p12 = scmp.ge.s32.totalorder %s13_s18, 50   ;;  %s1438_s13 = smov %s1211_s16 }
 0x13b   : > { %s1439_s14 = smov %s1215_s17  ;;  %s1440_s15 = smov %s1444_s19 }
 0x13c   : > { %s1441_s16 = smov %s1448_s20  ;;  %s1442_s17 = smov %s1452_s21 }
 0x13d   :  { %12 = sbr.rel (!%p10_p12) target bundleno = 4 (0x4), region = 75 }

// kernel: simple_unet_forward.9
= control target key start
LH: loop header
LB: loop body
LE: loop exit
PB: predicated region body
PF: predicated region fallthrough
CT: control target
= control target key end

     0   :  { %s1138_s12 = smov 0   ;;  %s1140_s13 = smov 0   ;;  %s1331_s0 = inlined_call_operand.vmem [shape: bf16[2,6,24,192], index: 0, kind: input, shape index: {}]   ;;  %s1332_s1 = inlined_call_operand.vmem [shape: bf16[3,3,192,128], index: 1, kind: input, shape index: {}]   ;;  %s1333_s2 = inlined_call_operand.vmem [shape: f32[1,128], index: 2, kind: input, shape index: {}]   ;;  %s1334_s3 = inlined_call_operand.vmem [shape: f32[2,4,16,128], index: 3, kind: output, shape index: {}]  }
   0x1   :  { %s1142_s14 = smov 0   ;;  %s1144_s15 = smov 0  }
   0x2   :  { %s1146_s16 = smov 0   ;;  %s1148_s17 = smov 0  }
   0x3   :  { %s1150_s18 = smov 0  }
   0x4 LB: > { %s25_s19 = sadd.s32 1, %s1103_s15  ;;  %s28_s20 = sadd.s32 1, %s1107_s16  ;;  %s1115_s18 = sphi %s1150_s18, %s13_s18   ;;  %s1111_s17 = sphi %s1148_s17, %s1340_s17   ;;  %s1107_s16 = sphi %s1146_s16, %s1339_s16   ;;  %s1103_s15 = sphi %s1144_s15, %s1338_s15   ;;  %s1099_s14 = sphi %s1142_s14, %s1337_s14   ;;  %s1095_s13 = sphi %s1140_s13, %s1336_s13   ;;  %s1091_s12 = sphi %s1138_s12, %s1335_s12  }
   0x5   : > { %p26_p0 = scmp.ge.s32.totalorder %s25_s19, 3  ;;  %p851_p1 = scmp.ge.s32.totalorder %s1115_s18, 1 }
   0x6   : > { %p178_p2 = scmp.lt.s32.totalorder %s1115_s18, 25  ;;  %s32_s21 = sadd.s32 1, %s1111_s17 }
   0x7   : > { %s1342_s19 = smov (%p26_p0, %s25_s19), 0  ;;  %s1344_s20 = smov (!%p26_p0, %s28_s20), %s1107_s16 }
   0x8   : > { %p179_p3 = pnand %p851_p1, %p178_p2  ;;  %p30_p4 = scmp.ge.s32.totalorder %s1344_s20, 4 }
   0x9   : > { %s216_s22 = sadd.s32 (!%p179_p3), %s1091_s12, %s1095_s13  ;;  %p217_p6 = scmp.lt.s32.totalorder (!%p179_p3), %s1099_s14, 1 }
   0xa   : > { %s1346_s20 = smov (%p30_p4, %s1344_s20), 0  ;;  %s1348_s21 = smov (!%p30_p4, %s32_s21), %s1111_s17 }
   0xb   : > { %p34_p5 = scmp.ge.s32.totalorder %s1348_s21, 2  ;;  %182 = sbr.rel (%p179_p3) target bundleno = 359 (0x167), region = 32 }
   0xc   : > { %p219_p7 = scmp.lt.s32.totalorder (!%p179_p3), %s216_s22, 5  ;;  %p227_p8 = scmp.lt.s32.totalorder (!%p179_p3), %s1091_s12, 2 }
   0xd   : > { %s1350_s21 = smov (%p34_p5, %s1348_s21), 0  ;;  %p234_p9 = scmp.lt.s32.totalorder (!%p179_p3), %s1095_s13, 3 }
   0xe   : > { %p857_p10 = scmp.ne.s32.totalorder (!%p179_p3), %s1091_s12, 0 }
  0x12   : > { %s1352_s14 = smov (!%p217_p6, %s1099_s14), 1  ;;  %s1354_s22 = smov (!%p219_p7, %s216_s22), 5 }
  0x13   : > { %s958_s23 = smul.u32 36, %s1352_s14  ;;  %s855_s8 = sshll.u32 %s1352_s14, 3  ;;  %v858_v0 = vld [vmem:[%s1333_s2] ss:$0 sm:$0xff] (!%p857_p10) }
  0x14   : > { %s957_s24 = smul.u32 6, %s1354_s22  ;;  %s1356_s13 = smov (!%p234_p9, %s1095_s13), 3 }
  0x15   : > { %s228_s25 = scalar_select %p227_p8, %s1091_s12, 2 }
  0x16   : > { %s223_s26 = sadd.s32 %s958_s23, %s957_s24  ;;  %s854_s9 = sshll.u32 %s1356_s13, 1 }
  0x17   : > { %s852_s27 = sshll.u32 %s223_s26, 2  ;;  %s959_s28 = smul.u32 288, %s228_s25 }
  0x18   : > { %s1192_s4 = scalar_lea.vmem %s1331_s0, %s852_s27  ;;  %s238_s10 = sadd.s32 %s855_s8, %s854_s9 }
  0x19   : > { %s1197_s7 = scalar_lea.vmem %s1332_s1, %s959_s28  ;;  %s856_s11 = sshll.u32 %s238_s10, 3 }
  0x1a   : > { %s1203_s24 = scalar_lea.vmem %s1334_s3, %s856_s11  ;;  %245 = sbr.rel (%p857_p10) target bundleno = 33 (0x21), region = 36 }
  0x1b   : > { %253 = vst [vmem:[%s1203_s24] sm:$0xff] (!%p857_p10), %v858_v0  ;;  %254 = vst [vmem:[%s1203_s24 + $0x8] sm:$0xff] (!%p857_p10), %v858_v0 }
  0x21 PF: > { %v1017_v1 = vld [vmem:[%s1197_s7 + $0x60] sm:$0xff]   ;;  %v1117_v2 = vmov 0   ;;  %v1019_v4 = vld [vmem:[%s1197_s7 + $0x68] sm:$0xff]   ;;  %v1021_v6 = vld [vmem:[%s1197_s7 + $0x70] sm:$0xff]   ;;  %vm401_vm0 = vcmask 523264   ;;  %vm321_vm1 = vcmask 1045504  }
  0x22   : > { %405 = vmatprep.subr.bf16.mxu0 %v1117_v2  ;;  %527 = vmatprep.subr.bf16.mxu1 %v1117_v2  ;;  %v1018_v3 = vld [vmem:[%s1197_s7] sm:$0xff]   ;;  %v1020_v5 = vld [vmem:[%s1197_s7 + $0x8] sm:$0xff]   ;;  %v1022_v7 = vld [vmem:[%s1197_s7 + $0x10] sm:$0xff]   ;;  %p954_p11 = scmp.ne.s32.totalorder %s1091_s12, 2 }
  0x23   : > { %406 = vmatpush1.bf16.msra.mxu0 %v1017_v1  ;;  %528 = vmatpush1.bf16.msra.mxu1 %v1018_v3  ;;  %v1023_v8 = vld [vmem:[%s1197_s7 + $0x78] sm:$0xff]   ;;  %v1025_v10 = vld [vmem:[%s1197_s7 + $0x80] sm:$0xff]   ;;  %v1027_v12 = vld [vmem:[%s1197_s7 + $0x88] sm:$0xff]  }
  0x24   : > { %407 = vmatprep.subr.bf16.mxu0 %v1117_v2  ;;  %529 = vmatprep.subr.bf16.mxu1 %v1117_v2  ;;  %v1024_v9 = vld [vmem:[%s1197_s7 + $0x18] sm:$0xff]   ;;  %v1026_v11 = vld [vmem:[%s1197_s7 + $0x20] sm:$0xff]   ;;  %v1028_v13 = vld [vmem:[%s1197_s7 + $0x28] sm:$0xff]  }
  0x25   : > { %v1029_v14 = vld [vmem:[%s1197_s7 + $0x90] sm:$0xff]   ;;  %v1240_v16 = vld [vmem:[%s1192_s4 + $0x8] sm:$0xff]  ;;  %v281_v17 = vld [vmem:[%s1192_s4] sm:$0xcc] }
  0x26   : > { %v1030_v15 = vld [vmem:[%s1197_s7 + $0x30] sm:$0xff]   ;;  %v884_v19 = vcombine.high %v281_v17, %v1240_v16  ;;  %v255_v21 = vld [vmem:[%s1192_s4] sm:$0xff]  ;;  %v1031_v22 = vld [vmem:[%s1197_s7 + $0x98] sm:$0xff]   ;;  %v883_v33 = vcombine.low %v281_v17, %v1240_v16 }
  0x27   : > { %408 = vmatpush1.bf16.msra.mxu0 %v1019_v4  ;;  %530 = vmatpush1.bf16.msra.mxu1 %v1020_v5  ;;  %v282_v18 = vld [vmem:[%s1192_s4 + $0x10] sm:$0x33]  ;;  %v901_v23 = vcombine.high %v255_v21, %v1240_v16  ;;  %v1032_v24 = vld [vmem:[%s1197_s7 + $0x38] sm:$0xff]   ;;  %v1033_v28 = vld [vmem:[%s1197_s7 + $0xa0] sm:$0xff]   ;;  %v900_v41 = vcombine.low %v255_v21, %v1240_v16 }
  0x28   : > { %409 = vmatprep.subr.bf16.mxu0 %v1117_v2  ;;  %531 = vmatprep.subr.bf16.mxu1 %v1117_v2  ;;  %v886_v20 = vcombine.high %v282_v18, %v282_v18  ;;  %v325_v25 = vrot.slane %v884_v19, 2  ;;  %v1034_v29 = vld [vmem:[%s1197_s7 + $0x40] sm:$0xff]   ;;  %v1035_v30 = vld [vmem:[%s1197_s7 + $0xa8] sm:$0xff]   ;;  %v1037_v32 = vld [vmem:[%s1197_s7 + $0xb0] sm:$0xff]   ;;  %v885_v34 = vcombine.low %v282_v18, %v282_v18  ;;  %v322_v37 = vrot.slane %v883_v33, 2 }
  0x29   : > { %914 = vmatprep.mubr.msk.bf16.mxu1 %vm401_vm0, %v901_v23  ;;  %v1036_v31 = vld [vmem:[%s1197_s7 + $0x48] sm:$0xff]   ;;  %v1038_v35 = vld [vmem:[%s1197_s7 + $0x50] sm:$0xff]   ;;  %v1039_v36 = vld [vmem:[%s1197_s7 + $0xb8] sm:$0xff]  }
  0x2a   : > { %v326_v26 = vrot.slane %v886_v20, 2  ;;  %v323_v38 = vrot.slane %v885_v34, 2  ;;  %v1040_v39 = vld [vmem:[%s1197_s7 + $0x58] sm:$0xff]   ;;  %v568_v40 = vld [vmem:[%s1192_s4 + $0x10] sm:$0xff]  ;;  %v1047_v43 = vld [vmem:[%s1197_s7 + $0xc0] sm:$0xff]  }
  0x2b   : > { %410 = vmatpush1.bf16.msra.mxu0 %v1021_v6  ;;  %532 = vmatpush1.bf16.msra.mxu1 %v1022_v7  ;;  %v940_v44 = vcombine.high %v1240_v16, %v568_v40  ;;  %v1048_v45 = vld [vmem:[%s1197_s7 + $0xc8] sm:$0xff]   ;;  %v1049_v46 = vld [vmem:[%s1197_s7 + $0xd0] sm:$0xff]   ;;  %v1050_v47 = vld [vmem:[%s1197_s7 + $0xd8] sm:$0xff]   ;;  %v939_v56 = vcombine.low %v1240_v16, %v568_v40 }
  0x2c   : > { %411 = vmatprep.subr.bf16.mxu0 %v1117_v2  ;;  %533 = vmatprep.subr.bf16.mxu1 %v1117_v2  ;;  %v327_v27 = vsel %vm321_vm1, %v325_v25, %v326_v26  ;;  %v324_v42 = vsel %vm321_vm1, %v322_v37, %v323_v38  ;;  %v1051_v48 = vld [vmem:[%s1197_s7 + $0xe0] sm:$0xff]   ;;  %v1052_v49 = vld [vmem:[%s1197_s7 + $0xe8] sm:$0xff]   ;;  %v1053_v50 = vld [vmem:[%s1197_s7 + $0xf0] sm:$0xff]  }
  0x2d   : > { %899 = vmatprep.mubr.msk.bf16.mxu0 %vm401_vm0, %v327_v27  ;;  %v1054_v51 = vld [vmem:[%s1197_s7 + $0xf8] sm:$0xff]   ;;  %v1055_v52 = vld [vmem:[%s1197_s7 + $0x100] sm:$0xff]   ;;  %v1056_v53 = vld [vmem:[%s1197_s7 + $0x108] sm:$0xff]  }
  0x2e   : > { %v1057_v54 = vld [vmem:[%s1197_s7 + $0x110] sm:$0xff]   ;;  %v1058_v55 = vld [vmem:[%s1197_s7 + $0x118] sm:$0xff]   ;;  %v718_v5 = vld [vmem:[%s1203_s24] sm:$0xff] }
  0x2f   : > { %412 = vmatpush1.bf16.msra.mxu0 %v1023_v8  ;;  %534 = vmatpush1.bf16.msra.mxu1 %v1024_v9  ;;  %v719_v8 = vld [vmem:[%s1203_s24 + $0x8] sm:$0xff] }
  0x30   : > { %413 = vmatprep.subr.bf16.mxu0 %v1117_v2  ;;  %535 = vmatprep.subr.bf16.mxu1 %v1117_v2 }
  0x33   : > { %414 = vmatpush1.bf16.msra.mxu0 %v1025_v10  ;;  %536 = vmatpush1.bf16.msra.mxu1 %v1026_v11 }
  0x34   : > { %415 = vmatprep.subr.bf16.mxu0 %v1117_v2  ;;  %537 = vmatprep.subr.bf16.mxu1 %v1117_v2 }
  0x37   : > { %416 = vmatpush1.bf16.msra.mxu0 %v1027_v12  ;;  %538 = vmatpush1.bf16.msra.mxu1 %v1028_v13 }
  0x38   : > { %417 = vmatprep.subr.bf16.mxu0 %v1117_v2  ;;  %539 = vmatprep.subr.bf16.mxu1 %v1117_v2 }
  0x3b   : > { %418 = vmatpush1.bf16.msra.mxu0 %v1029_v14  ;;  %540 = vmatpush1.bf16.msra.mxu1 %v1030_v15 }
  0x3c   : > { %419 = vmatprep.subr.bf16.mxu0 %v1117_v2  ;;  %541 = vmatprep.subr.bf16.mxu1 %v1117_v2 }
  0x3f   : > { %420 = vmatpush1.bf16.msra.mxu0 %v1031_v22  ;;  %542 = vmatpush1.bf16.msra.mxu1 %v1032_v24 }
  0x40   : > { %421 = vmatprep.subr.bf16.mxu0 %v1117_v2  ;;  %543 = vmatprep.subr.bf16.mxu1 %v1117_v2 }
  0x43   : > { %422 = vmatpush1.bf16.msra.mxu0 %v1033_v28  ;;  %544 = vmatpush1.bf16.msra.mxu1 %v1034_v29 }
  0x44   : > { %423 = vmatprep.subr.bf16.mxu0 %v1117_v2  ;;  %545 = vmatprep.subr.bf16.mxu1 %v1117_v2 }
  0x47   : > { %424 = vmatpush1.bf16.msra.mxu0 %v1035_v30  ;;  %546 = vmatpush1.bf16.msra.mxu1 %v1036_v31 }
  0x48   : > { %425 = vmatprep.subr.bf16.mxu0 %v1117_v2  ;;  %547 = vmatprep.subr.bf16.mxu1 %v1117_v2 }
  0x4b   : > { %426 = vmatpush1.bf16.msra.mxu0 %v1037_v32  ;;  %548 = vmatpush1.bf16.msra.mxu1 %v1038_v35 }
  0x4c   : > { %427 = vmatprep.subr.bf16.mxu0 %v1117_v2  ;;  %549 = vmatprep.subr.bf16.mxu1 %v1117_v2 }
  0x4f   : > { %428 = vmatpush1.bf16.msra.mxu0 %v1039_v36  ;;  %550 = vmatpush1.bf16.msra.mxu1 %v1040_v39 }
  0x50   : > { %675 = vmatprep.subr.bf16.mxu0 %v1117_v2 }
  0x52   : > { %438 = vmatmul.mubr.bf16.vlgmr.msra.gmra.mrb[0].mxu0 %v324_v42  ;;  %560 = vmatmul.mubr.bf16.vlgmr.msra.gmra.mrb[0].mxu1 %v900_v41 }
  0x53   : > { %676 = vmatpush1.bf16.msra.mxu0 %v1047_v43  ;;  %953 = vmatprep.mubr.msk.bf16.mxu0 %vm401_vm0, %v940_v44 }
  0x54   : > { %677 = vmatprep.subr.bf16.mxu0 %v1117_v2 }
  0x57   : > { %678 = vmatpush1.bf16.msra.mxu0 %v1048_v45 }
  0x58   : > { %679 = vmatprep.subr.bf16.mxu0 %v1117_v2 }
  0x5b   : > { %680 = vmatpush1.bf16.msra.mxu0 %v1049_v46 }
  0x5c   : > { %681 = vmatprep.subr.bf16.mxu0 %v1117_v2 }
  0x5f   : > { %682 = vmatpush1.bf16.msra.mxu0 %v1050_v47 }
  0x60   : > { %683 = vmatprep.subr.bf16.mxu0 %v1117_v2 }
  0x63   : > { %684 = vmatpush1.bf16.msra.mxu0 %v1051_v48 }
  0x64   : > { %685 = vmatprep.subr.bf16.mxu0 %v1117_v2 }
  0x67   : > { %686 = vmatpush1.bf16.msra.mxu0 %v1052_v49 }
  0x68   : > { %687 = vmatprep.subr.bf16.mxu0 %v1117_v2 }
  0x6b   : > { %688 = vmatpush1.bf16.msra.mxu0 %v1053_v50 }
  0x6c   : > { %689 = vmatprep.subr.bf16.mxu0 %v1117_v2 }
  0x6f   : > { %690 = vmatpush1.bf16.msra.mxu0 %v1054_v51 }
  0x70   : > { %691 = vmatprep.subr.bf16.mxu0 %v1117_v2 }
  0x73   : > { %692 = vmatpush1.bf16.msra.mxu0 %v1055_v52 }
  0x74   : > { %693 = vmatprep.subr.bf16.mxu0 %v1117_v2 }
  0x77   : > { %694 = vmatpush1.bf16.msra.mxu0 %v1056_v53 }
  0x78   : > { %695 = vmatprep.subr.bf16.mxu0 %v1117_v2 }
  0x7b   : > { %696 = vmatpush1.bf16.msra.mxu0 %v1057_v54 }
  0x7c   : > { %697 = vmatprep.subr.bf16.mxu0 %v1117_v2 }
  0x7f   : > { %698 = vmatpush1.bf16.msra.mxu0 %v1058_v55 }
  0x82   : > { %708 = vmatmul.mubr.bf16.vlgmr.msra.gmra.mrb[4].mxu0 %v939_v56 }
 0x125   : > { %v439_v57 = vpop.f32.mrb[0].mxu0  ;;  %v561_v58 = vpop.f32.mrb[0].mxu1 }
 0x126   : > { %v441_v59 = vpop.f32.mrb[1].mxu0  ;;  %v562_v60 = vadd.f32 %v561_v58, %v439_v57  ;;  %v563_v61 = vpop.f32.mrb[1].mxu1 }
 0x127   : > { %v442_v62 = vpop.f32.mrb[2].mxu0  ;;  %v564_v63 = vpop.f32.mrb[2].mxu1 }
 0x128   : > { %v444_v0 = vpop.f32.mrb[3].mxu0  ;;  %v565_v1 = vadd.f32 %v564_v63, %v442_v62  ;;  %v566_v3 = vpop.f32.mrb[3].mxu1 }
 0x155   : > { %v709_v4 = vpop.f32.mrb[4].mxu0 }
 0x156   : > { %v716_v2 = vadd.f32 %v709_v4, %v562_v60  ;;  %v711_v6 = vpop.f32.mrb[5].mxu0  ;;  %727 = sbr.rel (%p954_p11) target bundleno = 359 (0x167), region = 40 }
 0x157   : > { %v712_v7 = vpop.f32.mrb[6].mxu0 }
 0x158   : > { %v720_v9 = vadd.f32 %v718_v5, %v716_v2  ;;  %v717_v10 = vadd.f32 %v712_v7, %v565_v1  ;;  %v714_v11 = vpop.f32.mrb[7].mxu0 }
 0x15a   : > { %722 = vst [vmem:[%s1203_s24] sm:$0xff] %v720_v9  ;;  %v721_v12 = vadd.f32 %v719_v8, %v717_v10 }
 0x15c   : > { %723 = vst [vmem:[%s1203_s24 + $0x8] sm:$0xff] %v721_v12 }
 0x161   : > { %v728_v13 = vld [vmem:[%s1203_s24] sm:$0xff] }
 0x162   : > { %v730_v15 = vmax.f32 %v728_v13, 0.0 }
 0x163   : > { %v729_v14 = vld [vmem:[%s1203_s24 + $0x8] sm:$0xff] }
 0x164   : > { %v731_v16 = vmax.f32 %v729_v14, 0.0  ;;  %732 = vst [vmem:[%s1203_s24] sm:$0xff] %v730_v15 }
 0x166   : > { %733 = vst [vmem:[%s1203_s24 + $0x8] sm:$0xff] %v731_v16 }
 0x167 PF: > { %s13_s18 = sadd.s32 1, %s1115_s18   ;;  %s1335_s12 = smov %s1103_s15 }
 0x168   : > { %p10_p12 = scmp.ge.s32.totalorder %s13_s18, 26   ;;  %s1336_s13 = smov %s1107_s16 }
 0x169   : > { %s1337_s14 = smov %s1111_s17  ;;  %s1338_s15 = smov %s1342_s19 }
 0x16a   : > { %s1339_s16 = smov %s1346_s20  ;;  %s1340_s17 = smov %s1350_s21 }
 0x16b   :  { %12 = sbr.rel (!%p10_p12) target bundleno = 4 (0x4), region = 75 }

// kernel: simple_unet_forward.10
= control target key start
LH: loop header
LB: loop body
LE: loop exit
PB: predicated region body
PF: predicated region fallthrough
CT: control target
= control target key end

     0   :  { %s2184_s12 = smov 0   ;;  %s2186_s13 = smov 0   ;;  %s2447_s0 = inlined_call_operand.vmem [shape: bf16[2,4,8,384], index: 0, kind: input, shape index: {}]   ;;  %s2448_s1 = inlined_call_operand.vmem [shape: bf16[3,3,384,256], index: 1, kind: input, shape index: {}]   ;;  %s2449_s2 = inlined_call_operand.vmem [shape: f32[1,256], index: 2, kind: input, shape index: {}]   ;;  %s2450_s3 = inlined_call_operand.vmem [shape: f32[2,2,4,256], index: 3, kind: output, shape index: {}]  }
   0x1   :  { %s2188_s14 = smov 0   ;;  %s2190_s15 = smov 0  }
   0x2   :  { %s2192_s16 = smov 0   ;;  %s2194_s17 = smov 0  }
   0x3   :  { %s2196_s18 = smov 0  }
   0x4 LB: > { %s25_s19 = sadd.s32 1, %s2149_s15  ;;  %s28_s20 = sadd.s32 1, %s2153_s16  ;;  %s2161_s18 = sphi %s2196_s18, %s13_s18   ;;  %s2157_s17 = sphi %s2194_s17, %s2456_s17   ;;  %s2153_s16 = sphi %s2192_s16, %s2455_s16   ;;  %s2149_s15 = sphi %s2190_s15, %s2454_s15   ;;  %s2145_s14 = sphi %s2188_s14, %s2453_s14   ;;  %s2141_s13 = sphi %s2186_s13, %s2452_s13   ;;  %s2137_s12 = sphi %s2184_s12, %s2451_s12  }
   0x5   : > { %p26_p0 = scmp.ge.s32.totalorder %s25_s19, 3  ;;  %p1549_p1 = scmp.ge.s32.totalorder %s2161_s18, 1 }
   0x6   : > { %p178_p2 = scmp.lt.s32.totalorder %s2161_s18, 13  ;;  %s32_s21 = sadd.s32 1, %s2157_s17 }
   0x7   : > { %s2458_s19 = smov (%p26_p0, %s25_s19), 0  ;;  %s2460_s20 = smov (!%p26_p0, %s28_s20), %s2153_s16 }
   0x8   : > { %p179_p3 = pnand %p1549_p1, %p178_p2  ;;  %p30_p4 = scmp.ge.s32.totalorder %s2460_s20, 2 }
   0x9   : > { %s216_s22 = sadd.s32 (!%p179_p3), %s2137_s12, %s2141_s13  ;;  %p217_p6 = scmp.lt.s32.totalorder (!%p179_p3), %s2145_s14, 1 }
   0xa   : > { %s2462_s20 = smov (%p30_p4, %s2460_s20), 0  ;;  %s2464_s21 = smov (!%p30_p4, %s32_s21), %s2157_s17 }
   0xb   : > { %p34_p5 = scmp.ge.s32.totalorder %s2464_s21, 2  ;;  %182 = sbr.rel (%p179_p3) target bundleno = 425 (0x1a9), region = 32 }
   0xc   : > { %p219_p7 = scmp.lt.s32.totalorder (!%p179_p3), %s216_s22, 3  ;;  %p227_p8 = scmp.lt.s32.totalorder (!%p179_p3), %s2137_s12, 2 }
   0xd   : > { %s2466_s21 = smov (%p34_p5, %s2464_s21), 0  ;;  %p234_p9 = scmp.lt.s32.totalorder (!%p179_p3), %s2141_s13, 1 }
   0xe   : > { %p1555_p10 = scmp.ne.s32.totalorder (!%p179_p3), %s2137_s12, 0 }
  0x12   : > { %s2468_s14 = smov (!%p217_p6, %s2145_s14), 1  ;;  %s2470_s22 = smov (!%p219_p7, %s216_s22), 3 }
  0x13   : > { %s1823_s23 = smul.u32 12, %s2468_s14  ;;  %s1553_s8 = sshll.u32 %s2468_s14, 2  ;;  %v248_v0 = vlaneseq (!%p1555_p10)  ;;  %v246_v2 = vld [vmem:[%s2449_s2] sm:$0x3] (!%p1555_p10) }
  0x14   : > { %s1822_s24 = smul.u32 3, %s2470_s22  ;;  %s2472_s13 = smov (!%p234_p9, %s2141_s13), 1 }
  0x15   : > { %s228_s25 = scalar_select %p227_p8, %s2137_s12, 2 }
  0x16   : > { %s223_s26 = sadd.s32 %s1823_s23, %s1822_s24  ;;  %s1552_s9 = sshll.u32 %s2472_s13, 1  ;;  %v249_v1 = vshrl.u32 (!%p1555_p10), %v248_v0, 7 }
  0x17   : > { %s1550_s27 = sshll.u32 %s223_s26, 2  ;;  %s1824_s28 = smul.u32 1152, %s228_s25 }
  0x18   : > { %s2238_s4 = scalar_lea.vmem %s2447_s0, %s1550_s27  ;;  %s238_s10 = sadd.s32 %s1553_s8, %s1552_s9  ;;  %v250_v3 = vsub.s32 (!%p1555_p10), 0, %v249_v1  ;;  %v254_v4 = vsub.s32 (!%p1555_p10), 1, %v249_v1 }
  0x19   : > { %s2243_s7 = scalar_lea.vmem %s2448_s1, %s1824_s28  ;;  %s1554_s11 = sshll.u32 %s238_s10, 2 }
  0x1a   : > { %s2249_s24 = scalar_lea.vmem %s2450_s3, %s1554_s11  ;;  %245 = sbr.rel (%p1555_p10) target bundleno = 33 (0x21), region = 36  ;;  %v251_v5 = vrot.slane (!%p1555_p10), %v246_v2, %v250_v3  ;;  %v255_v6 = vrot.slane (!%p1555_p10), %v246_v2, %v254_v4 }
  0x1c   : > { %v256_v7 = vcombine.low (!%p1555_p10), %v251_v5, %v255_v6 }
  0x1e   : > { %258 = vst [vmem:[%s2249_s24] sm:$0xff] (!%p1555_p10), %v256_v7 }
  0x21 PF: > { %v1882_v8 = vld [vmem:[%s2243_s7 + $0x184] ss:$8 sps:$4 sm:$0xff]   ;;  %v2163_v10 = vmov 0   ;;  %v1886_v11 = vld [vmem:[%s2243_s7 + $0x180] ss:$8 sps:$4 sm:$0xff]   ;;  %p1805_p11 = scmp.ne.s32.totalorder %s2137_s12, 2 }
  0x22   : > { %v1884_v9 = vld [vmem:[%s2243_s7 + $0x284] ss:$8 sps:$4 sm:$0xff]   ;;  %687 = vmatprep.mubr.bf16.mxu0 %v2163_v10  ;;  %614 = vmatprep.subr.bf16.mxu1 %v1882_v8  ;;  %v1887_v12 = vld [vmem:[%s2243_s7 + $0x280] ss:$8 sps:$4 sm:$0xff]   ;;  %v1888_v13 = vld [vmem:[%s2243_s7 + $0x194] ss:$8 sps:$4 sm:$0xff]  }
  0x23   : > { %655 = vmatprep.subr.bf16.mxu0 %v1884_v9  ;;  %615 = vmatpush1.bf16.msra.mxu1 %v1886_v11  ;;  %v1890_v14 = vld [vmem:[%s2243_s7 + $0x294] ss:$8 sps:$4 sm:$0xff]   ;;  %v1892_v15 = vld [vmem:[%s2243_s7 + $0x190] ss:$8 sps:$4 sm:$0xff]   ;;  %v1894_v17 = vld [vmem:[%s2243_s7 + $0x1a4] ss:$8 sps:$4 sm:$0xff]  }
  0x24   : > { %656 = vmatpush1.bf16.msra.mxu0 %v1887_v12  ;;  %616 = vmatprep.subr.bf16.mxu1 %v1888_v13  ;;  %v1893_v16 = vld [vmem:[%s2243_s7 + $0x290] ss:$8 sps:$4 sm:$0xff]   ;;  %v1896_v18 = vld [vmem:[%s2243_s7 + $0x2a4] ss:$8 sps:$4 sm:$0xff]   ;;  %v1898_v19 = vld [vmem:[%s2243_s7 + $0x1a0] ss:$8 sps:$4 sm:$0xff]  }
  0x25   : > { %657 = vmatprep.subr.bf16.mxu0 %v1890_v14  ;;  %v1899_v20 = vld [vmem:[%s2243_s7 + $0x2a0] ss:$8 sps:$4 sm:$0xff]   ;;  %v1900_v21 = vld [vmem:[%s2243_s7 + $0x1b4] ss:$8 sps:$4 sm:$0xff]   ;;  %v1904_v23 = vld [vmem:[%s2243_s7 + $0x1b0] ss:$8 sps:$4 sm:$0xff]  }
  0x26   : > { %v1902_v22 = vld [vmem:[%s2243_s7 + $0x2b4] ss:$8 sps:$4 sm:$0xff]   ;;  %v1905_v24 = vld [vmem:[%s2243_s7 + $0x2b0] ss:$8 sps:$4 sm:$0xff]   ;;  %v1906_v25 = vld [vmem:[%s2243_s7 + $0x1c4] ss:$8 sps:$4 sm:$0xff]  }
  0x27   : > { %617 = vmatpush1.bf16.msra.mxu1 %v1892_v15  ;;  %v1908_v26 = vld [vmem:[%s2243_s7 + $0x2c4] ss:$8 sps:$4 sm:$0xff]   ;;  %v1910_v27 = vld [vmem:[%s2243_s7 + $0x1c0] ss:$8 sps:$4 sm:$0xff]   ;;  %v1912_v29 = vld [vmem:[%s2243_s7 + $0x1d4] ss:$8 sps:$4 sm:$0xff]  }
  0x28   : > { %658 = vmatpush1.bf16.msra.mxu0 %v1893_v16  ;;  %618 = vmatprep.subr.bf16.mxu1 %v1894_v17  ;;  %v1911_v28 = vld [vmem:[%s2243_s7 + $0x2c0] ss:$8 sps:$4 sm:$0xff]   ;;  %v1914_v30 = vld [vmem:[%s2243_s7 + $0x2d4] ss:$8 sps:$4 sm:$0xff]   ;;  %v1916_v31 = vld [vmem:[%s2243_s7 + $0x1d0] ss:$8 sps:$4 sm:$0xff]  }
  0x29   : > { %659 = vmatprep.subr.bf16.mxu0 %v1896_v18  ;;  %v1917_v32 = vld [vmem:[%s2243_s7 + $0x2d0] ss:$8 sps:$4 sm:$0xff]   ;;  %v1918_v33 = vld [vmem:[%s2243_s7 + $0x1e4] ss:$8 sps:$4 sm:$0xff]   ;;  %v1922_v35 = vld [vmem:[%s2243_s7 + $0x1e0] ss:$8 sps:$4 sm:$0xff]  }
  0x2a   : > { %v1920_v34 = vld [vmem:[%s2243_s7 + $0x2e4] ss:$8 sps:$4 sm:$0xff]   ;;  %v1923_v36 = vld [vmem:[%s2243_s7 + $0x2e0] ss:$8 sps:$4 sm:$0xff]   ;;  %v1924_v37 = vld [vmem:[%s2243_s7 + $0x1f4] ss:$8 sps:$4 sm:$0xff]  }
  0x2b   : > { %619 = vmatpush1.bf16.msra.mxu1 %v1898_v19  ;;  %v1926_v38 = vld [vmem:[%s2243_s7 + $0x2f4] ss:$8 sps:$4 sm:$0xff]   ;;  %v1928_v39 = vld [vmem:[%s2243_s7 + $0x1f0] ss:$8 sps:$4 sm:$0xff]   ;;  %v1930_v42 = vld [vmem:[%s2243_s7 + $0x204] ss:$8 sps:$4 sm:$0xff]  }
  0x2c   : > { %660 = vmatpush1.bf16.msra.mxu0 %v1899_v20  ;;  %620 = vmatprep.subr.bf16.mxu1 %v1900_v21  ;;  %v1932_v40 = vld [vmem:[%s2238_s4 + $0x8] ss:$0 sps:$4 sm:$0x66]   ;;  %v1929_v41 = vld [vmem:[%s2243_s7 + $0x2f0] ss:$8 sps:$4 sm:$0xff]  }
  0x2d   : > { %661 = vmatprep.subr.bf16.mxu0 %v1902_v22  ;;  %v1935_v43 = vld [vmem:[%s2243_s7 + $0x104] ss:$8 sps:$4 sm:$0xff]   ;;  %v370_v44 = vrot.slane %v1932_v40, 1  ;;  %v1933_v45 = vld [vmem:[%s2243_s7 + $0x100] ss:$8 sps:$4 sm:$0xff]  }
  0x2e   : > { %v1936_v46 = vld [vmem:[%s2243_s7 + $0x200] ss:$8 sps:$4 sm:$0xff]   ;;  %v1937_v47 = vld [vmem:[%s2243_s7 + $0x214] ss:$8 sps:$4 sm:$0xff]   ;;  %v1939_v49 = vld [vmem:[%s2243_s7 + $0x110] ss:$8 sps:$4 sm:$0xff]  }
  0x2f   : > { %621 = vmatpush1.bf16.msra.mxu1 %v1904_v23  ;;  %v1941_v48 = vld [vmem:[%s2243_s7 + $0x114] ss:$8 sps:$4 sm:$0xff]   ;;  %v1942_v50 = vld [vmem:[%s2243_s7 + $0x210] ss:$8 sps:$4 sm:$0xff]   ;;  %v1943_v51 = vld [vmem:[%s2243_s7 + $0x224] ss:$8 sps:$4 sm:$0xff]  }
  0x30   : > { %662 = vmatpush1.bf16.msra.mxu0 %v1905_v24  ;;  %622 = vmatprep.subr.bf16.mxu1 %v1906_v25  ;;  %v1947_v52 = vld [vmem:[%s2243_s7 + $0x124] ss:$8 sps:$4 sm:$0xff]   ;;  %v1945_v53 = vld [vmem:[%s2243_s7 + $0x120] ss:$8 sps:$4 sm:$0xff]   ;;  %v1949_v55 = vld [vmem:[%s2243_s7 + $0x234] ss:$8 sps:$4 sm:$0xff]  }
  0x31   : > { %663 = vmatprep.subr.bf16.mxu0 %v1908_v26  ;;  %v1948_v54 = vld [vmem:[%s2243_s7 + $0x220] ss:$8 sps:$4 sm:$0xff]   ;;  %v1953_v56 = vld [vmem:[%s2243_s7 + $0x134] ss:$8 sps:$4 sm:$0xff]   ;;  %v1951_v57 = vld [vmem:[%s2243_s7 + $0x130] ss:$8 sps:$4 sm:$0xff]  }
  0x32   : > { %v309_v58 = vld [vmem:[%s2238_s4] sm:$0x66]  ;;  %v1954_v59 = vld [vmem:[%s2243_s7 + $0x230] ss:$8 sps:$4 sm:$0xff]   ;;  %v1961_v2 = vld [vmem:[%s2243_s7 + $0x254] ss:$8 sps:$4 sm:$0xff]  }
  0x33   : > { %623 = vmatpush1.bf16.msra.mxu1 %v1910_v27  ;;  %v1955_v60 = vld [vmem:[%s2243_s7 + $0x244] ss:$8 sps:$4 sm:$0xff]   ;;  %v1605_v61 = vcombine.high %v309_v58, %v309_v58  ;;  %v1957_v0 = vld [vmem:[%s2243_s7 + $0x140] ss:$8 sps:$4 sm:$0xff]   ;;  %v1965_v3 = vld [vmem:[%s2243_s7 + $0x154] ss:$8 sps:$4 sm:$0xff]   ;;  %v1604_v13 = vcombine.low %v309_v58, %v309_v58 }
  0x34   : > { %664 = vmatpush1.bf16.msra.mxu0 %v1911_v28  ;;  %624 = vmatprep.subr.bf16.mxu1 %v1912_v29  ;;  %v1959_v62 = vld [vmem:[%s2243_s7 + $0x144] ss:$8 sps:$4 sm:$0xff]   ;;  %v1960_v1 = vld [vmem:[%s2243_s7 + $0x240] ss:$8 sps:$4 sm:$0xff]   ;;  %v1963_v4 = vld [vmem:[%s2243_s7 + $0x150] ss:$8 sps:$4 sm:$0xff]  }
  0x35   : > { %665 = vmatprep.subr.bf16.mxu0 %v1914_v30  ;;  %v369_v63 = vrot.slane %v1605_v61, 1  ;;  %v1966_v5 = vld [vmem:[%s2243_s7 + $0x250] ss:$8 sps:$4 sm:$0xff]   ;;  %v1967_v6 = vld [vmem:[%s2243_s7 + $0x264] ss:$8 sps:$4 sm:$0xff]   ;;  %v368_v18 = vrot.slane %v1604_v13, 1 }
  0x36   : > { %v1971_v7 = vld [vmem:[%s2243_s7 + $0x164] ss:$8 sps:$4 sm:$0xff]   ;;  %v1969_v8 = vld [vmem:[%s2243_s7 + $0x160] ss:$8 sps:$4 sm:$0xff]   ;;  %v1973_v11 = vld [vmem:[%s2243_s7 + $0x274] ss:$8 sps:$4 sm:$0xff]  }
  0x37   : > { %625 = vmatpush1.bf16.msra.mxu1 %v1916_v31  ;;  %646 = vmatprep.mubr.bf16.mxu1 %v369_v63  ;;  %v1972_v9 = vld [vmem:[%s2243_s7 + $0x260] ss:$8 sps:$4 sm:$0xff]   ;;  %v1977_v12 = vld [vmem:[%s2243_s7 + $0x174] ss:$8 sps:$4 sm:$0xff]   ;;  %v1975_v14 = vld [vmem:[%s2243_s7 + $0x170] ss:$8 sps:$4 sm:$0xff]  }
  0x38   : > { %666 = vmatpush1.bf16.msra.mxu0 %v1917_v32  ;;  %626 = vmatprep.subr.bf16.mxu1 %v1918_v33  ;;  %v1978_v15 = vld [vmem:[%s2243_s7 + $0x270] ss:$8 sps:$4 sm:$0xff]   ;;  %v1983_v16 = vld [vmem:[%s2243_s7 + $0x4] ss:$8 sps:$4 sm:$0xff]   ;;  %v1981_v20 = vld [vmem:[%s2243_s7] ss:$8 sps:$4 sm:$0xff]  }
  0x39   : > { %667 = vmatprep.subr.bf16.mxu0 %v1920_v34  ;;  %v1986_v17 = vld [vmem:[%s2243_s7 + $0x304] ss:$8 sps:$4 sm:$0xff]   ;;  %v1987_v19 = vld [vmem:[%s2238_s4 + $0x8] ss:$0 sps:$4 sm:$0x33]  }
  0x3a   : > { %v1984_v21 = vld [vmem:[%s2243_s7 + $0x300] ss:$8 sps:$4 sm:$0xff]   ;;  %v1990_v22 = vld [vmem:[%s2243_s7 + $0x14] ss:$8 sps:$4 sm:$0xff]   ;;  %v1988_v24 = vld [vmem:[%s2243_s7 + $0x10] ss:$8 sps:$4 sm:$0xff]  }
  0x3b   : > { %627 = vmatpush1.bf16.msra.mxu1 %v1922_v35  ;;  %v1993_v23 = vld [vmem:[%s2243_s7 + $0x314] ss:$8 sps:$4 sm:$0xff]   ;;  %v1991_v25 = vld [vmem:[%s2243_s7 + $0x310] ss:$8 sps:$4 sm:$0xff]   ;;  %v1996_v26 = vld [vmem:[%s2243_s7 + $0x24] ss:$8 sps:$4 sm:$0xff]  }
  0x3c   : > { %668 = vmatpush1.bf16.msra.mxu0 %v1923_v36  ;;  %628 = vmatprep.subr.bf16.mxu1 %v1924_v37  ;;  %v1999_v27 = vld [vmem:[%s2243_s7 + $0x324] ss:$8 sps:$4 sm:$0xff]   ;;  %v1994_v28 = vld [vmem:[%s2243_s7 + $0x20] ss:$8 sps:$4 sm:$0xff]   ;;  %v2002_v30 = vld [vmem:[%s2243_s7 + $0x34] ss:$8 sps:$4 sm:$0xff]  }
  0x3d   : > { %669 = vmatprep.subr.bf16.mxu0 %v1926_v38  ;;  %v1997_v29 = vld [vmem:[%s2243_s7 + $0x320] ss:$8 sps:$4 sm:$0xff]   ;;  %v2005_v31 = vld [vmem:[%s2243_s7 + $0x334] ss:$8 sps:$4 sm:$0xff]   ;;  %v2000_v32 = vld [vmem:[%s2243_s7 + $0x30] ss:$8 sps:$4 sm:$0xff]  }
  0x3e   : > { %v2003_v33 = vld [vmem:[%s2243_s7 + $0x330] ss:$8 sps:$4 sm:$0xff]   ;;  %v2008_v34 = vld [vmem:[%s2243_s7 + $0x44] ss:$8 sps:$4 sm:$0xff]   ;;  %v2006_v36 = vld [vmem:[%s2243_s7 + $0x40] ss:$8 sps:$4 sm:$0xff]  }
  0x3f   : > { %629 = vmatpush1.bf16.msra.mxu1 %v1928_v39  ;;  %v2011_v35 = vld [vmem:[%s2243_s7 + $0x344] ss:$8 sps:$4 sm:$0xff]   ;;  %v2009_v37 = vld [vmem:[%s2243_s7 + $0x340] ss:$8 sps:$4 sm:$0xff]   ;;  %v2014_v38 = vld [vmem:[%s2243_s7 + $0x54] ss:$8 sps:$4 sm:$0xff]  }
  0x40   : > { %670 = vmatpush1.bf16.msra.mxu0 %v1929_v41  ;;  %630 = vmatprep.subr.bf16.mxu1 %v1930_v42  ;;  %v2017_v39 = vld [vmem:[%s2243_s7 + $0x354] ss:$8 sps:$4 sm:$0xff]   ;;  %v2012_v40 = vld [vmem:[%s2243_s7 + $0x50] ss:$8 sps:$4 sm:$0xff]   ;;  %v2020_v42 = vld [vmem:[%s2243_s7 + $0x64] ss:$8 sps:$4 sm:$0xff]  }
  0x41   : > { %988 = vmatprep.subr.bf16.mxu0 %v1935_v43  ;;  %v2015_v41 = vld [vmem:[%s2243_s7 + $0x350] ss:$8 sps:$4 sm:$0xff]   ;;  %v2023_v43 = vld [vmem:[%s2243_s7 + $0x364] ss:$8 sps:$4 sm:$0xff]   ;;  %v2033_v58 = vld [vmem:[%s2243_s7 + $0x380] ss:$8 sps:$4 sm:$0xff]  }
  0x42   : > { %v2036_v61 = vld [vmem:[%s2243_s7 + $0x90] ss:$8 sps:$4 sm:$0xff]   ;;  %v2044_v63 = vld [vmem:[%s2243_s7 + $0xa4] ss:$8 sps:$4 sm:$0xff]   ;;  %v2065_v13 = vld [vmem:[%s2243_s7 + $0x3d4] ss:$8 sps:$4 sm:$0xff]  }
  0x43   : > { %688 = vmatmul.mubr.bf16.vlgmr.msra.gmra.mrb[0].mxu0 %v370_v44  ;;  %631 = vmatpush1.bf16.msra.mxu1 %v1936_v46  ;;  %v2018_v44 = vld [vmem:[%s2243_s7 + $0x60] ss:$8 sps:$4 sm:$0xff]  }
  0x44   : > { %989 = vmatpush1.bf16.msra.mxu0 %v1933_v45  ;;  %632 = vmatprep.subr.bf16.mxu1 %v1937_v47  ;;  %v2021_v45 = vld [vmem:[%s2243_s7 + $0x360] ss:$8 sps:$4 sm:$0xff]  }
  0x45   : > { %990 = vmatprep.subr.bf16.mxu0 %v1941_v48  ;;  %1020 = vmatprep.mubr.bf16.mxu0 %v2163_v10  ;;  %v2354_v46 = vld [vmem:[%s2238_s4] sm:$0x33]  ;;  %v2357_v47 = vld [vmem:[%s2238_s4] sm:$0xcc]  ;;  %v2026_v48 = vld [vmem:[%s2243_s7 + $0x74] ss:$8 sps:$4 sm:$0xff]  }
  0x47   : > { %633 = vmatpush1.bf16.msra.mxu1 %v1942_v50  ;;  %v2029_v50 = vld [vmem:[%s2243_s7 + $0x374] ss:$8 sps:$4 sm:$0xff]  }
  0x48   : > { %991 = vmatpush1.bf16.msra.mxu0 %v1939_v49  ;;  %634 = vmatprep.subr.bf16.mxu1 %v1943_v51  ;;  %v1656_v49 = vcombine.high %v2354_v46, %v2354_v46  ;;  %v1755_v51 = vcombine.high %v2357_v47, %v2357_v47 }
  0x49   : > { %992 = vmatprep.subr.bf16.mxu0 %v1947_v52  ;;  %v2024_v52 = vld [vmem:[%s2243_s7 + $0x70] ss:$8 sps:$4 sm:$0xff]  }
  0x4b   : > { %635 = vmatpush1.bf16.msra.mxu1 %v1948_v54  ;;  %v1089_v54 = vrot.slane %v1755_v51, 2 }
  0x4c   : > { %993 = vmatpush1.bf16.msra.mxu0 %v1945_v53  ;;  %636 = vmatprep.subr.bf16.mxu1 %v1949_v55  ;;  %v2027_v53 = vld [vmem:[%s2243_s7 + $0x370] ss:$8 sps:$4 sm:$0xff]   ;;  %v2032_v55 = vld [vmem:[%s2243_s7 + $0x84] ss:$8 sps:$4 sm:$0xff]  }
  0x4d   : > { %994 = vmatprep.subr.bf16.mxu0 %v1953_v56  ;;  %v2035_v56 = vld [vmem:[%s2243_s7 + $0x384] ss:$8 sps:$4 sm:$0xff]  }
  0x4f   : > { %637 = vmatpush1.bf16.msra.mxu1 %v1954_v59  ;;  %v2038_v59 = vld [vmem:[%s2243_s7 + $0x94] ss:$8 sps:$4 sm:$0xff]  }
  0x50   : > { %995 = vmatpush1.bf16.msra.mxu0 %v1951_v57  ;;  %638 = vmatprep.subr.bf16.mxu1 %v1955_v60  ;;  %v2030_v57 = vld [vmem:[%s2243_s7 + $0x80] ss:$8 sps:$4 sm:$0xff]   ;;  %v2041_v60 = vld [vmem:[%s2243_s7 + $0x394] ss:$8 sps:$4 sm:$0xff]  }
  0x51   : > { %996 = vmatprep.subr.bf16.mxu0 %v1959_v62  ;;  %v2039_v62 = vld [vmem:[%s2243_s7 + $0x390] ss:$8 sps:$4 sm:$0xff]  }
  0x53   : > { %639 = vmatpush1.bf16.msra.mxu1 %v1960_v1  ;;  %v2042_v1 = vld [vmem:[%s2243_s7 + $0xa0] ss:$8 sps:$4 sm:$0xff]  }
  0x54   : > { %997 = vmatpush1.bf16.msra.mxu0 %v1957_v0  ;;  %640 = vmatprep.subr.bf16.mxu1 %v1961_v2  ;;  %v2047_v0 = vld [vmem:[%s2243_s7 + $0x3a4] ss:$8 sps:$4 sm:$0xff]   ;;  %v2045_v2 = vld [vmem:[%s2243_s7 + $0x3a0] ss:$8 sps:$4 sm:$0xff]  }
  0x55   : > { %998 = vmatprep.subr.bf16.mxu0 %v1965_v3  ;;  %v2050_v3 = vld [vmem:[%s2243_s7 + $0xb4] ss:$8 sps:$4 sm:$0xff]  }
  0x57   : > { %641 = vmatpush1.bf16.msra.mxu1 %v1966_v5  ;;  %v2048_v5 = vld [vmem:[%s2243_s7 + $0xb0] ss:$8 sps:$4 sm:$0xff]  }
  0x58   : > { %999 = vmatpush1.bf16.msra.mxu0 %v1963_v4  ;;  %642 = vmatprep.subr.bf16.mxu1 %v1967_v6  ;;  %v2053_v4 = vld [vmem:[%s2243_s7 + $0x3b4] ss:$8 sps:$4 sm:$0xff]   ;;  %v2051_v6 = vld [vmem:[%s2243_s7 + $0x3b0] ss:$8 sps:$4 sm:$0xff]  }
  0x59   : > { %1000 = vmatprep.subr.bf16.mxu0 %v1971_v7  ;;  %v2056_v7 = vld [vmem:[%s2243_s7 + $0xc4] ss:$8 sps:$4 sm:$0xff]  }
  0x5b   : > { %643 = vmatpush1.bf16.msra.mxu1 %v1972_v9  ;;  %v2054_v9 = vld [vmem:[%s2243_s7 + $0xc0] ss:$8 sps:$4 sm:$0xff]  }
  0x5c   : > { %1001 = vmatpush1.bf16.msra.mxu0 %v1969_v8  ;;  %644 = vmatprep.subr.bf16.mxu1 %v1973_v11  ;;  %v2059_v8 = vld [vmem:[%s2243_s7 + $0x3c4] ss:$8 sps:$4 sm:$0xff]   ;;  %v2057_v11 = vld [vmem:[%s2243_s7 + $0x3c0] ss:$8 sps:$4 sm:$0xff]  }
  0x5d   : > { %1002 = vmatprep.subr.bf16.mxu0 %v1977_v12  ;;  %v2062_v12 = vld [vmem:[%s2243_s7 + $0xd4] ss:$8 sps:$4 sm:$0xff]  }
  0x5f   : > { %645 = vmatpush1.bf16.msra.mxu1 %v1978_v15  ;;  %v2063_v15 = vld [vmem:[%s2243_s7 + $0x3d0] ss:$8 sps:$4 sm:$0xff]  }
  0x60   : > { %1003 = vmatpush1.bf16.msra.mxu0 %v1975_v14  ;;  %947 = vmatprep.subr.bf16.mxu1 %v1983_v16  ;;  %v2060_v14 = vld [vmem:[%s2243_s7 + $0xd0] ss:$8 sps:$4 sm:$0xff]   ;;  %v2068_v16 = vld [vmem:[%s2243_s7 + $0xe4] ss:$8 sps:$4 sm:$0xff]  }
  0x61   : > { %1334 = vmatprep.subr.bf16.mxu0 %v1986_v17  ;;  %v2071_v17 = vld [vmem:[%s2243_s7 + $0x3e4] ss:$8 sps:$4 sm:$0xff]  }
  0x62   : > { %647 = vmatmul.mubr.bf16.vlgmr.msra.gmra.mrb[0].mxu1 %v368_v18  ;;  %v2066_v18 = vld [vmem:[%s2243_s7 + $0xe0] ss:$8 sps:$4 sm:$0xff]  }
  0x63   : > { %1021 = vmatmul.mubr.bf16.vlgmr.msra.gmra.mrb[4].mxu0 %v1987_v19  ;;  %948 = vmatpush1.bf16.msra.mxu1 %v1981_v20  ;;  %v2069_v19 = vld [vmem:[%s2243_s7 + $0x3e0] ss:$8 sps:$4 sm:$0xff]   ;;  %v2074_v20 = vld [vmem:[%s2243_s7 + $0xf4] ss:$8 sps:$4 sm:$0xff]  }
  0x64   : > { %1335 = vmatpush1.bf16.msra.mxu0 %v1984_v21  ;;  %949 = vmatprep.subr.bf16.mxu1 %v1990_v22  ;;  %v2077_v21 = vld [vmem:[%s2243_s7 + $0x3f4] ss:$8 sps:$4 sm:$0xff]   ;;  %v1754_v22 = vcombine.low %v2357_v47, %v2357_v47 }
  0x65   : > { %1336 = vmatprep.subr.bf16.mxu0 %v1993_v23  ;;  %979 = vmatprep.mubr.bf16.mxu1 %v1656_v49  ;;  %v2072_v23 = vld [vmem:[%s2243_s7 + $0xf0] ss:$8 sps:$4 sm:$0xff]  }
  0x66   : > { %1366 = vmatprep.mubr.bf16.mxu0 %v1089_v54 }
  0x67   : > { %950 = vmatpush1.bf16.msra.mxu1 %v1988_v24  ;;  %v2075_v24 = vld [vmem:[%s2243_s7 + $0x3f0] ss:$8 sps:$4 sm:$0xff]  }
  0x68   : > { %1337 = vmatpush1.bf16.msra.mxu0 %v1991_v25  ;;  %951 = vmatprep.subr.bf16.mxu1 %v1996_v26  ;;  %v2084_v25 = vld [vmem:[%s2243_s7 + $0x404] ss:$8 sps:$4 sm:$0xff]   ;;  %v1655_v26 = vcombine.low %v2354_v46, %v2354_v46 }
  0x69   : > { %1338 = vmatprep.subr.bf16.mxu0 %v1999_v27  ;;  %v1088_v27 = vrot.slane %v1754_v22, 2 }
  0x6b   : > { %952 = vmatpush1.bf16.msra.mxu1 %v1994_v28  ;;  %v2082_v28 = vld [vmem:[%s2243_s7 + $0x400] ss:$8 sps:$4 sm:$0xff]  }
  0x6c   : > { %1339 = vmatpush1.bf16.msra.mxu0 %v1997_v29  ;;  %953 = vmatprep.subr.bf16.mxu1 %v2002_v30  ;;  %v2087_v29 = vld [vmem:[%s2243_s7 + $0x414] ss:$8 sps:$4 sm:$0xff]   ;;  %v2085_v30 = vld [vmem:[%s2243_s7 + $0x410] ss:$8 sps:$4 sm:$0xff]  }
  0x6d   : > { %1340 = vmatprep.subr.bf16.mxu0 %v2005_v31  ;;  %v2090_v31 = vld [vmem:[%s2243_s7 + $0x424] ss:$8 sps:$4 sm:$0xff]  }
  0x6f   : > { %954 = vmatpush1.bf16.msra.mxu1 %v2000_v32  ;;  %v2088_v32 = vld [vmem:[%s2243_s7 + $0x420] ss:$8 sps:$4 sm:$0xff]  }
  0x70   : > { %1341 = vmatpush1.bf16.msra.mxu0 %v2003_v33  ;;  %955 = vmatprep.subr.bf16.mxu1 %v2008_v34  ;;  %v2093_v33 = vld [vmem:[%s2243_s7 + $0x434] ss:$8 sps:$4 sm:$0xff]   ;;  %v2091_v34 = vld [vmem:[%s2243_s7 + $0x430] ss:$8 sps:$4 sm:$0xff]  }
  0x71   : > { %1342 = vmatprep.subr.bf16.mxu0 %v2011_v35  ;;  %v2096_v35 = vld [vmem:[%s2243_s7 + $0x444] ss:$8 sps:$4 sm:$0xff]  }
  0x73   : > { %956 = vmatpush1.bf16.msra.mxu1 %v2006_v36  ;;  %v2094_v36 = vld [vmem:[%s2243_s7 + $0x440] ss:$8 sps:$4 sm:$0xff]  }
  0x74   : > { %1343 = vmatpush1.bf16.msra.mxu0 %v2009_v37  ;;  %957 = vmatprep.subr.bf16.mxu1 %v2014_v38  ;;  %v2097_v37 = vld [vmem:[%s2243_s7 + $0x450] ss:$8 sps:$4 sm:$0xff]   ;;  %v2102_v38 = vld [vmem:[%s2243_s7 + $0x464] ss:$8 sps:$4 sm:$0xff]  }
  0x75   : > { %1344 = vmatprep.subr.bf16.mxu0 %v2017_v39  ;;  %v2100_v39 = vld [vmem:[%s2243_s7 + $0x460] ss:$8 sps:$4 sm:$0xff]  }
  0x77   : > { %958 = vmatpush1.bf16.msra.mxu1 %v2012_v40  ;;  %v2105_v40 = vld [vmem:[%s2243_s7 + $0x474] ss:$8 sps:$4 sm:$0xff]  }
  0x78   : > { %1345 = vmatpush1.bf16.msra.mxu0 %v2015_v41  ;;  %959 = vmatprep.subr.bf16.mxu1 %v2020_v42  ;;  %v2106_v41 = vld [vmem:[%s2238_s4 + $0x8] ss:$0 sps:$4 sm:$0xcc]   ;;  %v2103_v42 = vld [vmem:[%s2243_s7 + $0x470] ss:$8 sps:$4 sm:$0xff]  }
  0x79   : > { %1346 = vmatprep.subr.bf16.mxu0 %v2023_v43  ;;  %v1090_v43 = vrot.slane %v2106_v41, 2 }
  0x7b   : > { %960 = vmatpush1.bf16.msra.mxu1 %v2018_v44 }
  0x7c   : > { %1347 = vmatpush1.bf16.msra.mxu0 %v2021_v45  ;;  %961 = vmatprep.subr.bf16.mxu1 %v2026_v48 }
  0x7d   : > { %1348 = vmatprep.subr.bf16.mxu0 %v2029_v50 }
  0x7f   : > { %962 = vmatpush1.bf16.msra.mxu1 %v2024_v52 }
  0x80   : > { %1349 = vmatpush1.bf16.msra.mxu0 %v2027_v53  ;;  %963 = vmatprep.subr.bf16.mxu1 %v2032_v55 }
  0x81   : > { %1350 = vmatprep.subr.bf16.mxu0 %v2035_v56 }
  0x83   : > { %964 = vmatpush1.bf16.msra.mxu1 %v2030_v57 }
  0x84   : > { %1351 = vmatpush1.bf16.msra.mxu0 %v2033_v58  ;;  %965 = vmatprep.subr.bf16.mxu1 %v2038_v59 }
  0x85   : > { %1352 = vmatprep.subr.bf16.mxu0 %v2041_v60 }
  0x87   : > { %966 = vmatpush1.bf16.msra.mxu1 %v2036_v61 }
  0x88   : > { %1353 = vmatpush1.bf16.msra.mxu0 %v2039_v62  ;;  %967 = vmatprep.subr.bf16.mxu1 %v2044_v63 }
  0x89   : > { %1354 = vmatprep.subr.bf16.mxu0 %v2047_v0 }
  0x8b   : > { %968 = vmatpush1.bf16.msra.mxu1 %v2042_v1  ;;  %v1418_v1 = vld [vmem:[%s2249_s24] sm:$0xff] }
  0x8c   : > { %1355 = vmatpush1.bf16.msra.mxu0 %v2045_v2  ;;  %969 = vmatprep.subr.bf16.mxu1 %v2050_v3 }
  0x8d   : > { %1356 = vmatprep.subr.bf16.mxu0 %v2053_v4 }
  0x8f   : > { %970 = vmatpush1.bf16.msra.mxu1 %v2048_v5 }
  0x90   : > { %1357 = vmatpush1.bf16.msra.mxu0 %v2051_v6  ;;  %971 = vmatprep.subr.bf16.mxu1 %v2056_v7 }
  0x91   : > { %1358 = vmatprep.subr.bf16.mxu0 %v2059_v8 }
  0x93   : > { %972 = vmatpush1.bf16.msra.mxu1 %v2054_v9 }
  0x94   : > { %1359 = vmatpush1.bf16.msra.mxu0 %v2057_v11  ;;  %973 = vmatprep.subr.bf16.mxu1 %v2062_v12 }
  0x95   : > { %1360 = vmatprep.subr.bf16.mxu0 %v2065_v13 }
  0x97   : > { %974 = vmatpush1.bf16.msra.mxu1 %v2060_v14 }
  0x98   : > { %1361 = vmatpush1.bf16.msra.mxu0 %v2063_v15  ;;  %975 = vmatprep.subr.bf16.mxu1 %v2068_v16 }
  0x99   : > { %1362 = vmatprep.subr.bf16.mxu0 %v2071_v17 }
  0x9b   : > { %976 = vmatpush1.bf16.msra.mxu1 %v2066_v18 }
  0x9c   : > { %1363 = vmatpush1.bf16.msra.mxu0 %v2069_v19  ;;  %977 = vmatprep.subr.bf16.mxu1 %v2074_v20 }
  0x9d   : > { %1364 = vmatprep.subr.bf16.mxu0 %v2077_v21 }
  0x9f   : > { %978 = vmatpush1.bf16.msra.mxu1 %v2072_v23 }
  0xa0   : > { %1365 = vmatpush1.bf16.msra.mxu0 %v2075_v24 }
  0xa1   : > { %1375 = vmatprep.subr.bf16.mxu0 %v2084_v25 }
  0xa2   : > { %980 = vmatmul.mubr.bf16.vlgmr.msra.gmra.mrb[4].mxu1 %v1655_v26 }
  0xa3   : > { %1367 = vmatmul.mubr.bf16.vlgmr.msra.gmra.mrb[4].mxu0 %v1088_v27 }
  0xa4   : > { %1376 = vmatpush1.bf16.msra.mxu0 %v2082_v28  ;;  %1407 = vmatprep.mubr.bf16.mxu0 %v2163_v10  ;;  %v2099_v10 = vld [vmem:[%s2243_s7 + $0x454] ss:$8 sps:$4 sm:$0xff]  }
  0xa5   : > { %1377 = vmatprep.subr.bf16.mxu0 %v2087_v29 }
  0xa8   : > { %1378 = vmatpush1.bf16.msra.mxu0 %v2085_v30 }
  0xa9   : > { %1379 = vmatprep.subr.bf16.mxu0 %v2090_v31 }
  0xac   : > { %1380 = vmatpush1.bf16.msra.mxu0 %v2088_v32 }
  0xad   : > { %1381 = vmatprep.subr.bf16.mxu0 %v2093_v33 }
  0xb0   : > { %1382 = vmatpush1.bf16.msra.mxu0 %v2091_v34 }
  0xb1   : > { %1383 = vmatprep.subr.bf16.mxu0 %v2096_v35 }
  0xb4   : > { %1384 = vmatpush1.bf16.msra.mxu0 %v2094_v36 }
  0xb5   : > { %1385 = vmatprep.subr.bf16.mxu0 %v2099_v10 }
  0xb8   : > { %1386 = vmatpush1.bf16.msra.mxu0 %v2097_v37 }
  0xb9   : > { %1387 = vmatprep.subr.bf16.mxu0 %v2102_v38 }
  0xbc   : > { %1388 = vmatpush1.bf16.msra.mxu0 %v2100_v39 }
  0xbd   : > { %1389 = vmatprep.subr.bf16.mxu0 %v2105_v40 }
  0xc0   : > { %1390 = vmatpush1.bf16.msra.mxu0 %v2103_v42 }
  0xc3   : > { %1408 = vmatmul.mubr.bf16.vlgmr.msra.gmra.mrb[4].mxu0 %v1090_v43 }
 0x116   : > { %v689_v44 = vpop.f32.mrb[0].mxu0 }
 0x117   : > { %v691_v45 = vpop.f32.mrb[1].mxu0 }
 0x118   : > { %v693_v46 = vpop.f32.mrb[2].mxu0 }
 0x119   : > { %v694_v47 = vpop.f32.mrb[3].mxu0 }
 0x135   : > { %v648_v48 = vpop.f32.mrb[0].mxu1 }
 0x136   : > { %v690_v49 = vadd.f32 %v689_v44, %v648_v48  ;;  %v650_v50 = vpop.f32.mrb[1].mxu1 }
 0x137   : > { %v692_v51 = vadd.f32 %v691_v45, %v650_v50  ;;  %v652_v52 = vpop.f32.mrb[2].mxu1 }
 0x138   : > { %v653_v53 = vpop.f32.mrb[3].mxu1 }
 0x175   : > { %v981_v54 = vpop.f32.mrb[4].mxu1 }
 0x176   : > { %v982_v55 = vadd.f32 %v981_v54, %v690_v49  ;;  %v983_v56 = vpop.f32.mrb[5].mxu1 }
 0x177   : > { %v984_v57 = vadd.f32 %v983_v56, %v692_v51  ;;  %v985_v58 = vpop.f32.mrb[6].mxu1 }
 0x178   : > { %v986_v59 = vpop.f32.mrb[7].mxu1 }
 0x196   : > { %v1409_v60 = vpop.f32.mrb[4].mxu0 }
 0x197   : > { %v1810_v61 = vadd.f32 %v1409_v60, %v982_v55  ;;  %v1411_v62 = vpop.f32.mrb[5].mxu0 }
 0x198   : > { %v1813_v63 = vadd.f32 %v1411_v62, %v984_v57  ;;  %v1413_v0 = vpop.f32.mrb[6].mxu0  ;;  %1428 = sbr.rel (%p1805_p11) target bundleno = 425 (0x1a9), region = 40 }
 0x199   : > { %v1414_v2 = vpop.f32.mrb[7].mxu0 }
 0x19a   : > { %v1421_v3 = vcombine.low %v1810_v61, %v1813_v63 }
 0x19c   : > { %v1423_v4 = vadd.f32 %v1421_v3, %v1418_v1 }
 0x19e   : > { %1424 = vst [vmem:[%s2249_s24] sm:$0xff] %v1423_v4 }
 0x1a5   : > { %v1429_v5 = vld [vmem:[%s2249_s24] sm:$0xff] }
 0x1a6   : > { %v1430_v6 = vmax.f32 %v1429_v5, 0.0 }
 0x1a8   : > { %1431 = vst [vmem:[%s2249_s24] sm:$0xff] %v1430_v6 }
 0x1a9 PF: > { %s13_s18 = sadd.s32 1, %s2161_s18   ;;  %s2451_s12 = smov %s2149_s15 }
 0x1aa   : > { %p10_p12 = scmp.ge.s32.totalorder %s13_s18, 14   ;;  %s2452_s13 = smov %s2153_s16 }
 0x1ab   : > { %s2453_s14 = smov %s2157_s17  ;;  %s2454_s15 = smov %s2458_s19 }
 0x1ac   : > { %s2455_s16 = smov %s2462_s20  ;;  %s2456_s17 = smov %s2466_s21 }
 0x1ad   :  { %12 = sbr.rel (!%p10_p12) target bundleno = 4 (0x4), region = 75 }

// kernel: simple_unet_forward.11
= control target key start
LH: loop header
LB: loop body
LE: loop exit
PB: predicated region body
PF: predicated region fallthrough
CT: control target
= control target key end

     0   :  { %s2749_s12 = smov 0   ;;  %s2751_s13 = smov 0   ;;  %s2991_s0 = inlined_call_operand.vmem [shape: bf16[2,3,3,768], index: 0, kind: input, shape index: {}]   ;;  %s2992_s1 = inlined_call_operand.vmem [shape: bf16[3,3,768,128], index: 1, kind: input, shape index: {}]   ;;  %s2993_s2 = inlined_call_operand.vmem [shape: f32[1,128], index: 2, kind: input, shape index: {}]   ;;  %s2994_s3 = inlined_call_operand.vmem [shape: f32[2,1,1,128], index: 3, kind: output, shape index: {}]  }
   0x1   :  { %s2753_s14 = smov 0   ;;  %s2755_s15 = smov 0  }
   0x2   :  { %s2757_s16 = smov 0  }
   0x3 LB: > { %s25_s17 = sadd.s32 1, %s2718_s14  ;;  %s32_s18 = sadd.s32 1, %s2722_s15  ;;  %s2726_s16 = sphi %s2757_s16, %s13_s16   ;;  %s2722_s15 = sphi %s2755_s15, %s2998_s15   ;;  %s2718_s14 = sphi %s2753_s14, %s2997_s14   ;;  %s2714_s13 = sphi %s2751_s13, %s2996_s13   ;;  %s2710_s12 = sphi %s2749_s12, %s2995_s12  }
   0x4   : > { %p26_p0 = scmp.ge.s32.totalorder %s25_s17, 3  ;;  %p1956_p1 = scmp.ge.s32.totalorder %s2726_s16, 1 }
   0x5   : > { %p178_p2 = scmp.lt.s32.totalorder %s2726_s16, 7 }
   0x6   : > { %s3000_s17 = smov (%p26_p0, %s25_s17), 0  ;;  %s3002_s18 = smov (!%p26_p0, %s32_s18), %s2722_s15 }
   0x7   : > { %p179_p3 = pnand %p1956_p1, %p178_p2  ;;  %p34_p4 = scmp.ge.s32.totalorder %s3002_s18, 2 }
   0x8   : > { %p214_p5 = scmp.lt.s32.totalorder (!%p179_p3), %s2714_s13, 1  ;;  %p216_p6 = scmp.lt.s32.totalorder (!%p179_p3), %s2710_s12, 2 }
   0x9   : > { %s3004_s18 = smov (%p34_p4, %s3002_s18), 0  ;;  %182 = sbr.rel (%p179_p3) target bundleno = 412 (0x19c), region = 32 }
   0xa   : > { %p1959_p7 = scmp.ne.s32.totalorder (!%p179_p3), %s2710_s12, 0 }
  0x10   : > { %s3006_s13 = smov (!%p214_p5, %s2714_s13), 1  ;;  %v240_v0 = vld [vmem:[%s2993_s2] sm:$0x1] (!%p1959_p7) }
  0x11   : > { %s217_s19 = scalar_select %p216_p6, %s2710_s12, 2 }
  0x12   : > { %s2499_s20 = smul.u32 18, %s3006_s13  ;;  %s2782_s23 = scalar_lea.vmem %s2994_s3, %s3006_s13 }
  0x13   : > { %s2498_s24 = smul.u32 6, %s217_s19  ;;  %241 = vst [vmem:[%s2782_s23] sm:$0x1] (!%p1959_p7), %v240_v0 }
  0x14   : > { %s2500_s25 = smul.u32 1152, %s217_s19 }
  0x15   : > { %s220_s26 = sadd.s32 %s2499_s20, %s2498_s24  ;;  %239 = sbr.rel (%p1959_p7) target bundleno = 28 (0x1c), region = 36 }
  0x16   : > { %s1957_s27 = sshll.u32 %s220_s26, 1  ;;  %s2787_s30 = scalar_lea.vmem %s2992_s1, %s2500_s25 }
  0x17   : > { %s2792_s6 = scalar_lea.vmem %s2991_s0, %s1957_s27 }
  0x1c PF: > { %v2542_v1 = vld [vmem:[%s2787_s30 + $0x1c0] sm:$0xff]   ;;  %v2546_v5 = vld [vmem:[%s2787_s30 + $0x1c8] sm:$0xff]   ;;  %v2550_v9 = vld [vmem:[%s2787_s30 + $0x1d0] sm:$0xff]   ;;  %v443_v31 = vlaneseq  ;;  %v2728_v35 = vmov 1983009808  }
  0x1d   : > { %v2543_v2 = vld [vmem:[%s2787_s30 + $0x240] sm:$0xff]   ;;  %2300 = vmatprep.subr.bf16.mxu0 %v2542_v1  ;;  %v2547_v6 = vld [vmem:[%s2787_s30 + $0x248] sm:$0xff]   ;;  %v2551_v10 = vld [vmem:[%s2787_s30 + $0x250] sm:$0xff]   ;;  %v441_v36 = vunpack.c.l.s4 %v2728_v35 }
  0x1e   : > { %v2544_v3 = vld [vmem:[%s2787_s30 + $0x180] sm:$0xff]   ;;  %2322 = vmatprep.subr.bf16.mxu1 %v2543_v2  ;;  %v2548_v7 = vld [vmem:[%s2787_s30 + $0x188] sm:$0xff]   ;;  %v2552_v11 = vld [vmem:[%s2787_s30 + $0x190] sm:$0xff]   ;;  %v444_v37 = vshrl.u32 %v443_v31, 7 }
  0x1f   : > { %v2545_v4 = vld [vmem:[%s2787_s30 + $0x200] sm:$0xff]   ;;  %2301 = vmatpush3.bf16.msra.mxu0 %v2544_v3  ;;  %v2549_v8 = vld [vmem:[%s2787_s30 + $0x208] sm:$0xff]   ;;  %v2553_v12 = vld [vmem:[%s2787_s30 + $0x210] sm:$0xff]   ;;  %v442_v40 = vunpack.c.0.s8 %v441_v36 }
  0x20   : > { %2323 = vmatpush3.bf16.msra.mxu1 %v2545_v4  ;;  %2302 = vmatprep.subr.bf16.mxu0 %v2546_v5  ;;  %v2554_v13 = vld [vmem:[%s2787_s30 + $0x1d8] sm:$0xff]   ;;  %v2558_v17 = vld [vmem:[%s2787_s30 + $0x1e0] sm:$0xff]   ;;  %v2562_v21 = vld [vmem:[%s2787_s30 + $0x1e8] sm:$0xff]  }
  0x21   : > { %2324 = vmatprep.subr.bf16.mxu1 %v2547_v6  ;;  %v2555_v14 = vld [vmem:[%s2787_s30 + $0x258] sm:$0xff]   ;;  %v2559_v18 = vld [vmem:[%s2787_s30 + $0x260] sm:$0xff]   ;;  %v2563_v22 = vld [vmem:[%s2787_s30 + $0x268] sm:$0xff]   ;;  %v2833_v42 = vsub.s32 %v442_v40, %v444_v37 }
  0x22   : > { %v2556_v15 = vld [vmem:[%s2787_s30 + $0x198] sm:$0xff]   ;;  %v2560_v19 = vld [vmem:[%s2787_s30 + $0x1a0] sm:$0xff]   ;;  %v2564_v23 = vld [vmem:[%s2787_s30 + $0x1a8] sm:$0xff]  }
  0x23   : > { %2303 = vmatpush3.bf16.msra.mxu0 %v2548_v7  ;;  %v2557_v16 = vld [vmem:[%s2787_s30 + $0x218] sm:$0xff]   ;;  %v2561_v20 = vld [vmem:[%s2787_s30 + $0x220] sm:$0xff]   ;;  %v2565_v24 = vld [vmem:[%s2787_s30 + $0x228] sm:$0xff]  }
  0x24   : > { %2325 = vmatpush3.bf16.msra.mxu1 %v2549_v8  ;;  %2304 = vmatprep.subr.bf16.mxu0 %v2550_v9  ;;  %v2566_v25 = vld [vmem:[%s2787_s30 + $0x1f0] sm:$0xff]   ;;  %v2570_v29 = vld [vmem:[%s2787_s30 + $0x1f8] sm:$0xff]   ;;  %v242_v34 = vld [vmem:[%s2792_s6] sm:$0x55] }
  0x25   : > { %2326 = vmatprep.subr.bf16.mxu1 %v2551_v10  ;;  %v2567_v26 = vld [vmem:[%s2787_s30 + $0x270] sm:$0xff]   ;;  %v2571_v30 = vld [vmem:[%s2787_s30 + $0x278] sm:$0xff]   ;;  %v2575_v38 = vld [vmem:[%s2787_s30 + $0x2c0] sm:$0xff]   ;;  %v439_v41 = vcombine.high %v242_v34, %v242_v34  ;;  %v2836_v43 = vrot.slane %v242_v34, %v2833_v42 }
  0x26   : > { %v2568_v27 = vld [vmem:[%s2787_s30 + $0x1b0] sm:$0xff]   ;;  %v2572_v32 = vld [vmem:[%s2787_s30 + $0x1b8] sm:$0xff]   ;;  %v2576_v39 = vld [vmem:[%s2787_s30 + $0x40] sm:$0xff]  }
  0x27   : > { %2305 = vmatpush3.bf16.msra.mxu0 %v2552_v11  ;;  %v2569_v28 = vld [vmem:[%s2787_s30 + $0x230] sm:$0xff]   ;;  %v2573_v33 = vld [vmem:[%s2787_s30 + $0x238] sm:$0xff]   ;;  %v2839_v44 = vrot.slane %v439_v41, %v2833_v42  ;;  %v454_v45 = vcombine.high %v2836_v43, %v2836_v43  ;;  %v465_v47 = vshrl.u32 %v2836_v43, 16  ;;  %v2577_v49 = vld [vmem:[%s2787_s30 + $0x280] sm:$0xff]  }
  0x28   : > { %2327 = vmatpush3.bf16.msra.mxu1 %v2553_v12  ;;  %2306 = vmatprep.subr.bf16.mxu0 %v2554_v13  ;;  %v2578_v50 = vld [vmem:[%s2787_s30] sm:$0xff]   ;;  %v2579_v53 = vld [vmem:[%s2787_s30 + $0x2c8] sm:$0xff]   ;;  %v2583_v57 = vld [vmem:[%s2787_s30 + $0x2d0] sm:$0xff]  }
  0x29   : > { %2328 = vmatprep.subr.bf16.mxu1 %v2555_v14  ;;  %v2845_v46 = vcombine.high %v2839_v44, %v2839_v44  ;;  %v471_v48 = vshrl.u32 %v2839_v44, 16  ;;  %v468_v51 = vshrl.u32 %v454_v45, 16  ;;  %v2580_v54 = vld [vmem:[%s2787_s30 + $0x48] sm:$0xff]   ;;  %v2584_v58 = vld [vmem:[%s2787_s30 + $0x50] sm:$0xff]   ;;  %v2587_v61 = vld [vmem:[%s2787_s30 + $0x2d8] sm:$0xff]  }
  0x2a   : > { %v2581_v55 = vld [vmem:[%s2787_s30 + $0x288] sm:$0xff]   ;;  %v2585_v59 = vld [vmem:[%s2787_s30 + $0x290] sm:$0xff]   ;;  %v2588_v62 = vld [vmem:[%s2787_s30 + $0x58] sm:$0xff]  }
  0x2b   : > { %2307 = vmatpush3.bf16.msra.mxu0 %v2556_v15  ;;  %v474_v52 = vshrl.u32 %v2845_v46, 16  ;;  %808 = vmatprep.mubr.bf16.mxu0 %v468_v51  ;;  %v2582_v56 = vld [vmem:[%s2787_s30 + $0x8] sm:$0xff]   ;;  %v2586_v60 = vld [vmem:[%s2787_s30 + $0x10] sm:$0xff]   ;;  %v2589_v63 = vld [vmem:[%s2787_s30 + $0x298] sm:$0xff]  }
  0x2c   : > { %2329 = vmatpush3.bf16.msra.mxu1 %v2557_v16  ;;  %2308 = vmatprep.subr.bf16.mxu0 %v2558_v17  ;;  %v2590_v0 = vld [vmem:[%s2787_s30 + $0x18] sm:$0xff]   ;;  %v2591_v1 = vld [vmem:[%s2787_s30 + $0x2e0] sm:$0xff]   ;;  %v2595_v5 = vld [vmem:[%s2787_s30 + $0x2e8] sm:$0xff]  }
  0x2d   : > { %2330 = vmatprep.subr.bf16.mxu1 %v2559_v18  ;;  %848 = vmatprep.mubr.bf16.mxu1 %v474_v52  ;;  %v2592_v2 = vld [vmem:[%s2787_s30 + $0x60] sm:$0xff]   ;;  %v2596_v6 = vld [vmem:[%s2787_s30 + $0x68] sm:$0xff]   ;;  %v2599_v9 = vld [vmem:[%s2787_s30 + $0x2f0] sm:$0xff]  }
  0x2e   : > { %v2593_v3 = vld [vmem:[%s2787_s30 + $0x2a0] sm:$0xff]   ;;  %v2597_v7 = vld [vmem:[%s2787_s30 + $0x2a8] sm:$0xff]   ;;  %v2600_v10 = vld [vmem:[%s2787_s30 + $0x70] sm:$0xff]  }
  0x2f   : > { %2309 = vmatpush3.bf16.msra.mxu0 %v2560_v19  ;;  %v2594_v4 = vld [vmem:[%s2787_s30 + $0x20] sm:$0xff]   ;;  %v2598_v8 = vld [vmem:[%s2787_s30 + $0x28] sm:$0xff]   ;;  %v2601_v11 = vld [vmem:[%s2787_s30 + $0x2b0] sm:$0xff]  }
  0x30   : > { %2331 = vmatpush3.bf16.msra.mxu1 %v2561_v20  ;;  %2310 = vmatprep.subr.bf16.mxu0 %v2562_v21  ;;  %v2876_v12 = vld.sshfl [vmem:[%s2792_s6 + $0x8] sm:$0x11 pattern:$0x76325410]  ;;  %v2602_v13 = vld [vmem:[%s2787_s30 + $0x30] sm:$0xff]   ;;  %v2603_v15 = vld [vmem:[%s2787_s30 + $0x2f8] sm:$0xff]  }
  0x31   : > { %2332 = vmatprep.subr.bf16.mxu1 %v2563_v22  ;;  %v463_v14 = vcombine.high %v2876_v12, %v2876_v12  ;;  %v2604_v16 = vld [vmem:[%s2787_s30 + $0x78] sm:$0xff]   ;;  %v2607_v20 = vld [vmem:[%s2787_s30 + $0xc0] sm:$0xff]   ;;  %v2617_v31 = vld [vmem:[%s2787_s30 + $0x90] sm:$0xff]  }
  0x32   : > { %v2605_v18 = vld [vmem:[%s2787_s30 + $0x2b8] sm:$0xff]   ;;  %v2608_v21 = vld [vmem:[%s2787_s30 + $0x140] sm:$0xff]   ;;  %v2627_v41 = vld [vmem:[%s2787_s30 + $0xe8] sm:$0xff]  }
  0x33   : > { %2311 = vmatpush3.bf16.msra.mxu0 %v2564_v23  ;;  %v480_v17 = vshrl.u32 %v463_v14, 16  ;;  %v2606_v19 = vld [vmem:[%s2787_s30 + $0x38] sm:$0xff]   ;;  %v2609_v22 = vld [vmem:[%s2787_s30 + $0x80] sm:$0xff]   ;;  %v477_v23 = vshrl.u32 %v2876_v12, 16 }
  0x34   : > { %2333 = vmatpush3.bf16.msra.mxu1 %v2565_v24  ;;  %2312 = vmatprep.subr.bf16.mxu0 %v2566_v25  ;;  %v2610_v24 = vld [vmem:[%s2787_s30 + $0x100] sm:$0xff]   ;;  %v2611_v25 = vld [vmem:[%s2787_s30 + $0xc8] sm:$0xff]   ;;  %v2620_v34 = vld [vmem:[%s2787_s30 + $0x158] sm:$0xff]  }
  0x35   : > { %2334 = vmatprep.subr.bf16.mxu1 %v2567_v26  ;;  %v2612_v26 = vld [vmem:[%s2787_s30 + $0x148] sm:$0xff]   ;;  %v2621_v35 = vld [vmem:[%s2787_s30 + $0x98] sm:$0xff]   ;;  %v2623_v37 = vld [vmem:[%s2787_s30 + $0xe0] sm:$0xff]  }
  0x36   : > { %v2622_v36 = vld [vmem:[%s2787_s30 + $0x118] sm:$0xff]   ;;  %v2626_v40 = vld [vmem:[%s2787_s30 + $0x120] sm:$0xff]  }
  0x37   : > { %2313 = vmatpush3.bf16.msra.mxu0 %v2568_v27  ;;  %v2613_v27 = vld [vmem:[%s2787_s30 + $0x88] sm:$0xff]   ;;  %v2635_v51 = vld [vmem:[%s2787_s30 + $0xf8] sm:$0xff]  }
  0x38   : > { %2335 = vmatpush3.bf16.msra.mxu1 %v2569_v28  ;;  %2314 = vmatprep.subr.bf16.mxu0 %v2570_v29  ;;  %v2614_v28 = vld [vmem:[%s2787_s30 + $0x108] sm:$0xff]   ;;  %v2615_v29 = vld [vmem:[%s2787_s30 + $0xd0] sm:$0xff]   ;;  %v2636_v52 = vld [vmem:[%s2787_s30 + $0x178] sm:$0xff]  }
  0x39   : > { %2336 = vmatprep.subr.bf16.mxu1 %v2571_v30  ;;  %v2616_v30 = vld [vmem:[%s2787_s30 + $0x150] sm:$0xff]  }
  0x3b   : > { %2315 = vmatpush3.bf16.msra.mxu0 %v2572_v32  ;;  %v2618_v32 = vld [vmem:[%s2787_s30 + $0x110] sm:$0xff]  }
  0x3c   : > { %2337 = vmatpush3.bf16.msra.mxu1 %v2573_v33  ;;  %2344 = vmatprep.subr.bf16.mxu0 %v2575_v38  ;;  %v2619_v33 = vld [vmem:[%s2787_s30 + $0xd8] sm:$0xff]   ;;  %v2624_v38 = vld [vmem:[%s2787_s30 + $0x160] sm:$0xff]  }
  0x3d   : > { %2366 = vmatprep.subr.bf16.mxu1 %v2576_v39  ;;  %v2625_v39 = vld [vmem:[%s2787_s30 + $0xa0] sm:$0xff]  }
  0x3e   : > { %809 = vmatmul.mubr.bf16.vlgmr.msra.gmra.mrb[0].mxu0 %v465_v47  ;;  %v2631_v47 = vld [vmem:[%s2787_s30 + $0xf0] sm:$0xff]  }
  0x3f   : > { %849 = vmatmul.mubr.bf16.vlgmr.msra.gmra.mrb[0].mxu1 %v471_v48  ;;  %2345 = vmatpush3.bf16.msra.mxu0 %v2577_v49  ;;  %v2632_v48 = vld [vmem:[%s2787_s30 + $0x170] sm:$0xff]  }
  0x40   : > { %2367 = vmatpush3.bf16.msra.mxu1 %v2578_v50  ;;  %2346 = vmatprep.subr.bf16.mxu0 %v2579_v53  ;;  %v2633_v49 = vld [vmem:[%s2787_s30 + $0xb0] sm:$0xff]   ;;  %v2637_v53 = vld [vmem:[%s2787_s30 + $0xb8] sm:$0xff]  }
  0x41   : > { %2368 = vmatprep.subr.bf16.mxu1 %v2580_v54  ;;  %1222 = vmatprep.mubr.bf16.mxu1 %v454_v45  ;;  %v2629_v45 = vld [vmem:[%s2787_s30 + $0xa8] sm:$0xff]   ;;  %v2634_v50 = vld [vmem:[%s2787_s30 + $0x130] sm:$0xff]   ;;  %v2638_v54 = vld [vmem:[%s2787_s30 + $0x138] sm:$0xff]  }
  0x42   : > { %888 = vmatprep.mubr.bf16.mxu0 %v480_v17  ;;  %v1310_v17 = vld [vmem:[%s2792_s6] sm:$0xaa] }
  0x43   : > { %2347 = vmatpush3.bf16.msra.mxu0 %v2581_v55  ;;  %v2639_v55 = vld [vmem:[%s2787_s30 + $0x340] sm:$0xff]  }
  0x44   : > { %2369 = vmatpush3.bf16.msra.mxu1 %v2582_v56  ;;  %2348 = vmatprep.subr.bf16.mxu0 %v2583_v57  ;;  %v2640_v56 = vld [vmem:[%s2787_s30 + $0x3c0] sm:$0xff]  }
  0x45   : > { %2370 = vmatprep.subr.bf16.mxu1 %v2584_v58  ;;  %v2641_v57 = vld [vmem:[%s2787_s30 + $0x300] sm:$0xff]  }
  0x46   : > { %v2642_v58 = vld [vmem:[%s2787_s30 + $0x380] sm:$0xff]  }
  0x47   : > { %2349 = vmatpush3.bf16.msra.mxu0 %v2585_v59  ;;  %v2643_v59 = vld [vmem:[%s2787_s30 + $0x348] sm:$0xff]  }
  0x48   : > { %2371 = vmatpush3.bf16.msra.mxu1 %v2586_v60  ;;  %2350 = vmatprep.subr.bf16.mxu0 %v2587_v61  ;;  %v2644_v60 = vld [vmem:[%s2787_s30 + $0x3c8] sm:$0xff]  }
  0x49   : > { %2372 = vmatprep.subr.bf16.mxu1 %v2588_v62  ;;  %v2645_v61 = vld [vmem:[%s2787_s30 + $0x308] sm:$0xff]  }
  0x4a   : > { %v2646_v62 = vld [vmem:[%s2787_s30 + $0x388] sm:$0xff]  }
  0x4b   : > { %2351 = vmatpush3.bf16.msra.mxu0 %v2589_v63  ;;  %v2647_v63 = vld [vmem:[%s2787_s30 + $0x350] sm:$0xff]  }
  0x4c   : > { %2373 = vmatpush3.bf16.msra.mxu1 %v2590_v0  ;;  %2352 = vmatprep.subr.bf16.mxu0 %v2591_v1  ;;  %v2648_v0 = vld [vmem:[%s2787_s30 + $0x3d0] sm:$0xff]  }
  0x4d   : > { %2374 = vmatprep.subr.bf16.mxu1 %v2592_v2  ;;  %v2649_v1 = vld [vmem:[%s2787_s30 + $0x310] sm:$0xff]  }
  0x4e   : > { %v2650_v2 = vld [vmem:[%s2787_s30 + $0x390] sm:$0xff]  }
  0x4f   : > { %2353 = vmatpush3.bf16.msra.mxu0 %v2593_v3  ;;  %v2652_v3 = vld [vmem:[%s2787_s30 + $0x3d8] sm:$0xff]  }
  0x50   : > { %2375 = vmatpush3.bf16.msra.mxu1 %v2594_v4  ;;  %2354 = vmatprep.subr.bf16.mxu0 %v2595_v5  ;;  %v2653_v4 = vld [vmem:[%s2787_s30 + $0x318] sm:$0xff]  }
  0x51   : > { %2376 = vmatprep.subr.bf16.mxu1 %v2596_v6  ;;  %v2654_v5 = vld [vmem:[%s2787_s30 + $0x398] sm:$0xff]   ;;  %v2655_v6 = vld [vmem:[%s2787_s30 + $0x360] sm:$0xff]  }
  0x53   : > { %2355 = vmatpush3.bf16.msra.mxu0 %v2597_v7  ;;  %v2656_v7 = vld [vmem:[%s2787_s30 + $0x3e0] sm:$0xff]  }
  0x54   : > { %2377 = vmatpush3.bf16.msra.mxu1 %v2598_v8  ;;  %2356 = vmatprep.subr.bf16.mxu0 %v2599_v9  ;;  %v2657_v8 = vld [vmem:[%s2787_s30 + $0x320] sm:$0xff]  }
  0x55   : > { %2378 = vmatprep.subr.bf16.mxu1 %v2600_v10  ;;  %v2658_v9 = vld [vmem:[%s2787_s30 + $0x3a0] sm:$0xff]   ;;  %v2659_v10 = vld [vmem:[%s2787_s30 + $0x368] sm:$0xff]  }
  0x57   : > { %2357 = vmatpush3.bf16.msra.mxu0 %v2601_v11  ;;  %v2660_v11 = vld [vmem:[%s2787_s30 + $0x3e8] sm:$0xff]  }
  0x58   : > { %2379 = vmatpush3.bf16.msra.mxu1 %v2602_v13  ;;  %2358 = vmatprep.subr.bf16.mxu0 %v2603_v15  ;;  %v2662_v13 = vld [vmem:[%s2787_s30 + $0x3a8] sm:$0xff]   ;;  %v2664_v15 = vld [vmem:[%s2787_s30 + $0x3f0] sm:$0xff]  }
  0x59   : > { %2380 = vmatprep.subr.bf16.mxu1 %v2604_v16  ;;  %v2665_v16 = vld [vmem:[%s2787_s30 + $0x330] sm:$0xff]  }
  0x5b   : > { %2359 = vmatpush3.bf16.msra.mxu0 %v2605_v18  ;;  %v2666_v18 = vld [vmem:[%s2787_s30 + $0x3b0] sm:$0xff]  }
  0x5c   : > { %2381 = vmatpush3.bf16.msra.mxu1 %v2606_v19  ;;  %2388 = vmatprep.subr.bf16.mxu0 %v2607_v20  ;;  %v1418_v19 = vrot.slane %v1310_v17, %v2833_v42  ;;  %v1411_v20 = vcombine.high %v1310_v17, %v1310_v17 }
  0x5d   : > { %2410 = vmatprep.subr.bf16.mxu1 %v2608_v21  ;;  %v2667_v21 = vld [vmem:[%s2787_s30 + $0x378] sm:$0xff]  }
  0x5e   : > { %889 = vmatmul.mubr.bf16.vlgmr.msra.gmra.mrb[4].mxu0 %v477_v23  ;;  %v1426_v23 = vcombine.high %v1418_v19, %v1418_v19 }
  0x5f   : > { %1223 = vmatmul.mubr.bf16.vlgmr.msra.gmra.mrb[4].mxu1 %v2836_v43  ;;  %2389 = vmatpush3.bf16.msra.mxu0 %v2609_v22  ;;  %v2628_v43 = vld [vmem:[%s2787_s30 + $0x168] sm:$0xff]   ;;  %v2668_v22 = vld [vmem:[%s2787_s30 + $0x3f8] sm:$0xff]  }
  0x60   : > { %2411 = vmatpush3.bf16.msra.mxu1 %v2610_v24  ;;  %2390 = vmatprep.subr.bf16.mxu0 %v2611_v25  ;;  %v1425_v24 = vrot.slane %v1411_v20, %v2833_v42  ;;  %v2669_v25 = vld [vmem:[%s2787_s30 + $0x338] sm:$0xff]  }
  0x61   : > { %2412 = vmatprep.subr.bf16.mxu1 %v2612_v26  ;;  %1262 = vmatprep.mubr.bf16.mxu0 %v2845_v46  ;;  %v2630_v46 = vld [vmem:[%s2787_s30 + $0x128] sm:$0xff]   ;;  %v2670_v26 = vld [vmem:[%s2787_s30 + $0x3b8] sm:$0xff]  }
  0x62   : > { %1302 = vmatprep.mubr.bf16.mxu1 %v463_v14  ;;  %v2663_v14 = vld [vmem:[%s2787_s30 + $0x370] sm:$0xff]   ;;  %v1438_v42 = vrot.slane %v1425_v24, 1 }
  0x63   : > { %2391 = vmatpush3.bf16.msra.mxu0 %v2613_v27  ;;  %v1437_v27 = vrot.slane %v1426_v23, 1 }
  0x64   : > { %2413 = vmatpush3.bf16.msra.mxu1 %v2614_v28  ;;  %2392 = vmatprep.subr.bf16.mxu0 %v2615_v29  ;;  %v1427_v28 = vcombine.high %v1425_v24, %v1425_v24 }
  0x65   : > { %2414 = vmatprep.subr.bf16.mxu1 %v2616_v30  ;;  %v2672_v30 = vld [vmem:[%s2787_s30 + $0x440] sm:$0xff]  }
  0x66   : > { %v1439_v29 = vrot.slane %v1427_v28, 1 }
  0x67   : > { %2393 = vmatpush3.bf16.msra.mxu0 %v2617_v31  ;;  %v1436_v31 = vrot.slane %v1418_v19, 1 }
  0x68   : > { %2415 = vmatpush3.bf16.msra.mxu1 %v2618_v32  ;;  %2394 = vmatprep.subr.bf16.mxu0 %v2619_v33  ;;  %v2673_v32 = vld [vmem:[%s2787_s30 + $0x400] sm:$0xff]   ;;  %v2674_v33 = vld [vmem:[%s2787_s30 + $0x448] sm:$0xff]  }
  0x69   : > { %2416 = vmatprep.subr.bf16.mxu1 %v2620_v34  ;;  %v2675_v34 = vld [vmem:[%s2787_s30 + $0x408] sm:$0xff]  }
  0x6b   : > { %2395 = vmatpush3.bf16.msra.mxu0 %v2621_v35  ;;  %v2676_v35 = vld [vmem:[%s2787_s30 + $0x450] sm:$0xff]  }
  0x6c   : > { %2417 = vmatpush3.bf16.msra.mxu1 %v2622_v36  ;;  %2396 = vmatprep.subr.bf16.mxu0 %v2623_v37  ;;  %v2249_v36 = vld.sshfl [vmem:[%s2792_s6 + $0x8] sm:$0x22 pattern:$0x76325410]  ;;  %v2677_v37 = vld [vmem:[%s2787_s30 + $0x410] sm:$0xff]  }
  0x6d   : > { %2418 = vmatprep.subr.bf16.mxu1 %v2624_v38  ;;  %v1435_v38 = vcombine.high %v2249_v36, %v2249_v36 }
  0x6f   : > { %2397 = vmatpush3.bf16.msra.mxu0 %v2625_v39  ;;  %v2678_v39 = vld [vmem:[%s2787_s30 + $0x458] sm:$0xff]  }
  0x70   : > { %2419 = vmatpush3.bf16.msra.mxu1 %v2626_v40  ;;  %2398 = vmatprep.subr.bf16.mxu0 %v2627_v41  ;;  %v1441_v40 = vrot.slane %v1435_v38, 1  ;;  %v2679_v41 = vld [vmem:[%s2787_s30 + $0x418] sm:$0xff]  }
  0x71   : > { %2420 = vmatprep.subr.bf16.mxu1 %v2628_v43  ;;  %v2680_v43 = vld [vmem:[%s2787_s30 + $0x460] sm:$0xff]  }
  0x73   : > { %2399 = vmatpush3.bf16.msra.mxu0 %v2629_v45  ;;  %v2681_v45 = vld [vmem:[%s2787_s30 + $0x420] sm:$0xff]  }
  0x74   : > { %2421 = vmatpush3.bf16.msra.mxu1 %v2630_v46  ;;  %2400 = vmatprep.subr.bf16.mxu0 %v2631_v47  ;;  %v2682_v46 = vld [vmem:[%s2787_s30 + $0x468] sm:$0xff]  }
  0x75   : > { %2422 = vmatprep.subr.bf16.mxu1 %v2632_v48  ;;  %v2683_v47 = vld [vmem:[%s2787_s30 + $0x428] sm:$0xff]   ;;  %v2684_v48 = vld [vmem:[%s2787_s30 + $0x470] sm:$0xff]  }
  0x77   : > { %2401 = vmatpush3.bf16.msra.mxu0 %v2633_v49  ;;  %v2685_v49 = vld [vmem:[%s2787_s30 + $0x430] sm:$0xff]  }
  0x78   : > { %2423 = vmatpush3.bf16.msra.mxu1 %v2634_v50  ;;  %2402 = vmatprep.subr.bf16.mxu0 %v2635_v51  ;;  %v2686_v50 = vld [vmem:[%s2787_s30 + $0x478] sm:$0xff]  }
  0x79   : > { %2424 = vmatprep.subr.bf16.mxu1 %v2636_v52  ;;  %v2687_v51 = vld [vmem:[%s2787_s30 + $0x438] sm:$0xff]   ;;  %v1440_v52 = vrot.slane %v2249_v36, 1 }
  0x7b   : > { %2403 = vmatpush3.bf16.msra.mxu0 %v2637_v53 }
  0x7c   : > { %2425 = vmatpush3.bf16.msra.mxu1 %v2638_v54  ;;  %2432 = vmatprep.subr.bf16.mxu0 %v2639_v55 }
  0x7d   : > { %2454 = vmatprep.subr.bf16.mxu1 %v2640_v56 }
  0x7e   : > { %1263 = vmatmul.mubr.bf16.vlgmr.msra.gmra.mrb[8].mxu0 %v2839_v44  ;;  %v2651_v44 = vld [vmem:[%s2787_s30 + $0x358] sm:$0xff]  }
  0x7f   : > { %1303 = vmatmul.mubr.bf16.vlgmr.msra.gmra.mrb[8].mxu1 %v2876_v12  ;;  %2433 = vmatpush3.bf16.msra.mxu0 %v2641_v57  ;;  %v2661_v12 = vld [vmem:[%s2787_s30 + $0x328] sm:$0xff]  }
  0x80   : > { %2455 = vmatpush3.bf16.msra.mxu1 %v2642_v58  ;;  %2434 = vmatprep.subr.bf16.mxu0 %v2643_v59 }
  0x81   : > { %2456 = vmatprep.subr.bf16.mxu1 %v2644_v60  ;;  %1768 = vmatprep.mubr.bf16.mxu0 %v1437_v27 }
  0x82   : > { %1808 = vmatprep.mubr.bf16.mxu1 %v1439_v29 }
  0x83   : > { %2435 = vmatpush3.bf16.msra.mxu0 %v2645_v61 }
  0x84   : > { %2457 = vmatpush3.bf16.msra.mxu1 %v2646_v62  ;;  %2436 = vmatprep.subr.bf16.mxu0 %v2647_v63 }
  0x85   : > { %2458 = vmatprep.subr.bf16.mxu1 %v2648_v0 }
  0x87   : > { %2437 = vmatpush3.bf16.msra.mxu0 %v2649_v1 }
  0x88   : > { %2459 = vmatpush3.bf16.msra.mxu1 %v2650_v2  ;;  %2438 = vmatprep.subr.bf16.mxu0 %v2651_v44 }
  0x89   : > { %2460 = vmatprep.subr.bf16.mxu1 %v2652_v3 }
  0x8b   : > { %2439 = vmatpush3.bf16.msra.mxu0 %v2653_v4 }
  0x8c   : > { %2461 = vmatpush3.bf16.msra.mxu1 %v2654_v5  ;;  %2440 = vmatprep.subr.bf16.mxu0 %v2655_v6 }
  0x8d   : > { %2462 = vmatprep.subr.bf16.mxu1 %v2656_v7 }
  0x8f   : > { %2441 = vmatpush3.bf16.msra.mxu0 %v2657_v8 }
  0x90   : > { %2463 = vmatpush3.bf16.msra.mxu1 %v2658_v9  ;;  %2442 = vmatprep.subr.bf16.mxu0 %v2659_v10 }
  0x91   : > { %2464 = vmatprep.subr.bf16.mxu1 %v2660_v11 }
  0x93   : > { %2443 = vmatpush3.bf16.msra.mxu0 %v2661_v12 }
  0x94   : > { %2465 = vmatpush3.bf16.msra.mxu1 %v2662_v13  ;;  %2444 = vmatprep.subr.bf16.mxu0 %v2663_v14 }
  0x95   : > { %2466 = vmatprep.subr.bf16.mxu1 %v2664_v15 }
  0x97   : > { %2445 = vmatpush3.bf16.msra.mxu0 %v2665_v16 }
  0x98   : > { %2467 = vmatpush3.bf16.msra.mxu1 %v2666_v18  ;;  %2446 = vmatprep.subr.bf16.mxu0 %v2667_v21 }
  0x99   : > { %2468 = vmatprep.subr.bf16.mxu1 %v2668_v22 }
  0x9b   : > { %2447 = vmatpush3.bf16.msra.mxu0 %v2669_v25 }
  0x9c   : > { %2469 = vmatpush3.bf16.msra.mxu1 %v2670_v26  ;;  %2476 = vmatprep.subr.bf16.mxu0 %v2672_v30 }
  0x9e   : > { %1769 = vmatmul.mubr.bf16.vlgmr.msra.gmra.mrb[12].mxu0 %v1436_v31 }
  0x9f   : > { %1809 = vmatmul.mubr.bf16.vlgmr.msra.gmra.mrb[12].mxu1 %v1438_v42  ;;  %2477 = vmatpush3.bf16.msra.mxu0 %v2673_v32 }
  0xa0   : > { %2478 = vmatprep.subr.bf16.mxu0 %v2674_v33  ;;  %1848 = vmatprep.mubr.bf16.mxu0 %v1441_v40 }
  0xa3   : > { %2479 = vmatpush3.bf16.msra.mxu0 %v2675_v34 }
  0xa4   : > { %2480 = vmatprep.subr.bf16.mxu0 %v2676_v35 }
  0xa7   : > { %2481 = vmatpush3.bf16.msra.mxu0 %v2677_v37 }
  0xa8   : > { %2482 = vmatprep.subr.bf16.mxu0 %v2678_v39  ;;  %v1857_v39 = vld [vmem:[%s2782_s23] sm:$0x1] }
  0xab   : > { %2483 = vmatpush3.bf16.msra.mxu0 %v2679_v41 }
  0xac   : > { %2484 = vmatprep.subr.bf16.mxu0 %v2680_v43 }
  0xaf   : > { %2485 = vmatpush3.bf16.msra.mxu0 %v2681_v45 }
  0xb0   : > { %2486 = vmatprep.subr.bf16.mxu0 %v2682_v46 }
  0xb3   : > { %2487 = vmatpush3.bf16.msra.mxu0 %v2683_v47 }
  0xb4   : > { %2488 = vmatprep.subr.bf16.mxu0 %v2684_v48 }
  0xb7   : > { %2489 = vmatpush3.bf16.msra.mxu0 %v2685_v49 }
  0xb8   : > { %2490 = vmatprep.subr.bf16.mxu0 %v2686_v50 }
  0xbb   : > { %2491 = vmatpush3.bf16.msra.mxu0 %v2687_v51 }
  0xbe   : > { %1849 = vmatmul.mubr.bf16.vlgmr.msra.gmra.mrb[16].mxu0 %v1440_v52 }
 0x111   : > { %v2316_v53 = vpop.f32.mrb[0].mxu0 }
 0x112   : > { %v2338_v54 = vpop.f32.mrb[0].mxu1  ;;  %v2317_v55 = vpop.f32.mrb[1].mxu0 }
 0x113   : > { %v2339_v56 = vpop.f32.mrb[1].mxu1  ;;  %v2318_v57 = vadd.f32 %v2317_v55, %v2316_v53  ;;  %v2319_v59 = vpop.f32.mrb[2].mxu0 }
 0x114   : > { %v2340_v58 = vadd.f32 %v2339_v56, %v2338_v54  ;;  %v2341_v60 = vpop.f32.mrb[2].mxu1  ;;  %v2320_v61 = vpop.f32.mrb[3].mxu0 }
 0x115   : > { %v2342_v62 = vpop.f32.mrb[3].mxu1 }
 0x116   : > { %v851_v63 = vadd.f32 %v2340_v58, %v2318_v57 }
 0x131   : > { %v2360_v0 = vpop.f32.mrb[4].mxu0 }
 0x132   : > { %v2382_v1 = vpop.f32.mrb[4].mxu1  ;;  %v2361_v2 = vpop.f32.mrb[5].mxu0 }
 0x133   : > { %v2383_v44 = vpop.f32.mrb[5].mxu1  ;;  %v2362_v3 = vadd.f32 %v2361_v2, %v2360_v0  ;;  %v2363_v4 = vpop.f32.mrb[6].mxu0 }
 0x134   : > { %v2384_v5 = vadd.f32 %v2383_v44, %v2382_v1  ;;  %v2385_v6 = vpop.f32.mrb[6].mxu1  ;;  %v2364_v7 = vpop.f32.mrb[7].mxu0 }
 0x135   : > { %v2386_v8 = vpop.f32.mrb[7].mxu1  ;;  %v891_v9 = vadd.f32 %v2362_v3, %v851_v63 }
 0x137   : > { %v1225_v10 = vadd.f32 %v2384_v5, %v891_v9 }
 0x151   : > { %v2404_v11 = vpop.f32.mrb[8].mxu0 }
 0x152   : > { %v2426_v12 = vpop.f32.mrb[8].mxu1  ;;  %v2405_v13 = vpop.f32.mrb[9].mxu0 }
 0x153   : > { %v2427_v14 = vpop.f32.mrb[9].mxu1  ;;  %v2406_v15 = vadd.f32 %v2405_v13, %v2404_v11  ;;  %v2407_v16 = vpop.f32.mrb[10].mxu0 }
 0x154   : > { %v2428_v17 = vadd.f32 %v2427_v14, %v2426_v12  ;;  %v2429_v18 = vpop.f32.mrb[10].mxu1  ;;  %v2408_v19 = vpop.f32.mrb[11].mxu0 }
 0x155   : > { %v2430_v20 = vpop.f32.mrb[11].mxu1  ;;  %v1265_v21 = vadd.f32 %v2406_v15, %v1225_v10 }
 0x157   : > { %v1305_v22 = vadd.f32 %v2428_v17, %v1265_v21 }
 0x171   : > { %v2448_v23 = vpop.f32.mrb[12].mxu0 }
 0x172   : > { %v2470_v24 = vpop.f32.mrb[12].mxu1  ;;  %v2449_v25 = vpop.f32.mrb[13].mxu0 }
 0x173   : > { %v2471_v26 = vpop.f32.mrb[13].mxu1  ;;  %v2450_v27 = vadd.f32 %v2449_v25, %v2448_v23  ;;  %v2451_v29 = vpop.f32.mrb[14].mxu0 }
 0x174   : > { %v2472_v28 = vadd.f32 %v2471_v26, %v2470_v24  ;;  %v2473_v30 = vpop.f32.mrb[14].mxu1  ;;  %v2452_v31 = vpop.f32.mrb[15].mxu0 }
 0x175   : > { %v2474_v42 = vpop.f32.mrb[15].mxu1 }
 0x176   : > { %v1811_v32 = vadd.f32 %v2472_v28, %v2450_v27 }
 0x191   : > { %v2492_v33 = vpop.f32.mrb[16].mxu0 }
 0x192   : > { %v2493_v34 = vpop.f32.mrb[17].mxu0 }
 0x193   : > { %v2494_v35 = vadd.f32 %v2493_v34, %v2492_v33  ;;  %v2495_v36 = vpop.f32.mrb[18].mxu0 }
 0x194   : > { %v2496_v37 = vpop.f32.mrb[19].mxu0 }
 0x195   : > { %v1851_v38 = vadd.f32 %v2494_v35, %v1811_v32 }
 0x197   : > { %v1856_v40 = vadd.f32 %v1851_v38, %v1305_v22 }
 0x199   : > { %v1858_v41 = vadd.f32 %v1857_v39, %v1856_v40 }
 0x19b   : > { %1859 = vst [vmem:[%s2782_s23] sm:$0x1] %v1858_v41 }
 0x19c PF: > { %s13_s16 = sadd.s32 1, %s2726_s16   ;;  %s2995_s12 = smov %s2718_s14 }
 0x19d   : > { %p10_p8 = scmp.ge.s32.totalorder %s13_s16, 8   ;;  %s2996_s13 = smov %s2722_s15 }
 0x19e   : > { %s2997_s14 = smov %s3000_s17  ;;  %s2998_s15 = smov %s3004_s18 }
 0x19f   :  { %12 = sbr.rel (!%p10_p8) target bundleno = 3 (0x3), region = 71 }

// kernel: simple_unet_forward.12
= control target key start
LH: loop header
LB: loop body
LE: loop exit
PB: predicated region body
PF: predicated region fallthrough
CT: control target
= control target key end

     0   :  { %s1791_s12 = smov 0   ;;  %s1793_s13 = smov 0   ;;  %s1994_s0 = inlined_call_operand.vmem [shape: bf16[2,4,8,384], index: 0, kind: input, shape index: {}]   ;;  %s1995_s1 = inlined_call_operand.vmem [shape: bf16[3,3,384,64], index: 1, kind: input, shape index: {}]   ;;  %s1996_s2 = inlined_call_operand.vmem [shape: f32[1,64], index: 2, kind: input, shape index: {}]   ;;  %s1997_s3 = inlined_call_operand.vmem [shape: f32[2,2,4,64], index: 3, kind: output, shape index: {}]  }
   0x1   :  { %s1795_s14 = smov 0   ;;  %s1797_s15 = smov 0  }
   0x2   :  { %s1799_s16 = smov 0   ;;  %s1801_s17 = smov 0  }
   0x3   :  { %s1803_s18 = smov 0  }
   0x4 LB: > { %s25_s19 = sadd.s32 1, %s1755_s15  ;;  %s28_s20 = sadd.s32 1, %s1759_s16  ;;  %s1767_s18 = sphi %s1803_s18, %s13_s18   ;;  %s1763_s17 = sphi %s1801_s17, %s2003_s17   ;;  %s1759_s16 = sphi %s1799_s16, %s2002_s16   ;;  %s1755_s15 = sphi %s1797_s15, %s2001_s15   ;;  %s1751_s14 = sphi %s1795_s14, %s2000_s14   ;;  %s1747_s13 = sphi %s1793_s13, %s1999_s13   ;;  %s1743_s12 = sphi %s1791_s12, %s1998_s12  }
   0x5   : > { %p26_p0 = scmp.ge.s32.totalorder %s25_s19, 3  ;;  %p1232_p1 = scmp.ge.s32.totalorder %s1767_s18, 1 }
   0x6   : > { %p178_p2 = scmp.lt.s32.totalorder %s1767_s18, 13  ;;  %s32_s21 = sadd.s32 1, %s1763_s17 }
   0x7   : > { %s2005_s19 = smov (%p26_p0, %s25_s19), 0  ;;  %s2007_s20 = smov (!%p26_p0, %s28_s20), %s1759_s16 }
   0x8   : > { %p179_p3 = pnand %p1232_p1, %p178_p2  ;;  %p30_p4 = scmp.ge.s32.totalorder %s2007_s20, 2 }
   0x9   : > { %s215_s22 = sadd.s32 (!%p179_p3), %s1743_s12, %s1747_s13  ;;  %p216_p6 = scmp.lt.s32.totalorder (!%p179_p3), %s1751_s14, 1 }
   0xa   : > { %s2009_s20 = smov (%p30_p4, %s2007_s20), 0  ;;  %s2011_s21 = smov (!%p30_p4, %s32_s21), %s1763_s17 }
   0xb   : > { %p34_p5 = scmp.ge.s32.totalorder %s2011_s21, 2  ;;  %182 = sbr.rel (%p179_p3) target bundleno = 352 (0x160), region = 32 }
   0xc   : > { %p218_p7 = scmp.lt.s32.totalorder (!%p179_p3), %s215_s22, 3  ;;  %p226_p8 = scmp.lt.s32.totalorder (!%p179_p3), %s1743_s12, 2 }
   0xd   : > { %s2013_s21 = smov (%p34_p5, %s2011_s21), 0  ;;  %p233_p9 = scmp.lt.s32.totalorder (!%p179_p3), %s1747_s13, 1 }
   0xe   : > { %p1237_p10 = scmp.ne.s32.totalorder (!%p179_p3), %s1743_s12, 0 }
  0x12   : > { %s2015_s14 = smov (!%p216_p6, %s1751_s14), 1  ;;  %s2017_s22 = smov (!%p218_p7, %s215_s22), 3 }
  0x13   : > { %s1572_s23 = smul.u32 12, %s2015_s14  ;;  %s1235_s8 = sshll.u32 %s2015_s14, 1  ;;  %v1238_v0 = vld [vmem:[%s1996_s2] ss:$0 sm:$0xff] (!%p1237_p10)  ;;  %vm251_vm0 = vcmask (!%p1237_p10), 519168  }
  0x14   : > { %s1571_s24 = smul.u32 3, %s2017_s22  ;;  %s2019_s13 = smov (!%p233_p9, %s1747_s13), 1 }
  0x15   : > { %s227_s25 = scalar_select %p226_p8, %s1743_s12, 2 }
  0x16   : > { %s222_s26 = sadd.s32 %s1572_s23, %s1571_s24  ;;  %s236_s9 = sadd.s32 %s1235_s8, %s2019_s13 }
  0x17   : > { %s1233_s27 = sshll.u32 %s222_s26, 2  ;;  %s1573_s28 = smul.u32 576, %s227_s25 }
  0x18   : > { %s1845_s4 = scalar_lea.vmem %s1994_s0, %s1233_s27  ;;  %s1236_s10 = sshll.u32 %s236_s9, 2 }
  0x19   : > { %s1850_s7 = scalar_lea.vmem %s1995_s1, %s1573_s28  ;;  %s1856_s23 = scalar_lea.vmem %s1997_s3, %s1236_s10 }
  0x1a   : > { %243 = sbr.rel (%p1237_p10) target bundleno = 33 (0x21), region = 36  ;;  %252 = vst.msk [vmem:[%s1856_s23] sm:$0xf] (!%p1237_p10), %vm251_vm0, %v1238_v0 }
  0x21 PF: > { %v1632_v1 = vld [vmem:[%s1850_s7 + $0x100] sm:$0xff]   ;;  %v1769_v2 = vmov 0.0   ;;  %vm1770_vm1 = vmmov 0   ;;  %v1635_v5 = vld [vmem:[%s1850_s7 + $0x108] sm:$0xff]   ;;  %v1638_v8 = vld [vmem:[%s1850_s7 + $0x110] sm:$0xff]   ;;  %vm1119_vm2 = vcmask 519168  }
  0x22   : > { %1511 = vmatprep.subr.bf16.mxu1 %v1769_v2  ;;  %v1633_v3 = vld [vmem:[%s1850_s7 + $0xc0] sm:$0xff]   ;;  %1418 = vmatprep.subr.bf16.mxu0 %v1632_v1  ;;  %v1636_v6 = vld [vmem:[%s1850_s7 + $0xc8] sm:$0xff]   ;;  %v1639_v9 = vld [vmem:[%s1850_s7 + $0xd0] sm:$0xff]  }
  0x23   : > { %v1634_v4 = vld [vmem:[%s1850_s7 + $0x140] sm:$0xff]   ;;  %1527 = vmatprep.mubr.msk.bf16.mxu1 %vm1770_vm1, %v1769_v2  ;;  %1419 = vmatpush3.bf16.msra.mxu0 %v1633_v3  ;;  %v1637_v7 = vld [vmem:[%s1850_s7 + $0x148] sm:$0xff]   ;;  %v1640_v10 = vld [vmem:[%s1850_s7 + $0x150] sm:$0xff]  }
  0x24   : > { %1512 = vmatpush3.bf16.msra.mxu1 %v1634_v4  ;;  %1420 = vmatprep.subr.bf16.mxu0 %v1635_v5  ;;  %v1641_v11 = vld [vmem:[%s1850_s7 + $0x118] sm:$0xff]   ;;  %v1644_v14 = vld [vmem:[%s1850_s7 + $0x120] sm:$0xff]   ;;  %v1647_v17 = vld [vmem:[%s1850_s7 + $0x128] sm:$0xff]  }
  0x25   : > { %1513 = vmatprep.subr.bf16.mxu1 %v1769_v2  ;;  %v1642_v12 = vld [vmem:[%s1850_s7 + $0xd8] sm:$0xff]   ;;  %v1645_v15 = vld [vmem:[%s1850_s7 + $0xe0] sm:$0xff]   ;;  %v1648_v18 = vld [vmem:[%s1850_s7 + $0xe8] sm:$0xff]  }
  0x26   : > { %v1643_v13 = vld [vmem:[%s1850_s7 + $0x158] sm:$0xff]   ;;  %v1646_v16 = vld [vmem:[%s1850_s7 + $0x160] sm:$0xff]   ;;  %v1649_v19 = vld [vmem:[%s1850_s7 + $0x168] sm:$0xff]  }
  0x27   : > { %1421 = vmatpush3.bf16.msra.mxu0 %v1636_v6  ;;  %v1650_v20 = vld [vmem:[%s1850_s7 + $0x130] sm:$0xff]   ;;  %v1653_v23 = vld [vmem:[%s1850_s7 + $0x138] sm:$0xff]   ;;  %v303_v24 = vld [vmem:[%s1845_s4] sm:$0x66] }
  0x28   : > { %1514 = vmatpush3.bf16.msra.mxu1 %v1637_v7  ;;  %1422 = vmatprep.subr.bf16.mxu0 %v1638_v8  ;;  %v1651_v21 = vld [vmem:[%s1850_s7 + $0xf0] sm:$0xff]   ;;  %v1654_v25 = vld [vmem:[%s1850_s7 + $0xf8] sm:$0xff]   ;;  %v1288_v26 = vcombine.high %v303_v24, %v303_v24  ;;  %v1287_v28 = vcombine.low %v303_v24, %v303_v24  ;;  %v1658_v29 = vld [vmem:[%s1850_s7 + $0x40] sm:$0xff]  }
  0x29   : > { %1515 = vmatprep.subr.bf16.mxu1 %v1769_v2  ;;  %v1652_v22 = vld [vmem:[%s1850_s7 + $0x170] sm:$0xff]   ;;  %v1655_v27 = vld [vmem:[%s1850_s7 + $0x178] sm:$0xff]   ;;  %v1659_v31 = vld [vmem:[%s1845_s4 + $0x8] ss:$0 sps:$4 sm:$0x66]  }
  0x2a   : > { %v363_v30 = vrot.slane %v1288_v26, 1  ;;  %v362_v32 = vrot.slane %v1287_v28, 1  ;;  %v1660_v33 = vld [vmem:[%s1850_s7] sm:$0xff]   ;;  %v364_v34 = vrot.slane %v1659_v31, 1  ;;  %v1662_v36 = vld [vmem:[%s1850_s7 + $0x48] sm:$0xff]   ;;  %v1665_v39 = vld [vmem:[%s1850_s7 + $0x50] sm:$0xff]  }
  0x2b   : > { %1423 = vmatpush3.bf16.msra.mxu0 %v1639_v9  ;;  %v1661_v35 = vld [vmem:[%s1850_s7 + $0x80] sm:$0xff]   ;;  %v1663_v37 = vld [vmem:[%s1850_s7 + $0x8] sm:$0xff]   ;;  %v1666_v40 = vld [vmem:[%s1850_s7 + $0x10] sm:$0xff]  }
  0x2c   : > { %1516 = vmatpush3.bf16.msra.mxu1 %v1640_v10  ;;  %1424 = vmatprep.subr.bf16.mxu0 %v1641_v11  ;;  %v1664_v38 = vld [vmem:[%s1850_s7 + $0x88] sm:$0xff]   ;;  %v1667_v41 = vld [vmem:[%s1850_s7 + $0x90] sm:$0xff]   ;;  %v1668_v42 = vld [vmem:[%s1850_s7 + $0x58] sm:$0xff]  }
  0x2d   : > { %1517 = vmatprep.subr.bf16.mxu1 %v1769_v2  ;;  %544 = vmatprep.mubr.bf16.mxu0 %v363_v30  ;;  %v1669_v43 = vld [vmem:[%s1850_s7 + $0x18] sm:$0xff]   ;;  %v1671_v45 = vld [vmem:[%s1850_s7 + $0x60] sm:$0xff]   ;;  %v1674_v48 = vld [vmem:[%s1850_s7 + $0x68] sm:$0xff]  }
  0x2e   : > { %v1670_v44 = vld [vmem:[%s1850_s7 + $0x98] sm:$0xff]   ;;  %v1672_v46 = vld [vmem:[%s1850_s7 + $0x20] sm:$0xff]   ;;  %v1675_v50 = vld [vmem:[%s1850_s7 + $0x28] sm:$0xff]  }
  0x2f   : > { %1425 = vmatpush3.bf16.msra.mxu0 %v1642_v12  ;;  %v1673_v47 = vld [vmem:[%s1850_s7 + $0xa0] sm:$0xff]   ;;  %v1676_v52 = vld [vmem:[%s1850_s7 + $0xa8] sm:$0xff]   ;;  %v1677_v53 = vld [vmem:[%s1850_s7 + $0x70] sm:$0xff]  }
  0x30   : > { %1518 = vmatpush3.bf16.msra.mxu1 %v1643_v13  ;;  %1426 = vmatprep.subr.bf16.mxu0 %v1644_v14  ;;  %v253_v49 = vld [vmem:[%s1845_s4] sm:$0x33]  ;;  %v1678_v54 = vld [vmem:[%s1850_s7 + $0x30] sm:$0xff]   ;;  %v1680_v56 = vld [vmem:[%s1850_s7 + $0x78] sm:$0xff]  }
  0x31   : > { %1519 = vmatprep.subr.bf16.mxu1 %v1769_v2  ;;  %v1315_v51 = vcombine.high %v253_v49, %v253_v49  ;;  %v1679_v55 = vld [vmem:[%s1850_s7 + $0xb0] sm:$0xff]   ;;  %v1681_v57 = vld [vmem:[%s1850_s7 + $0x38] sm:$0xff]   ;;  %v1685_v59 = vld [vmem:[%s1850_s7 + $0x1c0] sm:$0xff]   ;;  %v1314_v61 = vcombine.low %v253_v49, %v253_v49 }
  0x32   : > { %v1682_v58 = vld [vmem:[%s1850_s7 + $0xb8] sm:$0xff]   ;;  %v1686_v60 = vld [vmem:[%s1845_s4 + $0x8] ss:$0 sps:$4 sm:$0x33]   ;;  %v1687_v62 = vld [vmem:[%s1850_s7 + $0x180] sm:$0xff]  }
  0x33   : > { %1427 = vmatpush3.bf16.msra.mxu0 %v1645_v15  ;;  %v1688_v63 = vld [vmem:[%s1850_s7 + $0x200] sm:$0xff]   ;;  %v1689_v0 = vld [vmem:[%s1850_s7 + $0x1c8] sm:$0xff]   ;;  %v1692_v4 = vld [vmem:[%s1850_s7 + $0x1d0] sm:$0xff]  }
  0x34   : > { %1520 = vmatpush3.bf16.msra.mxu1 %v1646_v16  ;;  %1428 = vmatprep.subr.bf16.mxu0 %v1647_v17  ;;  %v1690_v1 = vld [vmem:[%s1850_s7 + $0x188] sm:$0xff]   ;;  %v1693_v5 = vld [vmem:[%s1850_s7 + $0x190] sm:$0xff]   ;;  %v1695_v7 = vld [vmem:[%s1850_s7 + $0x1d8] sm:$0xff]  }
  0x35   : > { %1521 = vmatprep.subr.bf16.mxu1 %v1769_v2  ;;  %v1691_v3 = vld [vmem:[%s1850_s7 + $0x208] sm:$0xff]   ;;  %v1694_v6 = vld [vmem:[%s1850_s7 + $0x210] sm:$0xff]   ;;  %v827_v8 = vld [vmem:[%s1845_s4] sm:$0xcc] }
  0x36   : > { %v1696_v9 = vld [vmem:[%s1850_s7 + $0x198] sm:$0xff]   ;;  %v1390_v10 = vcombine.high %v827_v8, %v827_v8  ;;  %v1698_v12 = vld [vmem:[%s1850_s7 + $0x1e0] sm:$0xff]   ;;  %v1701_v16 = vld [vmem:[%s1850_s7 + $0x1e8] sm:$0xff]  }
  0x37   : > { %1429 = vmatpush3.bf16.msra.mxu0 %v1648_v18  ;;  %v1697_v11 = vld [vmem:[%s1850_s7 + $0x218] sm:$0xff]   ;;  %v1699_v14 = vld [vmem:[%s1850_s7 + $0x1a0] sm:$0xff]   ;;  %v1702_v17 = vld [vmem:[%s1850_s7 + $0x1a8] sm:$0xff]  }
  0x38   : > { %1522 = vmatpush3.bf16.msra.mxu1 %v1649_v19  ;;  %1430 = vmatprep.subr.bf16.mxu0 %v1650_v20  ;;  %v887_v13 = vrot.slane %v1390_v10, 2  ;;  %v1700_v15 = vld [vmem:[%s1850_s7 + $0x220] sm:$0xff]   ;;  %v1703_v18 = vld [vmem:[%s1850_s7 + $0x228] sm:$0xff]   ;;  %v1704_v19 = vld [vmem:[%s1850_s7 + $0x1f0] sm:$0xff]  }
  0x39   : > { %1523 = vmatprep.subr.bf16.mxu1 %v1769_v2  ;;  %v1705_v20 = vld [vmem:[%s1850_s7 + $0x1b0] sm:$0xff]   ;;  %v1708_v24 = vld [vmem:[%s1850_s7 + $0x1b8] sm:$0xff]  }
  0x3a   : > { %v1709_v26 = vld [vmem:[%s1850_s7 + $0x238] sm:$0xff]  }
  0x3b   : > { %1431 = vmatpush3.bf16.msra.mxu0 %v1651_v21  ;;  %v1706_v21 = vld [vmem:[%s1850_s7 + $0x230] sm:$0xff]  }
  0x3c   : > { %1524 = vmatpush3.bf16.msra.mxu1 %v1652_v22  ;;  %1432 = vmatprep.subr.bf16.mxu0 %v1653_v23  ;;  %v1707_v22 = vld [vmem:[%s1850_s7 + $0x1f8] sm:$0xff]   ;;  %v1389_v23 = vcombine.low %v827_v8, %v827_v8 }
  0x3d   : > { %1525 = vmatprep.subr.bf16.mxu1 %v1769_v2 }
  0x3f   : > { %1433 = vmatpush3.bf16.msra.mxu0 %v1654_v25  ;;  %v1712_v25 = vld [vmem:[%s1845_s4 + $0x8] ss:$0 sps:$4 sm:$0xcc]  }
  0x40   : > { %1526 = vmatpush3.bf16.msra.mxu1 %v1655_v27  ;;  %1449 = vmatprep.subr.bf16.mxu0 %v1658_v29  ;;  %v886_v27 = vrot.slane %v1389_v23, 2  ;;  %v888_v28 = vrot.slane %v1712_v25, 2 }
  0x41   : > { %1531 = vmatprep.subr.bf16.mxu1 %v1769_v2 }
  0x42   : > { %545 = vmatmul.mubr.bf16.vlgmr.msra.gmra.mrb[0].mxu0 %v362_v32 }
  0x43   : > { %1528 = vmatmul.mubr.bf16.vlgmr.msra.gmra.mrb[0].mxu1 %v364_v34  ;;  %1450 = vmatpush3.bf16.msra.mxu0 %v1660_v33 }
  0x44   : > { %1532 = vmatpush3.bf16.msra.mxu1 %v1661_v35  ;;  %1451 = vmatprep.subr.bf16.mxu0 %v1662_v36 }
  0x45   : > { %1533 = vmatprep.subr.bf16.mxu1 %v1769_v2  ;;  %1547 = vmatprep.mubr.msk.bf16.mxu1 %vm1770_vm1, %v1769_v2 }
  0x46   : > { %779 = vmatprep.mubr.bf16.mxu0 %v1315_v51 }
  0x47   : > { %1452 = vmatpush3.bf16.msra.mxu0 %v1663_v37 }
  0x48   : > { %1534 = vmatpush3.bf16.msra.mxu1 %v1664_v38  ;;  %1453 = vmatprep.subr.bf16.mxu0 %v1665_v39 }
  0x49   : > { %1535 = vmatprep.subr.bf16.mxu1 %v1769_v2 }
  0x4b   : > { %1454 = vmatpush3.bf16.msra.mxu0 %v1666_v40 }
  0x4c   : > { %1536 = vmatpush3.bf16.msra.mxu1 %v1667_v41  ;;  %1455 = vmatprep.subr.bf16.mxu0 %v1668_v42 }
  0x4d   : > { %1537 = vmatprep.subr.bf16.mxu1 %v1769_v2 }
  0x4f   : > { %1456 = vmatpush3.bf16.msra.mxu0 %v1669_v43 }
  0x50   : > { %1538 = vmatpush3.bf16.msra.mxu1 %v1670_v44  ;;  %1457 = vmatprep.subr.bf16.mxu0 %v1671_v45 }
  0x51   : > { %1539 = vmatprep.subr.bf16.mxu1 %v1769_v2 }
  0x53   : > { %1458 = vmatpush3.bf16.msra.mxu0 %v1672_v46 }
  0x54   : > { %1540 = vmatpush3.bf16.msra.mxu1 %v1673_v47  ;;  %1459 = vmatprep.subr.bf16.mxu0 %v1674_v48 }
  0x55   : > { %1541 = vmatprep.subr.bf16.mxu1 %v1769_v2 }
  0x57   : > { %1460 = vmatpush3.bf16.msra.mxu0 %v1675_v50 }
  0x58   : > { %1542 = vmatpush3.bf16.msra.mxu1 %v1676_v52  ;;  %1461 = vmatprep.subr.bf16.mxu0 %v1677_v53 }
  0x59   : > { %1543 = vmatprep.subr.bf16.mxu1 %v1769_v2 }
  0x5b   : > { %1462 = vmatpush3.bf16.msra.mxu0 %v1678_v54 }
  0x5c   : > { %1544 = vmatpush3.bf16.msra.mxu1 %v1679_v55  ;;  %1463 = vmatprep.subr.bf16.mxu0 %v1680_v56 }
  0x5d   : > { %1545 = vmatprep.subr.bf16.mxu1 %v1769_v2 }
  0x5f   : > { %1464 = vmatpush3.bf16.msra.mxu0 %v1681_v57 }
  0x60   : > { %1546 = vmatpush3.bf16.msra.mxu1 %v1682_v58  ;;  %1480 = vmatprep.subr.bf16.mxu0 %v1685_v59  ;;  %v1117_v59 = vld [vmem:[%s1856_s23] sm:$0xf] }
  0x61   : > { %1551 = vmatprep.subr.bf16.mxu1 %v1769_v2 }
  0x62   : > { %780 = vmatmul.mubr.bf16.vlgmr.msra.gmra.mrb[4].mxu0 %v1314_v61 }
  0x63   : > { %1548 = vmatmul.mubr.bf16.vlgmr.msra.gmra.mrb[4].mxu1 %v1686_v60  ;;  %1481 = vmatpush3.bf16.msra.mxu0 %v1687_v62 }
  0x64   : > { %1552 = vmatpush3.bf16.msra.mxu1 %v1688_v63  ;;  %1482 = vmatprep.subr.bf16.mxu0 %v1689_v0 }
  0x65   : > { %1553 = vmatprep.subr.bf16.mxu1 %v1769_v2  ;;  %1567 = vmatprep.mubr.msk.bf16.mxu1 %vm1770_vm1, %v1769_v2 }
  0x66   : > { %1068 = vmatprep.mubr.bf16.mxu0 %v887_v13 }
  0x67   : > { %1483 = vmatpush3.bf16.msra.mxu0 %v1690_v1 }
  0x68   : > { %1554 = vmatpush3.bf16.msra.mxu1 %v1691_v3  ;;  %1484 = vmatprep.subr.bf16.mxu0 %v1692_v4 }
  0x69   : > { %1555 = vmatprep.subr.bf16.mxu1 %v1769_v2 }
  0x6b   : > { %1485 = vmatpush3.bf16.msra.mxu0 %v1693_v5 }
  0x6c   : > { %1556 = vmatpush3.bf16.msra.mxu1 %v1694_v6  ;;  %1486 = vmatprep.subr.bf16.mxu0 %v1695_v7 }
  0x6d   : > { %1557 = vmatprep.subr.bf16.mxu1 %v1769_v2 }
  0x6f   : > { %1487 = vmatpush3.bf16.msra.mxu0 %v1696_v9 }
  0x70   : > { %1558 = vmatpush3.bf16.msra.mxu1 %v1697_v11  ;;  %1488 = vmatprep.subr.bf16.mxu0 %v1698_v12 }
  0x71   : > { %1559 = vmatprep.subr.bf16.mxu1 %v1769_v2 }
  0x73   : > { %1489 = vmatpush3.bf16.msra.mxu0 %v1699_v14 }
  0x74   : > { %1560 = vmatpush3.bf16.msra.mxu1 %v1700_v15  ;;  %1490 = vmatprep.subr.bf16.mxu0 %v1701_v16 }
  0x75   : > { %1561 = vmatprep.subr.bf16.mxu1 %v1769_v2 }
  0x77   : > { %1491 = vmatpush3.bf16.msra.mxu0 %v1702_v17 }
  0x78   : > { %1562 = vmatpush3.bf16.msra.mxu1 %v1703_v18  ;;  %1492 = vmatprep.subr.bf16.mxu0 %v1704_v19 }
  0x79   : > { %1563 = vmatprep.subr.bf16.mxu1 %v1769_v2 }
  0x7b   : > { %1493 = vmatpush3.bf16.msra.mxu0 %v1705_v20 }
  0x7c   : > { %1564 = vmatpush3.bf16.msra.mxu1 %v1706_v21  ;;  %1494 = vmatprep.subr.bf16.mxu0 %v1707_v22 }
  0x7d   : > { %1565 = vmatprep.subr.bf16.mxu1 %v1769_v2 }
  0x7f   : > { %1495 = vmatpush3.bf16.msra.mxu0 %v1708_v24 }
  0x80   : > { %1566 = vmatpush3.bf16.msra.mxu1 %v1709_v26 }
  0x82   : > { %1069 = vmatmul.mubr.bf16.vlgmr.msra.gmra.mrb[8].mxu0 %v886_v27 }
  0x83   : > { %1568 = vmatmul.mubr.bf16.vlgmr.msra.gmra.mrb[8].mxu1 %v888_v28 }
 0x115   : > { %v1434_v29 = vpop.f32.mrb[0].mxu0 }
 0x116   : > { %v1435_v30 = vpop.f32.mrb[1].mxu0  ;;  %v586_v31 = vpop.f32.mrb[0].mxu1 }
 0x117   : > { %v1436_v32 = vadd.f32 %v1435_v30, %v1434_v29  ;;  %v1437_v33 = vpop.f32.mrb[2].mxu0  ;;  %v1529_v34 = vpop.f32.mrb[1].mxu1 }
 0x118   : > { %v1438_v35 = vpop.f32.mrb[3].mxu0  ;;  %v589_v36 = vpop.f32.mrb[2].mxu1 }
 0x119   : > { %v587_v37 = vadd.f32 %v1436_v32, %v586_v31  ;;  %v1530_v38 = vpop.f32.mrb[3].mxu1 }
 0x135   : > { %v1465_v39 = vpop.f32.mrb[4].mxu0 }
 0x136   : > { %v1466_v40 = vpop.f32.mrb[5].mxu0  ;;  %v821_v41 = vpop.f32.mrb[4].mxu1 }
 0x137   : > { %v1467_v2 = vadd.f32 %v1466_v40, %v1465_v39  ;;  %v1468_v42 = vpop.f32.mrb[6].mxu0  ;;  %v1549_v43 = vpop.f32.mrb[5].mxu1 }
 0x138   : > { %v1469_v44 = vpop.f32.mrb[7].mxu0  ;;  %v824_v45 = vpop.f32.mrb[6].mxu1 }
 0x139   : > { %v782_v46 = vadd.f32 %v1467_v2, %v587_v37  ;;  %v1550_v47 = vpop.f32.mrb[7].mxu1 }
 0x13b   : > { %v822_v48 = vadd.f32 %v821_v41, %v782_v46 }
 0x155   : > { %v1496_v49 = vpop.f32.mrb[8].mxu0 }
 0x156   : > { %v1110_v50 = vpop.f32.mrb[8].mxu1  ;;  %v1497_v51 = vpop.f32.mrb[9].mxu0 }
 0x157   : > { %v1498_v52 = vadd.f32 %v1497_v51, %v1496_v49  ;;  %v1569_v53 = vpop.f32.mrb[9].mxu1  ;;  %v1499_v54 = vpop.f32.mrb[10].mxu0 }
 0x158   : > { %v1113_v55 = vpop.f32.mrb[10].mxu1  ;;  %v1500_v56 = vpop.f32.mrb[11].mxu0 }
 0x159   : > { %v1111_v57 = vadd.f32 %v1498_v52, %v1110_v50  ;;  %v1570_v58 = vpop.f32.mrb[11].mxu1 }
 0x15b   : > { %v1116_v60 = vadd.f32 %v1111_v57, %v822_v48 }
 0x15d   : > { %v1118_v61 = vadd.f32 %v1117_v59, %v1116_v60 }
 0x15f   : > { %1120 = vst.msk [vmem:[%s1856_s23] sm:$0xf] %vm1119_vm2, %v1118_v61 }
 0x160 PF: > { %s13_s18 = sadd.s32 1, %s1767_s18   ;;  %s1998_s12 = smov %s1755_s15 }
 0x161   : > { %p10_p11 = scmp.ge.s32.totalorder %s13_s18, 14   ;;  %s1999_s13 = smov %s1759_s16 }
 0x162   : > { %s2000_s14 = smov %s1763_s17  ;;  %s2001_s15 = smov %s2005_s19 }
 0x163   : > { %s2002_s16 = smov %s2009_s20  ;;  %s2003_s17 = smov %s2013_s21 }
 0x164   :  { %12 = sbr.rel (!%p10_p11) target bundleno = 4 (0x4), region = 71 }

// kernel: simple_unet_forward.13
= control target key start
LH: loop header
LB: loop body
LE: loop exit
PB: predicated region body
PF: predicated region fallthrough
CT: control target
= control target key end

     0   :  { %s1129_s12 = smov 0   ;;  %s1131_s13 = smov 0   ;;  %s1317_s0 = inlined_call_operand.vmem [shape: bf16[2,6,24,192], index: 0, kind: input, shape index: {}]   ;;  %s1318_s1 = inlined_call_operand.vmem [shape: bf16[3,3,192,32], index: 1, kind: input, shape index: {}]   ;;  %s1319_s2 = inlined_call_operand.vmem [shape: f32[1,32], index: 2, kind: input, shape index: {}]   ;;  %s1320_s3 = inlined_call_operand.vmem [shape: f32[2,4,16,32], index: 3, kind: output, shape index: {}]  }
   0x1   :  { %s1133_s14 = smov 0   ;;  %s1135_s15 = smov 0  }
   0x2   :  { %s1137_s16 = smov 0   ;;  %s1139_s17 = smov 0  }
   0x3   :  { %s1141_s18 = smov 0  }
   0x4 LB: > { %s25_s19 = sadd.s32 1, %s1094_s15  ;;  %s28_s20 = sadd.s32 1, %s1098_s16  ;;  %s1106_s18 = sphi %s1141_s18, %s13_s18   ;;  %s1102_s17 = sphi %s1139_s17, %s1326_s17   ;;  %s1098_s16 = sphi %s1137_s16, %s1325_s16   ;;  %s1094_s15 = sphi %s1135_s15, %s1324_s15   ;;  %s1090_s14 = sphi %s1133_s14, %s1323_s14   ;;  %s1086_s13 = sphi %s1131_s13, %s1322_s13   ;;  %s1082_s12 = sphi %s1129_s12, %s1321_s12  }
   0x5   : > { %p26_p0 = scmp.ge.s32.totalorder %s25_s19, 3  ;;  %p843_p1 = scmp.ge.s32.totalorder %s1106_s18, 1 }
   0x6   : > { %p178_p2 = scmp.lt.s32.totalorder %s1106_s18, 25  ;;  %s32_s21 = sadd.s32 1, %s1102_s17 }
   0x7   : > { %s1328_s19 = smov (%p26_p0, %s25_s19), 0  ;;  %s1330_s20 = smov (!%p26_p0, %s28_s20), %s1098_s16 }
   0x8   : > { %p179_p3 = pnand %p843_p1, %p178_p2  ;;  %p30_p4 = scmp.ge.s32.totalorder %s1330_s20, 4 }
   0x9   : > { %s216_s22 = sadd.s32 (!%p179_p3), %s1082_s12, %s1086_s13  ;;  %p217_p6 = scmp.lt.s32.totalorder (!%p179_p3), %s1090_s14, 1 }
   0xa   : > { %s1332_s20 = smov (%p30_p4, %s1330_s20), 0  ;;  %s1334_s21 = smov (!%p30_p4, %s32_s21), %s1102_s17 }
   0xb   : > { %p34_p5 = scmp.ge.s32.totalorder %s1334_s21, 2  ;;  %182 = sbr.rel (%p179_p3) target bundleno = 349 (0x15d), region = 32 }
   0xc   : > { %p219_p7 = scmp.lt.s32.totalorder (!%p179_p3), %s216_s22, 5  ;;  %p227_p8 = scmp.lt.s32.totalorder (!%p179_p3), %s1082_s12, 2 }
   0xd   : > { %s1336_s21 = smov (%p34_p5, %s1334_s21), 0  ;;  %p234_p9 = scmp.lt.s32.totalorder (!%p179_p3), %s1086_s13, 3 }
   0xe   : > { %p849_p10 = scmp.ne.s32.totalorder (!%p179_p3), %s1082_s12, 0 }
  0x12   : > { %s1338_s14 = smov (!%p217_p6, %s1090_s14), 1  ;;  %s1340_s22 = smov (!%p219_p7, %s216_s22), 5 }
  0x13   : > { %s949_s23 = smul.u32 36, %s1338_s14  ;;  %s847_s8 = sshll.u32 %s1338_s14, 3  ;;  %v850_v0 = vld [vmem:[%s1319_s2] ss:$0 sm:$0xff] (!%p849_p10)  ;;  %vm253_vm0 = vcmask (!%p849_p10), 261120  }
  0x14   : > { %s948_s24 = smul.u32 6, %s1340_s22  ;;  %s1342_s13 = smov (!%p234_p9, %s1086_s13), 3 }
  0x15   : > { %s228_s25 = scalar_select %p227_p8, %s1082_s12, 2 }
  0x16   : > { %s223_s26 = sadd.s32 %s949_s23, %s948_s24  ;;  %s846_s9 = sshll.u32 %s1342_s13, 1 }
  0x17   : > { %s844_s27 = sshll.u32 %s223_s26, 2  ;;  %s950_s28 = smul.u32 288, %s228_s25 }
  0x18   : > { %s1183_s4 = scalar_lea.vmem %s1317_s0, %s844_s27  ;;  %s238_s10 = sadd.s32 %s847_s8, %s846_s9 }
  0x19   : > { %s1188_s7 = scalar_lea.vmem %s1318_s1, %s950_s28  ;;  %s848_s11 = sshll.u32 %s238_s10, 3 }
  0x1a   : > { %s1194_s24 = scalar_lea.vmem %s1320_s3, %s848_s11  ;;  %245 = sbr.rel (%p849_p10) target bundleno = 33 (0x21), region = 36 }
  0x1b   : > { %254 = vst.msk [vmem:[%s1194_s24] sm:$0xff] (!%p849_p10), %vm253_vm0, %v850_v0  ;;  %255 = vst.msk [vmem:[%s1194_s24 + $0x8] sm:$0xff] (!%p849_p10), %vm253_vm0, %v850_v0 }
  0x21 PF: > { %v1008_v1 = vld [vmem:[%s1188_s7 + $0x60] sm:$0xff]   ;;  %v1108_v2 = vmov 0   ;;  %v1010_v4 = vld [vmem:[%s1188_s7 + $0x68] sm:$0xff]   ;;  %v1012_v6 = vld [vmem:[%s1188_s7 + $0x70] sm:$0xff]   ;;  %vm402_vm1 = vcmask 523264   ;;  %vm322_vm2 = vcmask 1045504  }
  0x22   : > { %406 = vmatprep.subr.bf16.mxu0 %v1108_v2  ;;  %528 = vmatprep.subr.bf16.mxu1 %v1108_v2  ;;  %v1009_v3 = vld [vmem:[%s1188_s7] sm:$0xff]   ;;  %v1011_v5 = vld [vmem:[%s1188_s7 + $0x8] sm:$0xff]   ;;  %v1013_v7 = vld [vmem:[%s1188_s7 + $0x10] sm:$0xff]   ;;  %vm723_vm3 = vcmask 261120  }
  0x23   : > { %407 = vmatpush1.bf16.msra.mxu0 %v1008_v1  ;;  %529 = vmatpush1.bf16.msra.mxu1 %v1009_v3  ;;  %v1014_v8 = vld [vmem:[%s1188_s7 + $0x78] sm:$0xff]   ;;  %v1016_v10 = vld [vmem:[%s1188_s7 + $0x80] sm:$0xff]   ;;  %v1018_v12 = vld [vmem:[%s1188_s7 + $0x88] sm:$0xff]  }
  0x24   : > { %408 = vmatprep.subr.bf16.mxu0 %v1108_v2  ;;  %530 = vmatprep.subr.bf16.mxu1 %v1108_v2  ;;  %v1015_v9 = vld [vmem:[%s1188_s7 + $0x18] sm:$0xff]   ;;  %v1017_v11 = vld [vmem:[%s1188_s7 + $0x20] sm:$0xff]   ;;  %v1019_v13 = vld [vmem:[%s1188_s7 + $0x28] sm:$0xff]  }
  0x25   : > { %v1020_v14 = vld [vmem:[%s1188_s7 + $0x90] sm:$0xff]   ;;  %v1231_v16 = vld [vmem:[%s1183_s4 + $0x8] sm:$0xff]  ;;  %v282_v17 = vld [vmem:[%s1183_s4] sm:$0xcc] }
  0x26   : > { %v1021_v15 = vld [vmem:[%s1188_s7 + $0x30] sm:$0xff]   ;;  %v876_v19 = vcombine.high %v282_v17, %v1231_v16  ;;  %v256_v21 = vld [vmem:[%s1183_s4] sm:$0xff]  ;;  %v1022_v22 = vld [vmem:[%s1188_s7 + $0x98] sm:$0xff]   ;;  %v875_v33 = vcombine.low %v282_v17, %v1231_v16 }
  0x27   : > { %409 = vmatpush1.bf16.msra.mxu0 %v1010_v4  ;;  %531 = vmatpush1.bf16.msra.mxu1 %v1011_v5  ;;  %v283_v18 = vld [vmem:[%s1183_s4 + $0x10] sm:$0x33]  ;;  %v893_v23 = vcombine.high %v256_v21, %v1231_v16  ;;  %v1023_v24 = vld [vmem:[%s1188_s7 + $0x38] sm:$0xff]   ;;  %v1024_v28 = vld [vmem:[%s1188_s7 + $0xa0] sm:$0xff]   ;;  %v892_v41 = vcombine.low %v256_v21, %v1231_v16 }
  0x28   : > { %410 = vmatprep.subr.bf16.mxu0 %v1108_v2  ;;  %532 = vmatprep.subr.bf16.mxu1 %v1108_v2  ;;  %v878_v20 = vcombine.high %v283_v18, %v283_v18  ;;  %v326_v25 = vrot.slane %v876_v19, 2  ;;  %v1025_v29 = vld [vmem:[%s1188_s7 + $0x40] sm:$0xff]   ;;  %v1026_v30 = vld [vmem:[%s1188_s7 + $0xa8] sm:$0xff]   ;;  %v1028_v32 = vld [vmem:[%s1188_s7 + $0xb0] sm:$0xff]   ;;  %v877_v34 = vcombine.low %v283_v18, %v283_v18  ;;  %v323_v37 = vrot.slane %v875_v33, 2 }
  0x29   : > { %906 = vmatprep.mubr.msk.bf16.mxu1 %vm402_vm1, %v893_v23  ;;  %v1027_v31 = vld [vmem:[%s1188_s7 + $0x48] sm:$0xff]   ;;  %v1029_v35 = vld [vmem:[%s1188_s7 + $0x50] sm:$0xff]   ;;  %v1030_v36 = vld [vmem:[%s1188_s7 + $0xb8] sm:$0xff]  }
  0x2a   : > { %v327_v26 = vrot.slane %v878_v20, 2  ;;  %v324_v38 = vrot.slane %v877_v34, 2  ;;  %v1031_v39 = vld [vmem:[%s1188_s7 + $0x58] sm:$0xff]   ;;  %v569_v40 = vld [vmem:[%s1183_s4 + $0x10] sm:$0xff]  ;;  %v1038_v43 = vld [vmem:[%s1188_s7 + $0xc0] sm:$0xff]  }
  0x2b   : > { %411 = vmatpush1.bf16.msra.mxu0 %v1012_v6  ;;  %533 = vmatpush1.bf16.msra.mxu1 %v1013_v7  ;;  %v932_v44 = vcombine.high %v1231_v16, %v569_v40  ;;  %v1039_v45 = vld [vmem:[%s1188_s7 + $0xc8] sm:$0xff]   ;;  %v1040_v46 = vld [vmem:[%s1188_s7 + $0xd0] sm:$0xff]   ;;  %v1041_v47 = vld [vmem:[%s1188_s7 + $0xd8] sm:$0xff]   ;;  %v931_v56 = vcombine.low %v1231_v16, %v569_v40 }
  0x2c   : > { %412 = vmatprep.subr.bf16.mxu0 %v1108_v2  ;;  %534 = vmatprep.subr.bf16.mxu1 %v1108_v2  ;;  %v328_v27 = vsel %vm322_vm2, %v326_v25, %v327_v26  ;;  %v325_v42 = vsel %vm322_vm2, %v323_v37, %v324_v38  ;;  %v1042_v48 = vld [vmem:[%s1188_s7 + $0xe0] sm:$0xff]   ;;  %v1043_v49 = vld [vmem:[%s1188_s7 + $0xe8] sm:$0xff]   ;;  %v1044_v50 = vld [vmem:[%s1188_s7 + $0xf0] sm:$0xff]  }
  0x2d   : > { %891 = vmatprep.mubr.msk.bf16.mxu0 %vm402_vm1, %v328_v27  ;;  %v1045_v51 = vld [vmem:[%s1188_s7 + $0xf8] sm:$0xff]   ;;  %v1046_v52 = vld [vmem:[%s1188_s7 + $0x100] sm:$0xff]   ;;  %v1047_v53 = vld [vmem:[%s1188_s7 + $0x108] sm:$0xff]  }
  0x2e   : > { %v1048_v54 = vld [vmem:[%s1188_s7 + $0x110] sm:$0xff]   ;;  %v1049_v55 = vld [vmem:[%s1188_s7 + $0x118] sm:$0xff]   ;;  %v719_v5 = vld [vmem:[%s1194_s24] sm:$0xff] }
  0x2f   : > { %413 = vmatpush1.bf16.msra.mxu0 %v1014_v8  ;;  %535 = vmatpush1.bf16.msra.mxu1 %v1015_v9  ;;  %v720_v8 = vld [vmem:[%s1194_s24 + $0x8] sm:$0xff] }
  0x30   : > { %414 = vmatprep.subr.bf16.mxu0 %v1108_v2  ;;  %536 = vmatprep.subr.bf16.mxu1 %v1108_v2 }
  0x33   : > { %415 = vmatpush1.bf16.msra.mxu0 %v1016_v10  ;;  %537 = vmatpush1.bf16.msra.mxu1 %v1017_v11 }
  0x34   : > { %416 = vmatprep.subr.bf16.mxu0 %v1108_v2  ;;  %538 = vmatprep.subr.bf16.mxu1 %v1108_v2 }
  0x37   : > { %417 = vmatpush1.bf16.msra.mxu0 %v1018_v12  ;;  %539 = vmatpush1.bf16.msra.mxu1 %v1019_v13 }
  0x38   : > { %418 = vmatprep.subr.bf16.mxu0 %v1108_v2  ;;  %540 = vmatprep.subr.bf16.mxu1 %v1108_v2 }
  0x3b   : > { %419 = vmatpush1.bf16.msra.mxu0 %v1020_v14  ;;  %541 = vmatpush1.bf16.msra.mxu1 %v1021_v15 }
  0x3c   : > { %420 = vmatprep.subr.bf16.mxu0 %v1108_v2  ;;  %542 = vmatprep.subr.bf16.mxu1 %v1108_v2 }
  0x3f   : > { %421 = vmatpush1.bf16.msra.mxu0 %v1022_v22  ;;  %543 = vmatpush1.bf16.msra.mxu1 %v1023_v24 }
  0x40   : > { %422 = vmatprep.subr.bf16.mxu0 %v1108_v2  ;;  %544 = vmatprep.subr.bf16.mxu1 %v1108_v2 }
  0x43   : > { %423 = vmatpush1.bf16.msra.mxu0 %v1024_v28  ;;  %545 = vmatpush1.bf16.msra.mxu1 %v1025_v29 }
  0x44   : > { %424 = vmatprep.subr.bf16.mxu0 %v1108_v2  ;;  %546 = vmatprep.subr.bf16.mxu1 %v1108_v2 }
  0x47   : > { %425 = vmatpush1.bf16.msra.mxu0 %v1026_v30  ;;  %547 = vmatpush1.bf16.msra.mxu1 %v1027_v31 }
  0x48   : > { %426 = vmatprep.subr.bf16.mxu0 %v1108_v2  ;;  %548 = vmatprep.subr.bf16.mxu1 %v1108_v2 }
  0x4b   : > { %427 = vmatpush1.bf16.msra.mxu0 %v1028_v32  ;;  %549 = vmatpush1.bf16.msra.mxu1 %v1029_v35 }
  0x4c   : > { %428 = vmatprep.subr.bf16.mxu0 %v1108_v2  ;;  %550 = vmatprep.subr.bf16.mxu1 %v1108_v2 }
  0x4f   : > { %429 = vmatpush1.bf16.msra.mxu0 %v1030_v36  ;;  %551 = vmatpush1.bf16.msra.mxu1 %v1031_v39 }
  0x50   : > { %676 = vmatprep.subr.bf16.mxu0 %v1108_v2 }
  0x52   : > { %439 = vmatmul.mubr.bf16.vlgmr.msra.gmra.mrb[0].mxu0 %v325_v42  ;;  %561 = vmatmul.mubr.bf16.vlgmr.msra.gmra.mrb[0].mxu1 %v892_v41 }
  0x53   : > { %677 = vmatpush1.bf16.msra.mxu0 %v1038_v43  ;;  %945 = vmatprep.mubr.msk.bf16.mxu0 %vm402_vm1, %v932_v44 }
  0x54   : > { %678 = vmatprep.subr.bf16.mxu0 %v1108_v2 }
  0x57   : > { %679 = vmatpush1.bf16.msra.mxu0 %v1039_v45 }
  0x58   : > { %680 = vmatprep.subr.bf16.mxu0 %v1108_v2 }
  0x5b   : > { %681 = vmatpush1.bf16.msra.mxu0 %v1040_v46 }
  0x5c   : > { %682 = vmatprep.subr.bf16.mxu0 %v1108_v2 }
  0x5f   : > { %683 = vmatpush1.bf16.msra.mxu0 %v1041_v47 }
  0x60   : > { %684 = vmatprep.subr.bf16.mxu0 %v1108_v2 }
  0x63   : > { %685 = vmatpush1.bf16.msra.mxu0 %v1042_v48 }
  0x64   : > { %686 = vmatprep.subr.bf16.mxu0 %v1108_v2 }
  0x67   : > { %687 = vmatpush1.bf16.msra.mxu0 %v1043_v49 }
  0x68   : > { %688 = vmatprep.subr.bf16.mxu0 %v1108_v2 }
  0x6b   : > { %689 = vmatpush1.bf16.msra.mxu0 %v1044_v50 }
  0x6c   : > { %690 = vmatprep.subr.bf16.mxu0 %v1108_v2 }
  0x6f   : > { %691 = vmatpush1.bf16.msra.mxu0 %v1045_v51 }
  0x70   : > { %692 = vmatprep.subr.bf16.mxu0 %v1108_v2 }
  0x73   : > { %693 = vmatpush1.bf16.msra.mxu0 %v1046_v52 }
  0x74   : > { %694 = vmatprep.subr.bf16.mxu0 %v1108_v2 }
  0x77   : > { %695 = vmatpush1.bf16.msra.mxu0 %v1047_v53 }
  0x78   : > { %696 = vmatprep.subr.bf16.mxu0 %v1108_v2 }
  0x7b   : > { %697 = vmatpush1.bf16.msra.mxu0 %v1048_v54 }
  0x7c   : > { %698 = vmatprep.subr.bf16.mxu0 %v1108_v2 }
  0x7f   : > { %699 = vmatpush1.bf16.msra.mxu0 %v1049_v55 }
  0x82   : > { %709 = vmatmul.mubr.bf16.vlgmr.msra.gmra.mrb[4].mxu0 %v931_v56 }
 0x125   : > { %v440_v57 = vpop.f32.mrb[0].mxu0  ;;  %v562_v58 = vpop.f32.mrb[0].mxu1 }
 0x126   : > { %v442_v59 = vpop.f32.mrb[1].mxu0  ;;  %v563_v60 = vadd.f32 %v562_v58, %v440_v57  ;;  %v564_v61 = vpop.f32.mrb[1].mxu1 }
 0x127   : > { %v443_v62 = vpop.f32.mrb[2].mxu0  ;;  %v565_v63 = vpop.f32.mrb[2].mxu1 }
 0x128   : > { %v445_v0 = vpop.f32.mrb[3].mxu0  ;;  %v566_v1 = vadd.f32 %v565_v63, %v443_v62  ;;  %v567_v3 = vpop.f32.mrb[3].mxu1 }
 0x155   : > { %v710_v4 = vpop.f32.mrb[4].mxu0 }
 0x156   : > { %v717_v2 = vadd.f32 %v710_v4, %v563_v60  ;;  %v712_v6 = vpop.f32.mrb[5].mxu0 }
 0x157   : > { %v713_v7 = vpop.f32.mrb[6].mxu0 }
 0x158   : > { %v721_v9 = vadd.f32 %v719_v5, %v717_v2  ;;  %v718_v10 = vadd.f32 %v713_v7, %v566_v1  ;;  %v715_v11 = vpop.f32.mrb[7].mxu0 }
 0x15a   : > { %724 = vst.msk [vmem:[%s1194_s24] sm:$0xff] %vm723_vm3, %v721_v9  ;;  %v722_v12 = vadd.f32 %v720_v8, %v718_v10 }
 0x15c   : > { %725 = vst.msk [vmem:[%s1194_s24 + $0x8] sm:$0xff] %vm723_vm3, %v722_v12 }
 0x15d PF: > { %s13_s18 = sadd.s32 1, %s1106_s18   ;;  %s1321_s12 = smov %s1094_s15 }
 0x15e   : > { %p10_p11 = scmp.ge.s32.totalorder %s13_s18, 26   ;;  %s1322_s13 = smov %s1098_s16 }
 0x15f   : > { %s1323_s14 = smov %s1102_s17  ;;  %s1324_s15 = smov %s1328_s19 }
 0x160   : > { %s1325_s16 = smov %s1332_s20  ;;  %s1326_s17 = smov %s1336_s21 }
 0x161   :  { %12 = sbr.rel (!%p10_p11) target bundleno = 4 (0x4), region = 71 }

</bundles_post_ra>
